<compile_context>
chip_gen: v7x
topology: tpu7x:2x2x1
jax: 0.10.0
libtpu: 0.0.40
codegen_flags: <defaults>
</compile_context>

<pallas_src>
import jax
import jax.numpy as jnp
from jax.experimental import pallas as pl
from jax.experimental.pallas import tpu as pltpu

BN_EPS = 1e-5


# ---------------------------------------------------------------------------
# In-kernel helpers
# ---------------------------------------------------------------------------
def _bn_relu(y, gamma, beta):
    """Training-mode BatchNorm (batch stats, biased var) + ReLU, in f32.

    Mean-centred variance (two-pass) avoids the E[y^2]-E[y]^2 cancellation
    flagged in review; the centred value is reused for normalization.
    """
    m = y.shape[0]
    mean = jnp.sum(y, axis=0, keepdims=True) * (1.0 / m)
    yc = y - mean
    var = jnp.sum(yc * yc, axis=0, keepdims=True) * (1.0 / m)
    return jnp.maximum(yc * jax.lax.rsqrt(var + BN_EPS) * gamma + beta, 0.0)


def _store_fused_taps(src_ref, dst_ref, n_rows, Hs, Ws, cin):
    """Assemble the K-fused operand of a 3x3 / stride-2 / pad-1 conv.

    src_ref: (4*n_rows, cin) activation in parity-plane-major order
             (plane g = 2*(h%2) + (w%2); within-plane rows (n, h//2, w//2)).
    dst_ref: (n_rows, 9*cin) bf16 operand; column block t = 3*ki+kj receives
             tap (ki, kj) as a CONTIGUOUS row slice of src_ref at a static
             offset, with the conv zero-padding boundary applied as an iota
             mask (no halo storage, no strided gathers).
    """
    blk_h, blk_w = Hs * Ws, Ws
    for ki in range(3):
        ph, sh = (0, 0) if ki == 1 else (1, Ws if ki == 0 else 0)
        for kj in range(3):
            pw, sw = (0, 0) if kj == 1 else (1, 1 if kj == 0 else 0)
            g = 2 * ph + pw
            start = g * n_rows - sh - sw          # static; always >= 0 here
            v = src_ref[start:start + n_rows, :]
            if sh or sw:
                r = jax.lax.broadcasted_iota(jnp.int32, (n_rows, cin), 0)
                ok = None
                if sh:
                    ok = (r % blk_h) >= sh
                if sw:
                    okw = (r % blk_w) >= sw
                    ok = okw if ok is None else (ok & okw)
                v = jnp.where(ok, v, jnp.zeros_like(v))
            t = 3 * ki + kj
            dst_ref[:, t * cin:(t + 1) * cin] = v.astype(jnp.bfloat16)


def _make_fused_kernel(N, H1, W1, C1, C2, C3):
    H2, W2 = H1 // 2, W1 // 2
    H3, W3 = H2 // 2, W2 // 2
    P1 = N * H2 * W2          # conv2 output rows == rows per conv1 parity plane
    M3 = N * H3 * W3          # conv3 output rows == rows per conv2 parity plane

    def kernel(p1_ref, w1_ref, b1_ref, g1_ref, be1_ref,
               w2_ref, b2_ref, g2_ref, be2_ref,
               w3_ref, b3_ref, g3_ref, be3_ref,
               wfc_ref, bfc_ref,
               out_ref,
               a1_ref, op2_ref, a2_ref, a2p_ref, op3_ref):
        # ---- conv1 (7x7 s2 p3): one bf16 matmul on parity-ordered patches ----
        y1 = jnp.dot(p1_ref[...], w1_ref[...], preferred_element_type=jnp.float32)
        y1 = _bn_relu(y1 + b1_ref[...], g1_ref[...], be1_ref[...])     # (4*P1, C1)
        # One full, aligned, halo-free store; parity planes are row blocks.
        a1_ref[...] = y1

        # ---- conv2 (3x3 s2 p1): K-fused single matmul, K = 9*C1 ----
        _store_fused_taps(a1_ref, op2_ref, P1, H2, W2, C1)
        y2 = jnp.dot(op2_ref[...], w2_ref[...], preferred_element_type=jnp.float32)
        y2 = _bn_relu(y2 + b2_ref[...], g2_ref[...], be2_ref[...])     # (P1, C2)

        # ---- parity-split y2 for conv3: 1 aligned lane-dense store + 4 reads ----
        a2_ref[...] = y2.reshape(N, H2, W2, C2)
        for g, (ph, pw) in enumerate(((0, 0), (0, 1), (1, 0), (1, 1))):
            plane = a2_ref[:, pl.ds(ph, H3, stride=2), pl.ds(pw, W3, stride=2), :]
            a2p_ref[g * M3:(g + 1) * M3, :] = plane.reshape(M3, C2)

        # ---- conv3 (3x3 s2 p1): K-fused single matmul, K = 9*C2 ----
        _store_fused_taps(a2p_ref, op3_ref, M3, H3, W3, C2)
        y3 = jnp.dot(op3_ref[...], w3_ref[...], preferred_element_type=jnp.float32)
        y3 = _bn_relu(y3 + b3_ref[...], g3_ref[...], be3_ref[...])     # (M3, C3)

        # ---- head: global average pool + fc, fused (no extra launch) ----
        pooled = jnp.mean(y3.reshape(N, H3 * W3, C3), axis=1)          # (N, C3)
        out_ref[...] = (jnp.dot(pooled, wfc_ref[...],
                                preferred_element_type=jnp.float32)
                        + bfc_ref[...])

    return kernel


# ---------------------------------------------------------------------------
# Wrapper (layout plumbing + pallas_call)
# ---------------------------------------------------------------------------
def _full_spec(shape):
    nd = len(shape)
    return pl.BlockSpec(shape, lambda i, _nd=nd: (0,) * _nd)


def _im2col_parity(x_nhwc, k, stride, pad):
    """im2col with output rows ordered (h%2, w%2, n, h//2, w//2).

    Pure relayout done in XLA: conv1's matmul output then lands directly in
    the 2x2 space-to-depth (parity-plane) layout conv2 consumes.
    """
    N, H, W, C = x_nhwc.shape
    xp = jnp.pad(x_nhwc, ((0, 0), (pad, pad), (pad, pad), (0, 0)))
    Ho = (H + 2 * pad - k) // stride + 1
    Wo = (W + 2 * pad - k) // stride + 1
    assert Ho % 2 == 0 and Wo % 2 == 0, "demo size must give even conv1 output"
    cols = []
    for ki in range(k):
        for kj in range(k):
            cols.append(xp[:, ki:ki + stride * Ho:stride, kj:kj + stride * Wo:stride, :])
    patches = jnp.concatenate(cols, axis=-1)                 # (N, Ho, Wo, k*k*C)
    K = k * k * C
    pat = patches.reshape(N, Ho // 2, 2, Wo // 2, 2, K)
    pat = jnp.transpose(pat, (2, 4, 0, 1, 3, 5))             # (ph, pw, n, h', w', K)
    return pat.reshape(4 * N * (Ho // 2) * (Wo // 2), K), (Ho, Wo)


def simple_coatnet_forward(x_nchw, params):
    x = jnp.transpose(x_nchw, (0, 2, 3, 1)).astype(jnp.float32)   # NCHW -> NHWC
    N = x.shape[0]
    C1, C2, C3 = 64, 128, 256
    num_classes = params["wfc"].shape[0]

    # conv1 im2col in parity order; K padded 147 -> 256 with zero weight rows
    # (results unchanged) for a lane-dense bf16 MXU feed.
    p1, (H1, W1) = _im2col_parity(x, k=7, stride=2, pad=3)
    K1 = p1.shape[1]
    K1p = ((K1 + 127) // 128) * 128
    p1 = jnp.pad(p1, ((0, 0), (0, K1p - K1))).astype(jnp.bfloat16)

    w1 = jnp.transpose(params["w1"], (2, 3, 1, 0)).reshape(K1, C1)
    w1 = jnp.pad(w1, ((0, K1p - K1), (0, 0))).astype(jnp.bfloat16)

    # K-fused tap weights, rows ordered (ki, kj, ci) to match the in-kernel
    # operand assembly: one matmul per conv layer instead of 9.
    w2f = jnp.transpose(params["w2"], (2, 3, 1, 0)).reshape(9 * C1, C2).astype(jnp.bfloat16)
    w3f = jnp.transpose(params["w3"], (2, 3, 1, 0)).reshape(9 * C2, C3).astype(jnp.bfloat16)

    H2, W2 = H1 // 2, W1 // 2
    H3, W3 = H2 // 2, W2 // 2
    P1 = N * H2 * W2
    M3 = N * H3 * W3

    args = (
        p1, w1,
        params["b1"].reshape(1, C1), params["g1"].reshape(1, C1), params["be1"].reshape(1, C1),
        w2f,
        params["b2"].reshape(1, C2), params["g2"].reshape(1, C2), params["be2"].reshape(1, C2),
        w3f,
        params["b3"].reshape(1, C3), params["g3"].reshape(1, C3), params["be3"].reshape(1, C3),
        params["wfc"].T.astype(jnp.float32), params["bfc"].reshape(1, num_classes),
    )

    kernel = _make_fused_kernel(N, H1, W1, C1, C2, C3)

    return pl.pallas_call(
        kernel,
        grid=(1,),
        in_specs=[_full_spec(a.shape) for a in args],
        out_specs=_full_spec((N, num_classes)),
        out_shape=jax.ShapeDtypeStruct((N, num_classes), jnp.float32),
        scratch_shapes=[
            # Halo-free activation stashes (f32: keeps misaligned-row tap
            # slices and stride-2 parity reads trivially (8,128)-tiled; all
            # tiny here) and bf16 K-fused MXU operands.
            pltpu.VMEM((4 * P1, C1), jnp.float32),    # a1 : conv1 act, plane-major
            pltpu.VMEM((P1, 9 * C1), jnp.bfloat16),   # op2: conv2 fused operand
            pltpu.VMEM((N, H2, W2, C2), jnp.float32), # a2 : conv2 act (parity split)
            pltpu.VMEM((4 * M3, C2), jnp.float32),    # a2p: conv2 act, plane-major
            pltpu.VMEM((M3, 9 * C2), jnp.bfloat16),   # op3: conv3 fused operand
        ],
        compiler_params=pltpu.CompilerParams(
            # 1-point grid: semantics are a no-op today; kept so a future
            # tiled-M axis can be added as a leading "parallel" axis (v7x).
            dimension_semantics=("arbitrary",),
            # Total resident data ~1.5 MiB: fits v5e/v6e and v7x's 64 MiB.
            vmem_limit_bytes=32 * 1024 * 1024,
        ),
    )(*args)


# ---------------------------------------------------------------------------
# Deterministic parameter init (shapes from SimpleCoAtNet.__init__)
# ---------------------------------------------------------------------------
def init_params(key, num_classes=4):
    ks = jax.random.split(key, 8)

    def conv_w(k, co, ci, kk):
        fan_in = ci * kk * kk
        return jax.random.normal(k, (co, ci, kk, kk), jnp.float32) / jnp.sqrt(
            jnp.float32(fan_in))

    p = {}
    p["w1"] = conv_w(ks[0], 64, 3, 7)
    p["b1"] = 0.01 * jax.random.normal(ks[1], (64,), jnp.float32)
    p["g1"], p["be1"] = jnp.ones((64,), jnp.float32), jnp.zeros((64,), jnp.float32)

    p["w2"] = conv_w(ks[2], 128, 64, 3)
    p["b2"] = 0.01 * jax.random.normal(ks[3], (128,), jnp.float32)
    p["g2"], p["be2"] = jnp.ones((128,), jnp.float32), jnp.zeros((128,), jnp.float32)

    p["w3"] = conv_w(ks[4], 256, 128, 3)
    p["b3"] = 0.01 * jax.random.normal(ks[5], (256,), jnp.float32)
    p["g3"], p["be3"] = jnp.ones((256,), jnp.float32), jnp.zeros((256,), jnp.float32)

    p["wfc"] = jax.random.normal(ks[6], (num_classes, 256), jnp.float32) / jnp.sqrt(256.0)
    p["bfc"] = 0.01 * jax.random.normal(ks[7], (num_classes,), jnp.float32)
    return p


if __name__ == "__main__":
    key = jax.random.PRNGKey(0)
    k_in, k_params = jax.random.split(key)
    # Small input consistent with the module: conv1 needs 3 input channels.
    x = jax.random.normal(k_in, (2, 3, 32, 32), jnp.float32)  # NCHW
    params = init_params(k_params, num_classes=4)

    out = jax.jit(simple_coatnet_forward)(x, params)
    out = jax.block_until_ready(out)
    assert out.shape == (2, 4), out.shape
    print("KERNEL_OK")
</pallas_src>

<mosaic_0001>
module attributes {stable_mosaic.version = 11 : i64} {
  func.func @kernel(%arg0: i32, %arg1: memref<512x256xbf16, #tpu.memory_space<vmem>>, %arg2: memref<256x64xbf16, #tpu.memory_space<vmem>>, %arg3: memref<1x64xf32, #tpu.memory_space<vmem>>, %arg4: memref<1x64xf32, #tpu.memory_space<vmem>>, %arg5: memref<1x64xf32, #tpu.memory_space<vmem>>, %arg6: memref<576x128xbf16, #tpu.memory_space<vmem>>, %arg7: memref<1x128xf32, #tpu.memory_space<vmem>>, %arg8: memref<1x128xf32, #tpu.memory_space<vmem>>, %arg9: memref<1x128xf32, #tpu.memory_space<vmem>>, %arg10: memref<1152x256xbf16, #tpu.memory_space<vmem>>, %arg11: memref<1x256xf32, #tpu.memory_space<vmem>>, %arg12: memref<1x256xf32, #tpu.memory_space<vmem>>, %arg13: memref<1x256xf32, #tpu.memory_space<vmem>>, %arg14: memref<256x4xf32, #tpu.memory_space<vmem>>, %arg15: memref<1x4xf32, #tpu.memory_space<vmem>>, %arg16: memref<2x4xf32, #tpu.memory_space<vmem>>, %arg17: memref<512x64xf32, #tpu.memory_space<vmem>>, %arg18: memref<128x576xbf16, #tpu.memory_space<vmem>>, %arg19: memref<2x8x8x128xf32, #tpu.memory_space<vmem>>, %arg20: memref<128x128xf32, #tpu.memory_space<vmem>>, %arg21: memref<32x1152xbf16, #tpu.memory_space<vmem>>) attributes {dimension_semantics = [#tpu.dimension_semantics<arbitrary>], iteration_bounds = array<i64: 1>, scalar_prefetch = 0 : i64, scratch_operands = 5 : i64, tpu.core_type = #tpu.core_type<tc>, window_params = [{pipeline_mode = #tpu.pipeline_mode<synchronous>, transform_indices = @transform_0, window_bounds = array<i64: 512, 256>}, {pipeline_mode = #tpu.pipeline_mode<synchronous>, transform_indices = @transform_1, window_bounds = array<i64: 256, 64>}, {pipeline_mode = #tpu.pipeline_mode<synchronous>, transform_indices = @transform_2, window_bounds = array<i64: 1, 64>}, {pipeline_mode = #tpu.pipeline_mode<synchronous>, transform_indices = @transform_3, window_bounds = array<i64: 1, 64>}, {pipeline_mode = #tpu.pipeline_mode<synchronous>, transform_indices = @transform_4, window_bounds = array<i64: 1, 64>}, {pipeline_mode = #tpu.pipeline_mode<synchronous>, transform_indices = @transform_5, window_bounds = array<i64: 576, 128>}, {pipeline_mode = #tpu.pipeline_mode<synchronous>, transform_indices = @transform_6, window_bounds = array<i64: 1, 128>}, {pipeline_mode = #tpu.pipeline_mode<synchronous>, transform_indices = @transform_7, window_bounds = array<i64: 1, 128>}, {pipeline_mode = #tpu.pipeline_mode<synchronous>, transform_indices = @transform_8, window_bounds = array<i64: 1, 128>}, {pipeline_mode = #tpu.pipeline_mode<synchronous>, transform_indices = @transform_9, window_bounds = array<i64: 1152, 256>}, {pipeline_mode = #tpu.pipeline_mode<synchronous>, transform_indices = @transform_10, window_bounds = array<i64: 1, 256>}, {pipeline_mode = #tpu.pipeline_mode<synchronous>, transform_indices = @transform_11, window_bounds = array<i64: 1, 256>}, {pipeline_mode = #tpu.pipeline_mode<synchronous>, transform_indices = @transform_12, window_bounds = array<i64: 1, 256>}, {pipeline_mode = #tpu.pipeline_mode<synchronous>, transform_indices = @transform_13, window_bounds = array<i64: 256, 4>}, {pipeline_mode = #tpu.pipeline_mode<synchronous>, transform_indices = @transform_14, window_bounds = array<i64: 1, 4>}, {pipeline_mode = #tpu.pipeline_mode<synchronous>, transform_indices = @transform_15, window_bounds = array<i64: 2, 4>}]} {
    %c0 = arith.constant 0 : index
    %c0_0 = arith.constant 0 : index
    %0 = vector.load %arg1[%c0, %c0_0] : memref<512x256xbf16, #tpu.memory_space<vmem>>, vector<512x256xbf16>
    %c0_1 = arith.constant 0 : index
    %c0_2 = arith.constant 0 : index
    %1 = vector.load %arg2[%c0_1, %c0_2] : memref<256x64xbf16, #tpu.memory_space<vmem>>, vector<256x64xbf16>
    %cst = arith.constant dense<0.000000e+00> : vector<512x64xf32>
    %2 = tpu.matmul %0, %1, %cst {dimension_numbers = #tpu.dot_dimension_numbers<[1], [0], [0], [1], [0, 0, 1, 1], [], []>} : vector<512x256xbf16>, vector<256x64xbf16>, vector<512x64xf32> -> vector<512x64xf32>
    %c0_3 = arith.constant 0 : index
    %c0_4 = arith.constant 0 : index
    %3 = vector.load %arg3[%c0_3, %c0_4] : memref<1x64xf32, #tpu.memory_space<vmem>>, vector<1x64xf32>
    %4 = vector.broadcast %3 : vector<1x64xf32> to vector<512x64xf32>
    %5 = arith.addf %2, %4 : vector<512x64xf32>
    %c0_5 = arith.constant 0 : index
    %c0_6 = arith.constant 0 : index
    %6 = vector.load %arg4[%c0_5, %c0_6] : memref<1x64xf32, #tpu.memory_space<vmem>>, vector<1x64xf32>
    %c0_7 = arith.constant 0 : index
    %c0_8 = arith.constant 0 : index
    %7 = vector.load %arg5[%c0_7, %c0_8] : memref<1x64xf32, #tpu.memory_space<vmem>>, vector<1x64xf32>
    %cst_9 = arith.constant dense<0.000000e+00> : vector<64xf32>
    %8 = vector.multi_reduction <add>, %5, %cst_9 [0] : vector<512x64xf32> to vector<64xf32>
    %9 = vector.shape_cast %8 : vector<64xf32> to vector<1x64xf32>
    %cst_10 = arith.constant 0.001953125 : f32
    %10 = vector.broadcast %cst_10 : f32 to vector<1x64xf32>
    %11 = arith.mulf %9, %10 : vector<1x64xf32>
    %12 = vector.broadcast %11 : vector<1x64xf32> to vector<512x64xf32>
    %13 = arith.subf %5, %12 : vector<512x64xf32>
    %14 = arith.mulf %13, %13 : vector<512x64xf32>
    %cst_11 = arith.constant dense<0.000000e+00> : vector<64xf32>
    %15 = vector.multi_reduction <add>, %14, %cst_11 [0] : vector<512x64xf32> to vector<64xf32>
    %16 = vector.shape_cast %15 : vector<64xf32> to vector<1x64xf32>
    %cst_12 = arith.constant 0.001953125 : f32
    %17 = vector.broadcast %cst_12 : f32 to vector<1x64xf32>
    %18 = arith.mulf %16, %17 : vector<1x64xf32>
    %cst_13 = arith.constant 9.99999974E-6 : f32
    %19 = vector.broadcast %cst_13 : f32 to vector<1x64xf32>
    %20 = arith.addf %18, %19 : vector<1x64xf32>
    %21 = math.rsqrt %20 : vector<1x64xf32>
    %22 = vector.broadcast %21 : vector<1x64xf32> to vector<512x64xf32>
    %23 = arith.mulf %13, %22 : vector<512x64xf32>
    %24 = vector.broadcast %6 : vector<1x64xf32> to vector<512x64xf32>
    %25 = arith.mulf %23, %24 : vector<512x64xf32>
    %26 = vector.broadcast %7 : vector<1x64xf32> to vector<512x64xf32>
    %27 = arith.addf %25, %26 : vector<512x64xf32>
    %cst_14 = arith.constant 0.000000e+00 : f32
    %28 = vector.broadcast %cst_14 : f32 to vector<512x64xf32>
    %29 = arith.maximumf %27, %28 : vector<512x64xf32>
    %c0_15 = arith.constant 0 : index
    %c0_16 = arith.constant 0 : index
    %30 = vector.load %arg17[%c0_15, %c0_16] : memref<512x64xf32, #tpu.memory_space<vmem>>, vector<512x64xf32>
    tpu.vector_store %arg17[%c0_15, %c0_16], %29 {strides = array<i32>} : memref<512x64xf32, #tpu.memory_space<vmem>>, vector<512x64xf32>,
    %c375 = arith.constant 375 : index
    %c0_17 = arith.constant 0 : index
    %31 = vector.load %arg17[%c375, %c0_17] : memref<512x64xf32, #tpu.memory_space<vmem>>, vector<128x64xf32>
    %32 = tpu.iota {dimensions = array<i32: 0>} : vector<128x64xi32>
    %c64_i32 = arith.constant 64 : i32
    %c0_i32 = arith.constant 0 : i32
    %33 = arith.cmpi eq, %c64_i32, %c0_i32 : i32
    %c1_i32 = arith.constant 1 : i32
    %34 = arith.select %33, %c1_i32, %c64_i32 : i32
    %35 = vector.broadcast %34 : i32 to vector<128x64xi32>
    %36 = arith.remsi %32, %35 : vector<128x64xi32>
    %c0_i32_18 = arith.constant 0 : i32
    %37 = vector.broadcast %c0_i32_18 : i32 to vector<128x64xi32>
    %38 = arith.cmpi ne, %36, %37 : vector<128x64xi32>
    %c0_i32_19 = arith.constant 0 : i32
    %39 = vector.broadcast %c0_i32_19 : i32 to vector<128x64xi32>
    %40 = arith.cmpi slt, %36, %39 : vector<128x64xi32>
    %c0_i32_20 = arith.constant 0 : i32
    %41 = arith.cmpi slt, %34, %c0_i32_20 : i32
    %42 = vector.broadcast %41 : i1 to vector<128x64xi1>
    %43 = vector.broadcast %42 : vector<128x64xi1> to vector<128x64xi1>
    %44 = arith.xori %40, %43 : vector<128x64xi1>
    %45 = arith.andi %44, %38 : vector<128x64xi1>
    %46 = vector.broadcast %34 : i32 to vector<128x64xi32>
    %47 = arith.addi %36, %46 : vector<128x64xi32>
    %48 = arith.select %45, %47, %36 : vector<128x64xi1>, vector<128x64xi32>
    %c8_i32 = arith.constant 8 : i32
    %49 = vector.broadcast %c8_i32 : i32 to vector<128x64xi32>
    %50 = arith.cmpi sge, %48, %49 : vector<128x64xi32>
    %c8_i32_21 = arith.constant 8 : i32
    %c0_i32_22 = arith.constant 0 : i32
    %51 = arith.cmpi eq, %c8_i32_21, %c0_i32_22 : i32
    %c1_i32_23 = arith.constant 1 : i32
    %52 = arith.select %51, %c1_i32_23, %c8_i32_21 : i32
    %53 = vector.broadcast %52 : i32 to vector<128x64xi32>
    %54 = arith.remsi %32, %53 : vector<128x64xi32>
    %c0_i32_24 = arith.constant 0 : i32
    %55 = vector.broadcast %c0_i32_24 : i32 to vector<128x64xi32>
    %56 = arith.cmpi ne, %54, %55 : vector<128x64xi32>
    %c0_i32_25 = arith.constant 0 : i32
    %57 = vector.broadcast %c0_i32_25 : i32 to vector<128x64xi32>
    %58 = arith.cmpi slt, %54, %57 : vector<128x64xi32>
    %c0_i32_26 = arith.constant 0 : i32
    %59 = arith.cmpi slt, %52, %c0_i32_26 : i32
    %60 = vector.broadcast %59 : i1 to vector<128x64xi1>
    %61 = vector.broadcast %60 : vector<128x64xi1> to vector<128x64xi1>
    %62 = arith.xori %58, %61 : vector<128x64xi1>
    %63 = arith.andi %62, %56 : vector<128x64xi1>
    %64 = vector.broadcast %52 : i32 to vector<128x64xi32>
    %65 = arith.addi %54, %64 : vector<128x64xi32>
    %66 = arith.select %63, %65, %54 : vector<128x64xi1>, vector<128x64xi32>
    %c1_i32_27 = arith.constant 1 : i32
    %67 = vector.broadcast %c1_i32_27 : i32 to vector<128x64xi32>
    %68 = arith.cmpi sge, %66, %67 : vector<128x64xi32>
    %69 = arith.andi %50, %68 : vector<128x64xi1>
    %cst_28 = arith.constant 0.000000e+00 : f32
    %70 = vector.broadcast %cst_28 : f32 to vector<128x64xf32>
    %71 = arith.select %69, %31, %70 : vector<128x64xi1>, vector<128x64xf32>
    %72 = arith.truncf %71 : vector<128x64xf32> to vector<128x64xbf16>
    %c0_29 = arith.constant 0 : index
    %c0_30 = arith.constant 0 : index
    %73 = vector.load %arg18[%c0_29, %c0_30] : memref<128x576xbf16, #tpu.memory_space<vmem>>, vector<128x64xbf16>
    tpu.vector_store %arg18[%c0_29, %c0_30], %72 {strides = array<i32>} : memref<128x576xbf16, #tpu.memory_space<vmem>>, vector<128x64xbf16>,
    %c248 = arith.constant 248 : index
    %c0_31 = arith.constant 0 : index
    %74 = vector.load %arg17[%c248, %c0_31] : memref<512x64xf32, #tpu.memory_space<vmem>>, vector<128x64xf32>
    %75 = tpu.iota {dimensions = array<i32: 0>} : vector<128x64xi32>
    %c64_i32_32 = arith.constant 64 : i32
    %c0_i32_33 = arith.constant 0 : i32
    %76 = arith.cmpi eq, %c64_i32_32, %c0_i32_33 : i32
    %c1_i32_34 = arith.constant 1 : i32
    %77 = arith.select %76, %c1_i32_34, %c64_i32_32 : i32
    %78 = vector.broadcast %77 : i32 to vector<128x64xi32>
    %79 = arith.remsi %75, %78 : vector<128x64xi32>
    %c0_i32_35 = arith.constant 0 : i32
    %80 = vector.broadcast %c0_i32_35 : i32 to vector<128x64xi32>
    %81 = arith.cmpi ne, %79, %80 : vector<128x64xi32>
    %c0_i32_36 = arith.constant 0 : i32
    %82 = vector.broadcast %c0_i32_36 : i32 to vector<128x64xi32>
    %83 = arith.cmpi slt, %79, %82 : vector<128x64xi32>
    %c0_i32_37 = arith.constant 0 : i32
    %84 = arith.cmpi slt, %77, %c0_i32_37 : i32
    %85 = vector.broadcast %84 : i1 to vector<128x64xi1>
    %86 = vector.broadcast %85 : vector<128x64xi1> to vector<128x64xi1>
    %87 = arith.xori %83, %86 : vector<128x64xi1>
    %88 = arith.andi %87, %81 : vector<128x64xi1>
    %89 = vector.broadcast %77 : i32 to vector<128x64xi32>
    %90 = arith.addi %79, %89 : vector<128x64xi32>
    %91 = arith.select %88, %90, %79 : vector<128x64xi1>, vector<128x64xi32>
    %c8_i32_38 = arith.constant 8 : i32
    %92 = vector.broadcast %c8_i32_38 : i32 to vector<128x64xi32>
    %93 = arith.cmpi sge, %91, %92 : vector<128x64xi32>
    %cst_39 = arith.constant 0.000000e+00 : f32
    %94 = vector.broadcast %cst_39 : f32 to vector<128x64xf32>
    %95 = arith.select %93, %74, %94 : vector<128x64xi1>, vector<128x64xf32>
    %96 = arith.truncf %95 : vector<128x64xf32> to vector<128x64xbf16>
    %c0_40 = arith.constant 0 : index
    %c64 = arith.constant 64 : index
    %97 = vector.load %arg18[%c0_40, %c64] : memref<128x576xbf16, #tpu.memory_space<vmem>>, vector<128x64xbf16>
    tpu.vector_store %arg18[%c0_40, %c64], %96 {strides = array<i32>} : memref<128x576xbf16, #tpu.memory_space<vmem>>, vector<128x64xbf16>,
    %c376 = arith.constant 376 : index
    %c0_41 = arith.constant 0 : index
    %98 = vector.load %arg17[%c376, %c0_41] : memref<512x64xf32, #tpu.memory_space<vmem>>, vector<128x64xf32>
    %99 = tpu.iota {dimensions = array<i32: 0>} : vector<128x64xi32>
    %c64_i32_42 = arith.constant 64 : i32
    %c0_i32_43 = arith.constant 0 : i32
    %100 = arith.cmpi eq, %c64_i32_42, %c0_i32_43 : i32
    %c1_i32_44 = arith.constant 1 : i32
    %101 = arith.select %100, %c1_i32_44, %c64_i32_42 : i32
    %102 = vector.broadcast %101 : i32 to vector<128x64xi32>
    %103 = arith.remsi %99, %102 : vector<128x64xi32>
    %c0_i32_45 = arith.constant 0 : i32
    %104 = vector.broadcast %c0_i32_45 : i32 to vector<128x64xi32>
    %105 = arith.cmpi ne, %103, %104 : vector<128x64xi32>
    %c0_i32_46 = arith.constant 0 : i32
    %106 = vector.broadcast %c0_i32_46 : i32 to vector<128x64xi32>
    %107 = arith.cmpi slt, %103, %106 : vector<128x64xi32>
    %c0_i32_47 = arith.constant 0 : i32
    %108 = arith.cmpi slt, %101, %c0_i32_47 : i32
    %109 = vector.broadcast %108 : i1 to vector<128x64xi1>
    %110 = vector.broadcast %109 : vector<128x64xi1> to vector<128x64xi1>
    %111 = arith.xori %107, %110 : vector<128x64xi1>
    %112 = arith.andi %111, %105 : vector<128x64xi1>
    %113 = vector.broadcast %101 : i32 to vector<128x64xi32>
    %114 = arith.addi %103, %113 : vector<128x64xi32>
    %115 = arith.select %112, %114, %103 : vector<128x64xi1>, vector<128x64xi32>
    %c8_i32_48 = arith.constant 8 : i32
    %116 = vector.broadcast %c8_i32_48 : i32 to vector<128x64xi32>
    %117 = arith.cmpi sge, %115, %116 : vector<128x64xi32>
    %cst_49 = arith.constant 0.000000e+00 : f32
    %118 = vector.broadcast %cst_49 : f32 to vector<128x64xf32>
    %119 = arith.select %117, %98, %118 : vector<128x64xi1>, vector<128x64xf32>
    %120 = arith.truncf %119 : vector<128x64xf32> to vector<128x64xbf16>
    %c0_50 = arith.constant 0 : index
    %c128 = arith.constant 128 : index
    %121 = vector.load %arg18[%c0_50, %c128] : memref<128x576xbf16, #tpu.memory_space<vmem>>, vector<128x64xbf16>
    tpu.vector_store %arg18[%c0_50, %c128], %120 {strides = array<i32>} : memref<128x576xbf16, #tpu.memory_space<vmem>>, vector<128x64xbf16>,
    %c127 = arith.constant 127 : index
    %c0_51 = arith.constant 0 : index
    %122 = vector.load %arg17[%c127, %c0_51] : memref<512x64xf32, #tpu.memory_space<vmem>>, vector<128x64xf32>
    %123 = tpu.iota {dimensions = array<i32: 0>} : vector<128x64xi32>
    %c8_i32_52 = arith.constant 8 : i32
    %c0_i32_53 = arith.constant 0 : i32
    %124 = arith.cmpi eq, %c8_i32_52, %c0_i32_53 : i32
    %c1_i32_54 = arith.constant 1 : i32
    %125 = arith.select %124, %c1_i32_54, %c8_i32_52 : i32
    %126 = vector.broadcast %125 : i32 to vector<128x64xi32>
    %127 = arith.remsi %123, %126 : vector<128x64xi32>
    %c0_i32_55 = arith.constant 0 : i32
    %128 = vector.broadcast %c0_i32_55 : i32 to vector<128x64xi32>
    %129 = arith.cmpi ne, %127, %128 : vector<128x64xi32>
    %c0_i32_56 = arith.constant 0 : i32
    %130 = vector.broadcast %c0_i32_56 : i32 to vector<128x64xi32>
    %131 = arith.cmpi slt, %127, %130 : vector<128x64xi32>
    %c0_i32_57 = arith.constant 0 : i32
    %132 = arith.cmpi slt, %125, %c0_i32_57 : i32
    %133 = vector.broadcast %132 : i1 to vector<128x64xi1>
    %134 = vector.broadcast %133 : vector<128x64xi1> to vector<128x64xi1>
    %135 = arith.xori %131, %134 : vector<128x64xi1>
    %136 = arith.andi %135, %129 : vector<128x64xi1>
    %137 = vector.broadcast %125 : i32 to vector<128x64xi32>
    %138 = arith.addi %127, %137 : vector<128x64xi32>
    %139 = arith.select %136, %138, %127 : vector<128x64xi1>, vector<128x64xi32>
    %c1_i32_58 = arith.constant 1 : i32
    %140 = vector.broadcast %c1_i32_58 : i32 to vector<128x64xi32>
    %141 = arith.cmpi sge, %139, %140 : vector<128x64xi32>
    %cst_59 = arith.constant 0.000000e+00 : f32
    %142 = vector.broadcast %cst_59 : f32 to vector<128x64xf32>
    %143 = arith.select %141, %122, %142 : vector<128x64xi1>, vector<128x64xf32>
    %144 = arith.truncf %143 : vector<128x64xf32> to vector<128x64xbf16>
    %c0_60 = arith.constant 0 : index
    %c192 = arith.constant 192 : index
    %145 = vector.load %arg18[%c0_60, %c192] : memref<128x576xbf16, #tpu.memory_space<vmem>>, vector<128x64xbf16>
    tpu.vector_store %arg18[%c0_60, %c192], %144 {strides = array<i32>} : memref<128x576xbf16, #tpu.memory_space<vmem>>, vector<128x64xbf16>,
    %c0_61 = arith.constant 0 : index
    %c0_62 = arith.constant 0 : index
    %146 = vector.load %arg17[%c0_61, %c0_62] : memref<512x64xf32, #tpu.memory_space<vmem>>, vector<128x64xf32>
    %147 = arith.truncf %146 : vector<128x64xf32> to vector<128x64xbf16>
    %c0_63 = arith.constant 0 : index
    %c256 = arith.constant 256 : index
    %148 = vector.load %arg18[%c0_63, %c256] : memref<128x576xbf16, #tpu.memory_space<vmem>>, vector<128x64xbf16>
    tpu.vector_store %arg18[%c0_63, %c256], %147 {strides = array<i32>} : memref<128x576xbf16, #tpu.memory_space<vmem>>, vector<128x64xbf16>,
    %c128_64 = arith.constant 128 : index
    %c0_65 = arith.constant 0 : index
    %149 = vector.load %arg17[%c128_64, %c0_65] : memref<512x64xf32, #tpu.memory_space<vmem>>, vector<128x64xf32>
    %150 = arith.truncf %149 : vector<128x64xf32> to vector<128x64xbf16>
    %c0_66 = arith.constant 0 : index
    %c320 = arith.constant 320 : index
    %151 = vector.load %arg18[%c0_66, %c320] : memref<128x576xbf16, #tpu.memory_space<vmem>>, vector<128x64xbf16>
    tpu.vector_store %arg18[%c0_66, %c320], %150 {strides = array<i32>} : memref<128x576xbf16, #tpu.memory_space<vmem>>, vector<128x64xbf16>,
    %c383 = arith.constant 383 : index
    %c0_67 = arith.constant 0 : index
    %152 = vector.load %arg17[%c383, %c0_67] : memref<512x64xf32, #tpu.memory_space<vmem>>, vector<128x64xf32>
    %153 = tpu.iota {dimensions = array<i32: 0>} : vector<128x64xi32>
    %c8_i32_68 = arith.constant 8 : i32
    %c0_i32_69 = arith.constant 0 : i32
    %154 = arith.cmpi eq, %c8_i32_68, %c0_i32_69 : i32
    %c1_i32_70 = arith.constant 1 : i32
    %155 = arith.select %154, %c1_i32_70, %c8_i32_68 : i32
    %156 = vector.broadcast %155 : i32 to vector<128x64xi32>
    %157 = arith.remsi %153, %156 : vector<128x64xi32>
    %c0_i32_71 = arith.constant 0 : i32
    %158 = vector.broadcast %c0_i32_71 : i32 to vector<128x64xi32>
    %159 = arith.cmpi ne, %157, %158 : vector<128x64xi32>
    %c0_i32_72 = arith.constant 0 : i32
    %160 = vector.broadcast %c0_i32_72 : i32 to vector<128x64xi32>
    %161 = arith.cmpi slt, %157, %160 : vector<128x64xi32>
    %c0_i32_73 = arith.constant 0 : i32
    %162 = arith.cmpi slt, %155, %c0_i32_73 : i32
    %163 = vector.broadcast %162 : i1 to vector<128x64xi1>
    %164 = vector.broadcast %163 : vector<128x64xi1> to vector<128x64xi1>
    %165 = arith.xori %161, %164 : vector<128x64xi1>
    %166 = arith.andi %165, %159 : vector<128x64xi1>
    %167 = vector.broadcast %155 : i32 to vector<128x64xi32>
    %168 = arith.addi %157, %167 : vector<128x64xi32>
    %169 = arith.select %166, %168, %157 : vector<128x64xi1>, vector<128x64xi32>
    %c1_i32_74 = arith.constant 1 : i32
    %170 = vector.broadcast %c1_i32_74 : i32 to vector<128x64xi32>
    %171 = arith.cmpi sge, %169, %170 : vector<128x64xi32>
    %cst_75 = arith.constant 0.000000e+00 : f32
    %172 = vector.broadcast %cst_75 : f32 to vector<128x64xf32>
    %173 = arith.select %171, %152, %172 : vector<128x64xi1>, vector<128x64xf32>
    %174 = arith.truncf %173 : vector<128x64xf32> to vector<128x64xbf16>
    %c0_76 = arith.constant 0 : index
    %c384 = arith.constant 384 : index
    %175 = vector.load %arg18[%c0_76, %c384] : memref<128x576xbf16, #tpu.memory_space<vmem>>, vector<128x64xbf16>
    tpu.vector_store %arg18[%c0_76, %c384], %174 {strides = array<i32>} : memref<128x576xbf16, #tpu.memory_space<vmem>>, vector<128x64xbf16>,
    %c256_77 = arith.constant 256 : index
    %c0_78 = arith.constant 0 : index
    %176 = vector.load %arg17[%c256_77, %c0_78] : memref<512x64xf32, #tpu.memory_space<vmem>>, vector<128x64xf32>
    %177 = arith.truncf %176 : vector<128x64xf32> to vector<128x64xbf16>
    %c0_79 = arith.constant 0 : index
    %c448 = arith.constant 448 : index
    %178 = vector.load %arg18[%c0_79, %c448] : memref<128x576xbf16, #tpu.memory_space<vmem>>, vector<128x64xbf16>
    tpu.vector_store %arg18[%c0_79, %c448], %177 {strides = array<i32>} : memref<128x576xbf16, #tpu.memory_space<vmem>>, vector<128x64xbf16>,
    %c384_80 = arith.constant 384 : index
    %c0_81 = arith.constant 0 : index
    %179 = vector.load %arg17[%c384_80, %c0_81] : memref<512x64xf32, #tpu.memory_space<vmem>>, vector<128x64xf32>
    %180 = arith.truncf %179 : vector<128x64xf32> to vector<128x64xbf16>
    %c0_82 = arith.constant 0 : index
    %c512 = arith.constant 512 : index
    %181 = vector.load %arg18[%c0_82, %c512] : memref<128x576xbf16, #tpu.memory_space<vmem>>, vector<128x64xbf16>
    tpu.vector_store %arg18[%c0_82, %c512], %180 {strides = array<i32>} : memref<128x576xbf16, #tpu.memory_space<vmem>>, vector<128x64xbf16>,
    %c0_83 = arith.constant 0 : index
    %c0_84 = arith.constant 0 : index
    %182 = vector.load %arg18[%c0_83, %c0_84] : memref<128x576xbf16, #tpu.memory_space<vmem>>, vector<128x576xbf16>
    %c0_85 = arith.constant 0 : index
    %c0_86 = arith.constant 0 : index
    %183 = vector.load %arg6[%c0_85, %c0_86] : memref<576x128xbf16, #tpu.memory_space<vmem>>, vector<576x128xbf16>
    %cst_87 = arith.constant dense<0.000000e+00> : vector<128x128xf32>
    %184 = tpu.matmul %182, %183, %cst_87 {dimension_numbers = #tpu.dot_dimension_numbers<[1], [0], [0], [1], [0, 0, 1, 1], [], []>} : vector<128x576xbf16>, vector<576x128xbf16>, vector<128x128xf32> -> vector<128x128xf32>
    %c0_88 = arith.constant 0 : index
    %c0_89 = arith.constant 0 : index
    %185 = vector.load %arg7[%c0_88, %c0_89] : memref<1x128xf32, #tpu.memory_space<vmem>>, vector<1x128xf32>
    %186 = vector.broadcast %185 : vector<1x128xf32> to vector<128x128xf32>
    %187 = arith.addf %184, %186 : vector<128x128xf32>
    %c0_90 = arith.constant 0 : index
    %c0_91 = arith.constant 0 : index
    %188 = vector.load %arg8[%c0_90, %c0_91] : memref<1x128xf32, #tpu.memory_space<vmem>>, vector<1x128xf32>
    %c0_92 = arith.constant 0 : index
    %c0_93 = arith.constant 0 : index
    %189 = vector.load %arg9[%c0_92, %c0_93] : memref<1x128xf32, #tpu.memory_space<vmem>>, vector<1x128xf32>
    %cst_94 = arith.constant dense<0.000000e+00> : vector<128xf32>
    %190 = vector.multi_reduction <add>, %187, %cst_94 [0] : vector<128x128xf32> to vector<128xf32>
    %191 = vector.shape_cast %190 : vector<128xf32> to vector<1x128xf32>
    %cst_95 = arith.constant 7.812500e-03 : f32
    %192 = vector.broadcast %cst_95 : f32 to vector<1x128xf32>
    %193 = arith.mulf %191, %192 : vector<1x128xf32>
    %194 = vector.broadcast %193 : vector<1x128xf32> to vector<128x128xf32>
    %195 = arith.subf %187, %194 : vector<128x128xf32>
    %196 = arith.mulf %195, %195 : vector<128x128xf32>
    %cst_96 = arith.constant dense<0.000000e+00> : vector<128xf32>
    %197 = vector.multi_reduction <add>, %196, %cst_96 [0] : vector<128x128xf32> to vector<128xf32>
    %198 = vector.shape_cast %197 : vector<128xf32> to vector<1x128xf32>
    %cst_97 = arith.constant 7.812500e-03 : f32
    %199 = vector.broadcast %cst_97 : f32 to vector<1x128xf32>
    %200 = arith.mulf %198, %199 : vector<1x128xf32>
    %cst_98 = arith.constant 9.99999974E-6 : f32
    %201 = vector.broadcast %cst_98 : f32 to vector<1x128xf32>
    %202 = arith.addf %200, %201 : vector<1x128xf32>
    %203 = math.rsqrt %202 : vector<1x128xf32>
    %204 = vector.broadcast %203 : vector<1x128xf32> to vector<128x128xf32>
    %205 = arith.mulf %195, %204 : vector<128x128xf32>
    %206 = vector.broadcast %188 : vector<1x128xf32> to vector<128x128xf32>
    %207 = arith.mulf %205, %206 : vector<128x128xf32>
    %208 = vector.broadcast %189 : vector<1x128xf32> to vector<128x128xf32>
    %209 = arith.addf %207, %208 : vector<128x128xf32>
    %cst_99 = arith.constant 0.000000e+00 : f32
    %210 = vector.broadcast %cst_99 : f32 to vector<128x128xf32>
    %211 = arith.maximumf %209, %210 : vector<128x128xf32>
    %212 = vector.shape_cast %211 : vector<128x128xf32> to vector<2x8x8x128xf32>
    %c0_100 = arith.constant 0 : index
    %c0_101 = arith.constant 0 : index
    %c0_102 = arith.constant 0 : index
    %c0_103 = arith.constant 0 : index
    %213 = vector.load %arg19[%c0_100, %c0_101, %c0_102, %c0_103] : memref<2x8x8x128xf32, #tpu.memory_space<vmem>>, vector<2x8x8x128xf32>
    tpu.vector_store %arg19[%c0_100, %c0_101, %c0_102, %c0_103], %212 {strides = array<i32>} : memref<2x8x8x128xf32, #tpu.memory_space<vmem>>, vector<2x8x8x128xf32>,
    %c0_104 = arith.constant 0 : index
    %c0_105 = arith.constant 0 : index
    %c0_106 = arith.constant 0 : index
    %c0_107 = arith.constant 0 : index
    %214 = tpu.strided_load %arg19[%c0_104, %c0_105, %c0_106, %c0_107] {strides = array<i32: 1, 2, 2, 1>} : memref<2x8x8x128xf32, #tpu.memory_space<vmem>>, vector<2x4x4x128xf32>
    %215 = vector.shape_cast %214 : vector<2x4x4x128xf32> to vector<32x128xf32>
    %c0_108 = arith.constant 0 : index
    %c0_109 = arith.constant 0 : index
    %216 = vector.load %arg20[%c0_108, %c0_109] : memref<128x128xf32, #tpu.memory_space<vmem>>, vector<32x128xf32>
    tpu.vector_store %arg20[%c0_108, %c0_109], %215 {strides = array<i32>} : memref<128x128xf32, #tpu.memory_space<vmem>>, vector<32x128xf32>,
    %c0_110 = arith.constant 0 : index
    %c0_111 = arith.constant 0 : index
    %c1 = arith.constant 1 : index
    %c0_112 = arith.constant 0 : index
    %217 = tpu.strided_load %arg19[%c0_110, %c0_111, %c1, %c0_112] {strides = array<i32: 1, 2, 2, 1>} : memref<2x8x8x128xf32, #tpu.memory_space<vmem>>, vector<2x4x4x128xf32>
    %218 = vector.shape_cast %217 : vector<2x4x4x128xf32> to vector<32x128xf32>
    %c32 = arith.constant 32 : index
    %c0_113 = arith.constant 0 : index
    %219 = vector.load %arg20[%c32, %c0_113] : memref<128x128xf32, #tpu.memory_space<vmem>>, vector<32x128xf32>
    tpu.vector_store %arg20[%c32, %c0_113], %218 {strides = array<i32>} : memref<128x128xf32, #tpu.memory_space<vmem>>, vector<32x128xf32>,
    %c0_114 = arith.constant 0 : index
    %c1_115 = arith.constant 1 : index
    %c0_116 = arith.constant 0 : index
    %c0_117 = arith.constant 0 : index
    %220 = tpu.strided_load %arg19[%c0_114, %c1_115, %c0_116, %c0_117] {strides = array<i32: 1, 2, 2, 1>} : memref<2x8x8x128xf32, #tpu.memory_space<vmem>>, vector<2x4x4x128xf32>
    %221 = vector.shape_cast %220 : vector<2x4x4x128xf32> to vector<32x128xf32>
    %c64_118 = arith.constant 64 : index
    %c0_119 = arith.constant 0 : index
    %222 = vector.load %arg20[%c64_118, %c0_119] : memref<128x128xf32, #tpu.memory_space<vmem>>, vector<32x128xf32>
    tpu.vector_store %arg20[%c64_118, %c0_119], %221 {strides = array<i32>} : memref<128x128xf32, #tpu.memory_space<vmem>>, vector<32x128xf32>,
    %c0_120 = arith.constant 0 : index
    %c1_121 = arith.constant 1 : index
    %c1_122 = arith.constant 1 : index
    %c0_123 = arith.constant 0 : index
    %223 = tpu.strided_load %arg19[%c0_120, %c1_121, %c1_122, %c0_123] {strides = array<i32: 1, 2, 2, 1>} : memref<2x8x8x128xf32, #tpu.memory_space<vmem>>, vector<2x4x4x128xf32>
    %224 = vector.shape_cast %223 : vector<2x4x4x128xf32> to vector<32x128xf32>
    %c96 = arith.constant 96 : index
    %c0_124 = arith.constant 0 : index
    %225 = vector.load %arg20[%c96, %c0_124] : memref<128x128xf32, #tpu.memory_space<vmem>>, vector<32x128xf32>
    tpu.vector_store %arg20[%c96, %c0_124], %224 {strides = array<i32>} : memref<128x128xf32, #tpu.memory_space<vmem>>, vector<32x128xf32>,
    %c91 = arith.constant 91 : index
    %c0_125 = arith.constant 0 : index
    %226 = vector.load %arg20[%c91, %c0_125] : memref<128x128xf32, #tpu.memory_space<vmem>>, vector<32x128xf32>
    %227 = tpu.iota {dimensions = array<i32: 0>} : vector<32x128xi32>
    %c16_i32 = arith.constant 16 : i32
    %c0_i32_126 = arith.constant 0 : i32
    %228 = arith.cmpi eq, %c16_i32, %c0_i32_126 : i32
    %c1_i32_127 = arith.constant 1 : i32
    %229 = arith.select %228, %c1_i32_127, %c16_i32 : i32
    %230 = vector.broadcast %229 : i32 to vector<32x128xi32>
    %231 = arith.remsi %227, %230 : vector<32x128xi32>
    %c0_i32_128 = arith.constant 0 : i32
    %232 = vector.broadcast %c0_i32_128 : i32 to vector<32x128xi32>
    %233 = arith.cmpi ne, %231, %232 : vector<32x128xi32>
    %c0_i32_129 = arith.constant 0 : i32
    %234 = vector.broadcast %c0_i32_129 : i32 to vector<32x128xi32>
    %235 = arith.cmpi slt, %231, %234 : vector<32x128xi32>
    %c0_i32_130 = arith.constant 0 : i32
    %236 = arith.cmpi slt, %229, %c0_i32_130 : i32
    %237 = vector.broadcast %236 : i1 to vector<32x128xi1>
    %238 = vector.broadcast %237 : vector<32x128xi1> to vector<32x128xi1>
    %239 = arith.xori %235, %238 : vector<32x128xi1>
    %240 = arith.andi %239, %233 : vector<32x128xi1>
    %241 = vector.broadcast %229 : i32 to vector<32x128xi32>
    %242 = arith.addi %231, %241 : vector<32x128xi32>
    %243 = arith.select %240, %242, %231 : vector<32x128xi1>, vector<32x128xi32>
    %c4_i32 = arith.constant 4 : i32
    %244 = vector.broadcast %c4_i32 : i32 to vector<32x128xi32>
    %245 = arith.cmpi sge, %243, %244 : vector<32x128xi32>
    %c4_i32_131 = arith.constant 4 : i32
    %c0_i32_132 = arith.constant 0 : i32
    %246 = arith.cmpi eq, %c4_i32_131, %c0_i32_132 : i32
    %c1_i32_133 = arith.constant 1 : i32
    %247 = arith.select %246, %c1_i32_133, %c4_i32_131 : i32
    %248 = vector.broadcast %247 : i32 to vector<32x128xi32>
    %249 = arith.remsi %227, %248 : vector<32x128xi32>
    %c0_i32_134 = arith.constant 0 : i32
    %250 = vector.broadcast %c0_i32_134 : i32 to vector<32x128xi32>
    %251 = arith.cmpi ne, %249, %250 : vector<32x128xi32>
    %c0_i32_135 = arith.constant 0 : i32
    %252 = vector.broadcast %c0_i32_135 : i32 to vector<32x128xi32>
    %253 = arith.cmpi slt, %249, %252 : vector<32x128xi32>
    %c0_i32_136 = arith.constant 0 : i32
    %254 = arith.cmpi slt, %247, %c0_i32_136 : i32
    %255 = vector.broadcast %254 : i1 to vector<32x128xi1>
    %256 = vector.broadcast %255 : vector<32x128xi1> to vector<32x128xi1>
    %257 = arith.xori %253, %256 : vector<32x128xi1>
    %258 = arith.andi %257, %251 : vector<32x128xi1>
    %259 = vector.broadcast %247 : i32 to vector<32x128xi32>
    %260 = arith.addi %249, %259 : vector<32x128xi32>
    %261 = arith.select %258, %260, %249 : vector<32x128xi1>, vector<32x128xi32>
    %c1_i32_137 = arith.constant 1 : i32
    %262 = vector.broadcast %c1_i32_137 : i32 to vector<32x128xi32>
    %263 = arith.cmpi sge, %261, %262 : vector<32x128xi32>
    %264 = arith.andi %245, %263 : vector<32x128xi1>
    %cst_138 = arith.constant 0.000000e+00 : f32
    %265 = vector.broadcast %cst_138 : f32 to vector<32x128xf32>
    %266 = arith.select %264, %226, %265 : vector<32x128xi1>, vector<32x128xf32>
    %267 = arith.truncf %266 : vector<32x128xf32> to vector<32x128xbf16>
    %c0_139 = arith.constant 0 : index
    %c0_140 = arith.constant 0 : index
    %268 = vector.load %arg21[%c0_139, %c0_140] : memref<32x1152xbf16, #tpu.memory_space<vmem>>, vector<32x128xbf16>
    tpu.vector_store %arg21[%c0_139, %c0_140], %267 {strides = array<i32>} : memref<32x1152xbf16, #tpu.memory_space<vmem>>, vector<32x128xbf16>,
    %c60 = arith.constant 60 : index
    %c0_141 = arith.constant 0 : index
    %269 = vector.load %arg20[%c60, %c0_141] : memref<128x128xf32, #tpu.memory_space<vmem>>, vector<32x128xf32>
    %270 = tpu.iota {dimensions = array<i32: 0>} : vector<32x128xi32>
    %c16_i32_142 = arith.constant 16 : i32
    %c0_i32_143 = arith.constant 0 : i32
    %271 = arith.cmpi eq, %c16_i32_142, %c0_i32_143 : i32
    %c1_i32_144 = arith.constant 1 : i32
    %272 = arith.select %271, %c1_i32_144, %c16_i32_142 : i32
    %273 = vector.broadcast %272 : i32 to vector<32x128xi32>
    %274 = arith.remsi %270, %273 : vector<32x128xi32>
    %c0_i32_145 = arith.constant 0 : i32
    %275 = vector.broadcast %c0_i32_145 : i32 to vector<32x128xi32>
    %276 = arith.cmpi ne, %274, %275 : vector<32x128xi32>
    %c0_i32_146 = arith.constant 0 : i32
    %277 = vector.broadcast %c0_i32_146 : i32 to vector<32x128xi32>
    %278 = arith.cmpi slt, %274, %277 : vector<32x128xi32>
    %c0_i32_147 = arith.constant 0 : i32
    %279 = arith.cmpi slt, %272, %c0_i32_147 : i32
    %280 = vector.broadcast %279 : i1 to vector<32x128xi1>
    %281 = vector.broadcast %280 : vector<32x128xi1> to vector<32x128xi1>
    %282 = arith.xori %278, %281 : vector<32x128xi1>
    %283 = arith.andi %282, %276 : vector<32x128xi1>
    %284 = vector.broadcast %272 : i32 to vector<32x128xi32>
    %285 = arith.addi %274, %284 : vector<32x128xi32>
    %286 = arith.select %283, %285, %274 : vector<32x128xi1>, vector<32x128xi32>
    %c4_i32_148 = arith.constant 4 : i32
    %287 = vector.broadcast %c4_i32_148 : i32 to vector<32x128xi32>
    %288 = arith.cmpi sge, %286, %287 : vector<32x128xi32>
    %cst_149 = arith.constant 0.000000e+00 : f32
    %289 = vector.broadcast %cst_149 : f32 to vector<32x128xf32>
    %290 = arith.select %288, %269, %289 : vector<32x128xi1>, vector<32x128xf32>
    %291 = arith.truncf %290 : vector<32x128xf32> to vector<32x128xbf16>
    %c0_150 = arith.constant 0 : index
    %c128_151 = arith.constant 128 : index
    %292 = vector.load %arg21[%c0_150, %c128_151] : memref<32x1152xbf16, #tpu.memory_space<vmem>>, vector<32x128xbf16>
    tpu.vector_store %arg21[%c0_150, %c128_151], %291 {strides = array<i32>} : memref<32x1152xbf16, #tpu.memory_space<vmem>>, vector<32x128xbf16>,
    %c92 = arith.constant 92 : index
    %c0_152 = arith.constant 0 : index
    %293 = vector.load %arg20[%c92, %c0_152] : memref<128x128xf32, #tpu.memory_space<vmem>>, vector<32x128xf32>
    %294 = tpu.iota {dimensions = array<i32: 0>} : vector<32x128xi32>
    %c16_i32_153 = arith.constant 16 : i32
    %c0_i32_154 = arith.constant 0 : i32
    %295 = arith.cmpi eq, %c16_i32_153, %c0_i32_154 : i32
    %c1_i32_155 = arith.constant 1 : i32
    %296 = arith.select %295, %c1_i32_155, %c16_i32_153 : i32
    %297 = vector.broadcast %296 : i32 to vector<32x128xi32>
    %298 = arith.remsi %294, %297 : vector<32x128xi32>
    %c0_i32_156 = arith.constant 0 : i32
    %299 = vector.broadcast %c0_i32_156 : i32 to vector<32x128xi32>
    %300 = arith.cmpi ne, %298, %299 : vector<32x128xi32>
    %c0_i32_157 = arith.constant 0 : i32
    %301 = vector.broadcast %c0_i32_157 : i32 to vector<32x128xi32>
    %302 = arith.cmpi slt, %298, %301 : vector<32x128xi32>
    %c0_i32_158 = arith.constant 0 : i32
    %303 = arith.cmpi slt, %296, %c0_i32_158 : i32
    %304 = vector.broadcast %303 : i1 to vector<32x128xi1>
    %305 = vector.broadcast %304 : vector<32x128xi1> to vector<32x128xi1>
    %306 = arith.xori %302, %305 : vector<32x128xi1>
    %307 = arith.andi %306, %300 : vector<32x128xi1>
    %308 = vector.broadcast %296 : i32 to vector<32x128xi32>
    %309 = arith.addi %298, %308 : vector<32x128xi32>
    %310 = arith.select %307, %309, %298 : vector<32x128xi1>, vector<32x128xi32>
    %c4_i32_159 = arith.constant 4 : i32
    %311 = vector.broadcast %c4_i32_159 : i32 to vector<32x128xi32>
    %312 = arith.cmpi sge, %310, %311 : vector<32x128xi32>
    %cst_160 = arith.constant 0.000000e+00 : f32
    %313 = vector.broadcast %cst_160 : f32 to vector<32x128xf32>
    %314 = arith.select %312, %293, %313 : vector<32x128xi1>, vector<32x128xf32>
    %315 = arith.truncf %314 : vector<32x128xf32> to vector<32x128xbf16>
    %c0_161 = arith.constant 0 : index
    %c256_162 = arith.constant 256 : index
    %316 = vector.load %arg21[%c0_161, %c256_162] : memref<32x1152xbf16, #tpu.memory_space<vmem>>, vector<32x128xbf16>
    tpu.vector_store %arg21[%c0_161, %c256_162], %315 {strides = array<i32>} : memref<32x1152xbf16, #tpu.memory_space<vmem>>, vector<32x128xbf16>,
    %c31 = arith.constant 31 : index
    %c0_163 = arith.constant 0 : index
    %317 = vector.load %arg20[%c31, %c0_163] : memref<128x128xf32, #tpu.memory_space<vmem>>, vector<32x128xf32>
    %318 = tpu.iota {dimensions = array<i32: 0>} : vector<32x128xi32>
    %c4_i32_164 = arith.constant 4 : i32
    %c0_i32_165 = arith.constant 0 : i32
    %319 = arith.cmpi eq, %c4_i32_164, %c0_i32_165 : i32
    %c1_i32_166 = arith.constant 1 : i32
    %320 = arith.select %319, %c1_i32_166, %c4_i32_164 : i32
    %321 = vector.broadcast %320 : i32 to vector<32x128xi32>
    %322 = arith.remsi %318, %321 : vector<32x128xi32>
    %c0_i32_167 = arith.constant 0 : i32
    %323 = vector.broadcast %c0_i32_167 : i32 to vector<32x128xi32>
    %324 = arith.cmpi ne, %322, %323 : vector<32x128xi32>
    %c0_i32_168 = arith.constant 0 : i32
    %325 = vector.broadcast %c0_i32_168 : i32 to vector<32x128xi32>
    %326 = arith.cmpi slt, %322, %325 : vector<32x128xi32>
    %c0_i32_169 = arith.constant 0 : i32
    %327 = arith.cmpi slt, %320, %c0_i32_169 : i32
    %328 = vector.broadcast %327 : i1 to vector<32x128xi1>
    %329 = vector.broadcast %328 : vector<32x128xi1> to vector<32x128xi1>
    %330 = arith.xori %326, %329 : vector<32x128xi1>
    %331 = arith.andi %330, %324 : vector<32x128xi1>
    %332 = vector.broadcast %320 : i32 to vector<32x128xi32>
    %333 = arith.addi %322, %332 : vector<32x128xi32>
    %334 = arith.select %331, %333, %322 : vector<32x128xi1>, vector<32x128xi32>
    %c1_i32_170 = arith.constant 1 : i32
    %335 = vector.broadcast %c1_i32_170 : i32 to vector<32x128xi32>
    %336 = arith.cmpi sge, %334, %335 : vector<32x128xi32>
    %cst_171 = arith.constant 0.000000e+00 : f32
    %337 = vector.broadcast %cst_171 : f32 to vector<32x128xf32>
    %338 = arith.select %336, %317, %337 : vector<32x128xi1>, vector<32x128xf32>
    %339 = arith.truncf %338 : vector<32x128xf32> to vector<32x128xbf16>
    %c0_172 = arith.constant 0 : index
    %c384_173 = arith.constant 384 : index
    %340 = vector.load %arg21[%c0_172, %c384_173] : memref<32x1152xbf16, #tpu.memory_space<vmem>>, vector<32x128xbf16>
    tpu.vector_store %arg21[%c0_172, %c384_173], %339 {strides = array<i32>} : memref<32x1152xbf16, #tpu.memory_space<vmem>>, vector<32x128xbf16>,
    %c0_174 = arith.constant 0 : index
    %c0_175 = arith.constant 0 : index
    %341 = vector.load %arg20[%c0_174, %c0_175] : memref<128x128xf32, #tpu.memory_space<vmem>>, vector<32x128xf32>
    %342 = arith.truncf %341 : vector<32x128xf32> to vector<32x128xbf16>
    %c0_176 = arith.constant 0 : index
    %c512_177 = arith.constant 512 : index
    %343 = vector.load %arg21[%c0_176, %c512_177] : memref<32x1152xbf16, #tpu.memory_space<vmem>>, vector<32x128xbf16>
    tpu.vector_store %arg21[%c0_176, %c512_177], %342 {strides = array<i32>} : memref<32x1152xbf16, #tpu.memory_space<vmem>>, vector<32x128xbf16>,
    %c32_178 = arith.constant 32 : index
    %c0_179 = arith.constant 0 : index
    %344 = vector.load %arg20[%c32_178, %c0_179] : memref<128x128xf32, #tpu.memory_space<vmem>>, vector<32x128xf32>
    %345 = arith.truncf %344 : vector<32x128xf32> to vector<32x128xbf16>
    %c0_180 = arith.constant 0 : index
    %c640 = arith.constant 640 : index
    %346 = vector.load %arg21[%c0_180, %c640] : memref<32x1152xbf16, #tpu.memory_space<vmem>>, vector<32x128xbf16>
    tpu.vector_store %arg21[%c0_180, %c640], %345 {strides = array<i32>} : memref<32x1152xbf16, #tpu.memory_space<vmem>>, vector<32x128xbf16>,
    %c95 = arith.constant 95 : index
    %c0_181 = arith.constant 0 : index
    %347 = vector.load %arg20[%c95, %c0_181] : memref<128x128xf32, #tpu.memory_space<vmem>>, vector<32x128xf32>
    %348 = tpu.iota {dimensions = array<i32: 0>} : vector<32x128xi32>
    %c4_i32_182 = arith.constant 4 : i32
    %c0_i32_183 = arith.constant 0 : i32
    %349 = arith.cmpi eq, %c4_i32_182, %c0_i32_183 : i32
    %c1_i32_184 = arith.constant 1 : i32
    %350 = arith.select %349, %c1_i32_184, %c4_i32_182 : i32
    %351 = vector.broadcast %350 : i32 to vector<32x128xi32>
    %352 = arith.remsi %348, %351 : vector<32x128xi32>
    %c0_i32_185 = arith.constant 0 : i32
    %353 = vector.broadcast %c0_i32_185 : i32 to vector<32x128xi32>
    %354 = arith.cmpi ne, %352, %353 : vector<32x128xi32>
    %c0_i32_186 = arith.constant 0 : i32
    %355 = vector.broadcast %c0_i32_186 : i32 to vector<32x128xi32>
    %356 = arith.cmpi slt, %352, %355 : vector<32x128xi32>
    %c0_i32_187 = arith.constant 0 : i32
    %357 = arith.cmpi slt, %350, %c0_i32_187 : i32
    %358 = vector.broadcast %357 : i1 to vector<32x128xi1>
    %359 = vector.broadcast %358 : vector<32x128xi1> to vector<32x128xi1>
    %360 = arith.xori %356, %359 : vector<32x128xi1>
    %361 = arith.andi %360, %354 : vector<32x128xi1>
    %362 = vector.broadcast %350 : i32 to vector<32x128xi32>
    %363 = arith.addi %352, %362 : vector<32x128xi32>
    %364 = arith.select %361, %363, %352 : vector<32x128xi1>, vector<32x128xi32>
    %c1_i32_188 = arith.constant 1 : i32
    %365 = vector.broadcast %c1_i32_188 : i32 to vector<32x128xi32>
    %366 = arith.cmpi sge, %364, %365 : vector<32x128xi32>
    %cst_189 = arith.constant 0.000000e+00 : f32
    %367 = vector.broadcast %cst_189 : f32 to vector<32x128xf32>
    %368 = arith.select %366, %347, %367 : vector<32x128xi1>, vector<32x128xf32>
    %369 = arith.truncf %368 : vector<32x128xf32> to vector<32x128xbf16>
    %c0_190 = arith.constant 0 : index
    %c768 = arith.constant 768 : index
    %370 = vector.load %arg21[%c0_190, %c768] : memref<32x1152xbf16, #tpu.memory_space<vmem>>, vector<32x128xbf16>
    tpu.vector_store %arg21[%c0_190, %c768], %369 {strides = array<i32>} : memref<32x1152xbf16, #tpu.memory_space<vmem>>, vector<32x128xbf16>,
    %c64_191 = arith.constant 64 : index
    %c0_192 = arith.constant 0 : index
    %371 = vector.load %arg20[%c64_191, %c0_192] : memref<128x128xf32, #tpu.memory_space<vmem>>, vector<32x128xf32>
    %372 = arith.truncf %371 : vector<32x128xf32> to vector<32x128xbf16>
    %c0_193 = arith.constant 0 : index
    %c896 = arith.constant 896 : index
    %373 = vector.load %arg21[%c0_193, %c896] : memref<32x1152xbf16, #tpu.memory_space<vmem>>, vector<32x128xbf16>
    tpu.vector_store %arg21[%c0_193, %c896], %372 {strides = array<i32>} : memref<32x1152xbf16, #tpu.memory_space<vmem>>, vector<32x128xbf16>,
    %c96_194 = arith.constant 96 : index
    %c0_195 = arith.constant 0 : index
    %374 = vector.load %arg20[%c96_194, %c0_195] : memref<128x128xf32, #tpu.memory_space<vmem>>, vector<32x128xf32>
    %375 = arith.truncf %374 : vector<32x128xf32> to vector<32x128xbf16>
    %c0_196 = arith.constant 0 : index
    %c1024 = arith.constant 1024 : index
    %376 = vector.load %arg21[%c0_196, %c1024] : memref<32x1152xbf16, #tpu.memory_space<vmem>>, vector<32x128xbf16>
    tpu.vector_store %arg21[%c0_196, %c1024], %375 {strides = array<i32>} : memref<32x1152xbf16, #tpu.memory_space<vmem>>, vector<32x128xbf16>,
    %c0_197 = arith.constant 0 : index
    %c0_198 = arith.constant 0 : index
    %377 = vector.load %arg21[%c0_197, %c0_198] : memref<32x1152xbf16, #tpu.memory_space<vmem>>, vector<32x1152xbf16>
    %c0_199 = arith.constant 0 : index
    %c0_200 = arith.constant 0 : index
    %378 = vector.load %arg10[%c0_199, %c0_200] : memref<1152x256xbf16, #tpu.memory_space<vmem>>, vector<1152x256xbf16>
    %cst_201 = arith.constant dense<0.000000e+00> : vector<32x256xf32>
    %379 = tpu.matmul %377, %378, %cst_201 {dimension_numbers = #tpu.dot_dimension_numbers<[1], [0], [0], [1], [0, 0, 1, 1], [], []>} : vector<32x1152xbf16>, vector<1152x256xbf16>, vector<32x256xf32> -> vector<32x256xf32>
    %c0_202 = arith.constant 0 : index
    %c0_203 = arith.constant 0 : index
    %380 = vector.load %arg11[%c0_202, %c0_203] : memref<1x256xf32, #tpu.memory_space<vmem>>, vector<1x256xf32>
    %381 = vector.broadcast %380 : vector<1x256xf32> to vector<32x256xf32>
    %382 = arith.addf %379, %381 : vector<32x256xf32>
    %c0_204 = arith.constant 0 : index
    %c0_205 = arith.constant 0 : index
    %383 = vector.load %arg12[%c0_204, %c0_205] : memref<1x256xf32, #tpu.memory_space<vmem>>, vector<1x256xf32>
    %c0_206 = arith.constant 0 : index
    %c0_207 = arith.constant 0 : index
    %384 = vector.load %arg13[%c0_206, %c0_207] : memref<1x256xf32, #tpu.memory_space<vmem>>, vector<1x256xf32>
    %cst_208 = arith.constant dense<0.000000e+00> : vector<256xf32>
    %385 = vector.multi_reduction <add>, %382, %cst_208 [0] : vector<32x256xf32> to vector<256xf32>
    %386 = vector.shape_cast %385 : vector<256xf32> to vector<1x256xf32>
    %cst_209 = arith.constant 3.125000e-02 : f32
    %387 = vector.broadcast %cst_209 : f32 to vector<1x256xf32>
    %388 = arith.mulf %386, %387 : vector<1x256xf32>
    %389 = vector.broadcast %388 : vector<1x256xf32> to vector<32x256xf32>
    %390 = arith.subf %382, %389 : vector<32x256xf32>
    %391 = arith.mulf %390, %390 : vector<32x256xf32>
    %cst_210 = arith.constant dense<0.000000e+00> : vector<256xf32>
    %392 = vector.multi_reduction <add>, %391, %cst_210 [0] : vector<32x256xf32> to vector<256xf32>
    %393 = vector.shape_cast %392 : vector<256xf32> to vector<1x256xf32>
    %cst_211 = arith.constant 3.125000e-02 : f32
    %394 = vector.broadcast %cst_211 : f32 to vector<1x256xf32>
    %395 = arith.mulf %393, %394 : vector<1x256xf32>
    %cst_212 = arith.constant 9.99999974E-6 : f32
    %396 = vector.broadcast %cst_212 : f32 to vector<1x256xf32>
    %397 = arith.addf %395, %396 : vector<1x256xf32>
    %398 = math.rsqrt %397 : vector<1x256xf32>
    %399 = vector.broadcast %398 : vector<1x256xf32> to vector<32x256xf32>
    %400 = arith.mulf %390, %399 : vector<32x256xf32>
    %401 = vector.broadcast %383 : vector<1x256xf32> to vector<32x256xf32>
    %402 = arith.mulf %400, %401 : vector<32x256xf32>
    %403 = vector.broadcast %384 : vector<1x256xf32> to vector<32x256xf32>
    %404 = arith.addf %402, %403 : vector<32x256xf32>
    %cst_213 = arith.constant 0.000000e+00 : f32
    %405 = vector.broadcast %cst_213 : f32 to vector<32x256xf32>
    %406 = arith.maximumf %404, %405 : vector<32x256xf32>
    %407 = vector.shape_cast %406 : vector<32x256xf32> to vector<2x16x256xf32>
    %cst_214 = arith.constant dense<0.000000e+00> : vector<2x256xf32>
    %408 = vector.multi_reduction <add>, %407, %cst_214 [1] : vector<2x16x256xf32> to vector<2x256xf32>
    %cst_215 = arith.constant 1.600000e+01 : f32
    %409 = vector.broadcast %cst_215 : f32 to vector<2x256xf32>
    %410 = arith.divf %408, %409 : vector<2x256xf32>
    %c0_216 = arith.constant 0 : index
    %c0_217 = arith.constant 0 : index
    %411 = vector.load %arg14[%c0_216, %c0_217] : memref<256x4xf32, #tpu.memory_space<vmem>>, vector<256x4xf32>
    %cst_218 = arith.constant dense<0.000000e+00> : vector<2x4xf32>
    %412 = tpu.matmul %410, %411, %cst_218 {dimension_numbers = #tpu.dot_dimension_numbers<[1], [0], [0], [1], [0, 0, 1, 1], [], []>} : vector<2x256xf32>, vector<256x4xf32>, vector<2x4xf32> -> vector<2x4xf32>
    %c0_219 = arith.constant 0 : index
    %c0_220 = arith.constant 0 : index
    %413 = vector.load %arg15[%c0_219, %c0_220] : memref<1x4xf32, #tpu.memory_space<vmem>>, vector<1x4xf32>
    %414 = vector.broadcast %413 : vector<1x4xf32> to vector<2x4xf32>
    %415 = arith.addf %412, %414 : vector<2x4xf32>
    %c0_221 = arith.constant 0 : index
    %c0_222 = arith.constant 0 : index
    %416 = vector.load %arg16[%c0_221, %c0_222] : memref<2x4xf32, #tpu.memory_space<vmem>>, vector<2x4xf32>
    tpu.vector_store %arg16[%c0_221, %c0_222], %415 {strides = array<i32>} : memref<2x4xf32, #tpu.memory_space<vmem>>, vector<2x4xf32>,
    return
  }
  func.func @transform_0(%arg0: i32) -> (i32, i32) {
    %c0_i32 = arith.constant 0 : i32
    %c0_i32_0 = arith.constant 0 : i32
    %c0_i32_1 = arith.constant 0 : i32
    return %c0_i32, %c0_i32_0 : i32, i32
  }
  func.func @transform_1(%arg0: i32) -> (i32, i32) {
    %c0_i32 = arith.constant 0 : i32
    %c0_i32_0 = arith.constant 0 : i32
    %c0_i32_1 = arith.constant 0 : i32
    return %c0_i32, %c0_i32_0 : i32, i32
  }
  func.func @transform_2(%arg0: i32) -> (i32, i32) {
    %c0_i32 = arith.constant 0 : i32
    %c0_i32_0 = arith.constant 0 : i32
    %c0_i32_1 = arith.constant 0 : i32
    return %c0_i32, %c0_i32_0 : i32, i32
  }
  func.func @transform_3(%arg0: i32) -> (i32, i32) {
    %c0_i32 = arith.constant 0 : i32
    %c0_i32_0 = arith.constant 0 : i32
    %c0_i32_1 = arith.constant 0 : i32
    return %c0_i32, %c0_i32_0 : i32, i32
  }
  func.func @transform_4(%arg0: i32) -> (i32, i32) {
    %c0_i32 = arith.constant 0 : i32
    %c0_i32_0 = arith.constant 0 : i32
    %c0_i32_1 = arith.constant 0 : i32
    return %c0_i32, %c0_i32_0 : i32, i32
  }
  func.func @transform_5(%arg0: i32) -> (i32, i32) {
    %c0_i32 = arith.constant 0 : i32
    %c0_i32_0 = arith.constant 0 : i32
    %c0_i32_1 = arith.constant 0 : i32
    return %c0_i32, %c0_i32_0 : i32, i32
  }
  func.func @transform_6(%arg0: i32) -> (i32, i32) {
    %c0_i32 = arith.constant 0 : i32
    %c0_i32_0 = arith.constant 0 : i32
    %c0_i32_1 = arith.constant 0 : i32
    return %c0_i32, %c0_i32_0 : i32, i32
  }
  func.func @transform_7(%arg0: i32) -> (i32, i32) {
    %c0_i32 = arith.constant 0 : i32
    %c0_i32_0 = arith.constant 0 : i32
    %c0_i32_1 = arith.constant 0 : i32
    return %c0_i32, %c0_i32_0 : i32, i32
  }
  func.func @transform_8(%arg0: i32) -> (i32, i32) {
    %c0_i32 = arith.constant 0 : i32
    %c0_i32_0 = arith.constant 0 : i32
    %c0_i32_1 = arith.constant 0 : i32
    return %c0_i32, %c0_i32_0 : i32, i32
  }
  func.func @transform_9(%arg0: i32) -> (i32, i32) {
    %c0_i32 = arith.constant 0 : i32
    %c0_i32_0 = arith.constant 0 : i32
    %c0_i32_1 = arith.constant 0 : i32
    return %c0_i32, %c0_i32_0 : i32, i32
  }
  func.func @transform_10(%arg0: i32) -> (i32, i32) {
    %c0_i32 = arith.constant 0 : i32
    %c0_i32_0 = arith.constant 0 : i32
    %c0_i32_1 = arith.constant 0 : i32
    return %c0_i32, %c0_i32_0 : i32, i32
  }
  func.func @transform_11(%arg0: i32) -> (i32, i32) {
    %c0_i32 = arith.constant 0 : i32
    %c0_i32_0 = arith.constant 0 : i32
    %c0_i32_1 = arith.constant 0 : i32
    return %c0_i32, %c0_i32_0 : i32, i32
  }
  func.func @transform_12(%arg0: i32) -> (i32, i32) {
    %c0_i32 = arith.constant 0 : i32
    %c0_i32_0 = arith.constant 0 : i32
    %c0_i32_1 = arith.constant 0 : i32
    return %c0_i32, %c0_i32_0 : i32, i32
  }
  func.func @transform_13(%arg0: i32) -> (i32, i32) {
    %c0_i32 = arith.constant 0 : i32
    %c0_i32_0 = arith.constant 0 : i32
    %c0_i32_1 = arith.constant 0 : i32
    return %c0_i32, %c0_i32_0 : i32, i32
  }
  func.func @transform_14(%arg0: i32) -> (i32, i32) {
    %c0_i32 = arith.constant 0 : i32
    %c0_i32_0 = arith.constant 0 : i32
    %c0_i32_1 = arith.constant 0 : i32
    return %c0_i32, %c0_i32_0 : i32, i32
  }
  func.func @transform_15(%arg0: i32) -> (i32, i32) {
    %c0_i32 = arith.constant 0 : i32
    %c0_i32_0 = arith.constant 0 : i32
    %c0_i32_1 = arith.constant 0 : i32
    return %c0_i32, %c0_i32_0 : i32, i32
  }
}

</mosaic_0001>

<bundles_post_ra>
// kernel: simple_coatnet_forward.1
= control target key start
LH: loop header
LB: loop body
LE: loop exit
PB: predicated region body
PF: predicated region fallthrough
CT: control target
= control target key end

     0   :  { %v9554_v1 = vmov 0   ;;  %s9538_s0 = inlined_call_operand.vmem [shape: bf16[512,256], index: 0, kind: input, shape index: {}]   ;;  %s9539_s1 = inlined_call_operand.vmem [shape: bf16[256,64], index: 1, kind: input, shape index: {}]   ;;  %s9540_s2 = inlined_call_operand.vmem [shape: f32[1,64], index: 2, kind: input, shape index: {}]   ;;  %s9541_s3 = inlined_call_operand.vmem [shape: f32[1,64], index: 3, kind: input, shape index: {}]   ;;  %s9542_s4 = inlined_call_operand.vmem [shape: f32[1,64], index: 4, kind: input, shape index: {}]   ;;  %s9543_s5 = inlined_call_operand.vmem [shape: bf16[576,128], index: 5, kind: input, shape index: {}]   ;;  %s9544_s6 = inlined_call_operand.vmem [shape: f32[1,128], index: 6, kind: input, shape index: {}]   ;;  %s9545_s7 = inlined_call_operand.vmem [shape: f32[1,128], index: 7, kind: input, shape index: {}]   ;;  %s9546_s8 = inlined_call_operand.vmem [shape: f32[1,128], index: 8, kind: input, shape index: {}]   ;;  %s9547_s9 = inlined_call_operand.vmem [shape: bf16[1152,256], index: 9, kind: input, shape index: {}]   ;;  %s9548_s10 = inlined_call_operand.vmem [shape: f32[1,256], index: 10, kind: input, shape index: {}]   ;;  %s9549_s11 = inlined_call_operand.vmem [shape: f32[1,256], index: 11, kind: input, shape index: {}]   ;;  %s9550_s12 = inlined_call_operand.vmem [shape: f32[1,256], index: 12, kind: input, shape index: {}]   ;;  %s9551_s13 = inlined_call_operand.vmem [shape: f32[256,4], index: 13, kind: input, shape index: {}]   ;;  %s9552_s14 = inlined_call_operand.vmem [shape: f32[1,4], index: 14, kind: input, shape index: {}]   ;;  %s9553_s15 = inlined_call_operand.hbm [shape: f32[2,4], index: 15, kind: output, shape index: {}]  }
   0x1   :  { %v5742_v0 = vld [vmem:[%s9539_s1] sm:$0xff]   ;;  %571 = vmatprep.subr.bf16.mxu0 %v9554_v1  ;;  %v5743_v2 = vld [vmem:[%s9539_s1 + $0x8] sm:$0xff]   ;;  %v5744_v3 = vld [vmem:[%s9539_s1 + $0x10] sm:$0xff]  }
   0x2   :  { %572 = vmatpush1.bf16.msra.mxu0 %v5742_v0  ;;  %v5745_v4 = vld [vmem:[%s9539_s1 + $0x18] sm:$0xff]   ;;  %v5746_v5 = vld [vmem:[%s9539_s1 + $0x20] sm:$0xff]   ;;  %v5747_v7 = vld [vmem:[%s9539_s1 + $0x28] sm:$0xff]  }
   0x3   :  { %573 = vmatprep.subr.bf16.mxu0 %v9554_v1  ;;  %v5760_v6 = vld [vmem:[%s9538_s0 + $0x4] ss:$8 sps:$4 sm:$0xff]   ;;  %v5748_v8 = vld [vmem:[%s9539_s1 + $0x30] sm:$0xff]   ;;  %v5749_v9 = vld [vmem:[%s9539_s1 + $0x38] sm:$0xff]  }
   0x4   :  { %603 = vmatprep.mubr.bf16.mxu0 %v5760_v6  ;;  %v5750_v10 = vld [vmem:[%s9539_s1 + $0x40] sm:$0xff]   ;;  %v5751_v11 = vld [vmem:[%s9539_s1 + $0x48] sm:$0xff]   ;;  %v5752_v12 = vld [vmem:[%s9539_s1 + $0x50] sm:$0xff]  }
   0x5   :  { %v5753_v13 = vld [vmem:[%s9539_s1 + $0x58] sm:$0xff]   ;;  %v5754_v14 = vld [vmem:[%s9539_s1 + $0x60] sm:$0xff]   ;;  %v5755_v15 = vld [vmem:[%s9539_s1 + $0x68] sm:$0xff]  }
   0x6   :  { %574 = vmatpush1.bf16.msra.mxu0 %v5743_v2  ;;  %v5756_v16 = vld [vmem:[%s9539_s1 + $0x70] sm:$0xff]   ;;  %v5757_v17 = vld [vmem:[%s9539_s1 + $0x78] sm:$0xff]   ;;  %v5758_v18 = vld [vmem:[%s9538_s0] ss:$8 sps:$4 sm:$0xff]  }
   0x7   :  { %575 = vmatprep.subr.bf16.mxu0 %v9554_v1  ;;  %v5761_v19 = vld [vmem:[%s9538_s0 + $0x14] ss:$8 sps:$4 sm:$0xff]   ;;  %v5763_v20 = vld [vmem:[%s9538_s0 + $0x10] ss:$8 sps:$4 sm:$0xff]   ;;  %v5764_v21 = vld [vmem:[%s9538_s0 + $0x24] ss:$8 sps:$4 sm:$0xff]  }
   0x8   :  { %v5766_v22 = vld [vmem:[%s9538_s0 + $0x20] ss:$8 sps:$4 sm:$0xff]   ;;  %v5767_v23 = vld [vmem:[%s9538_s0 + $0x34] ss:$8 sps:$4 sm:$0xff]   ;;  %v5769_v24 = vld [vmem:[%s9538_s0 + $0x30] ss:$8 sps:$4 sm:$0xff]  }
   0x9   :  { %v5770_v25 = vld [vmem:[%s9538_s0 + $0x44] ss:$8 sps:$4 sm:$0xff]   ;;  %v5772_v26 = vld [vmem:[%s9538_s0 + $0x40] ss:$8 sps:$4 sm:$0xff]   ;;  %v5773_v27 = vld [vmem:[%s9538_s0 + $0x54] ss:$8 sps:$4 sm:$0xff]  }
   0xa   :  { %576 = vmatpush1.bf16.msra.mxu0 %v5744_v3  ;;  %v5775_v28 = vld [vmem:[%s9538_s0 + $0x50] ss:$8 sps:$4 sm:$0xff]   ;;  %v5776_v29 = vld [vmem:[%s9538_s0 + $0x64] ss:$8 sps:$4 sm:$0xff]   ;;  %v5778_v30 = vld [vmem:[%s9538_s0 + $0x60] ss:$8 sps:$4 sm:$0xff]  }
   0xb   :  { %577 = vmatprep.subr.bf16.mxu0 %v9554_v1  ;;  %v5779_v31 = vld [vmem:[%s9538_s0 + $0x74] ss:$8 sps:$4 sm:$0xff]   ;;  %v5781_v32 = vld [vmem:[%s9538_s0 + $0x70] ss:$8 sps:$4 sm:$0xff]   ;;  %v5782_v33 = vld [vmem:[%s9538_s0 + $0x84] ss:$8 sps:$4 sm:$0xff]  }
   0xc   :  { %v5784_v34 = vld [vmem:[%s9538_s0 + $0x80] ss:$8 sps:$4 sm:$0xff]   ;;  %v5785_v35 = vld [vmem:[%s9538_s0 + $0x94] ss:$8 sps:$4 sm:$0xff]  }
   0xe   :  { %578 = vmatpush1.bf16.msra.mxu0 %v5745_v4 }
   0xf   :  { %579 = vmatprep.subr.bf16.mxu0 %v9554_v1 }
  0x12   :  { %580 = vmatpush1.bf16.msra.mxu0 %v5746_v5 }
  0x13   :  { %581 = vmatprep.subr.bf16.mxu0 %v9554_v1 }
  0x16   :  { %582 = vmatpush1.bf16.msra.mxu0 %v5747_v7 }
  0x17   :  { %583 = vmatprep.subr.bf16.mxu0 %v9554_v1 }
  0x1a   :  { %584 = vmatpush1.bf16.msra.mxu0 %v5748_v8 }
  0x1b   :  { %585 = vmatprep.subr.bf16.mxu0 %v9554_v1 }
  0x1e   :  { %586 = vmatpush1.bf16.msra.mxu0 %v5749_v9 }
  0x1f   :  { %587 = vmatprep.subr.bf16.mxu0 %v9554_v1 }
  0x22   :  { %588 = vmatpush1.bf16.msra.mxu0 %v5750_v10 }
  0x23   :  { %589 = vmatprep.subr.bf16.mxu0 %v9554_v1 }
  0x26   :  { %590 = vmatpush1.bf16.msra.mxu0 %v5751_v11 }
  0x27   :  { %591 = vmatprep.subr.bf16.mxu0 %v9554_v1 }
  0x2a   :  { %592 = vmatpush1.bf16.msra.mxu0 %v5752_v12 }
  0x2b   :  { %593 = vmatprep.subr.bf16.mxu0 %v9554_v1 }
  0x2e   :  { %594 = vmatpush1.bf16.msra.mxu0 %v5753_v13 }
  0x2f   :  { %595 = vmatprep.subr.bf16.mxu0 %v9554_v1 }
  0x32   :  { %596 = vmatpush1.bf16.msra.mxu0 %v5754_v14 }
  0x33   :  { %597 = vmatprep.subr.bf16.mxu0 %v9554_v1 }
  0x36   :  { %598 = vmatpush1.bf16.msra.mxu0 %v5755_v15 }
  0x37   :  { %599 = vmatprep.subr.bf16.mxu0 %v9554_v1 }
  0x3a   :  { %600 = vmatpush1.bf16.msra.mxu0 %v5756_v16 }
  0x3b   :  { %601 = vmatprep.subr.bf16.mxu0 %v9554_v1 }
  0x3e   :  { %602 = vmatpush1.bf16.msra.mxu0 %v5757_v17 }
  0x41   :  { %604 = vmatmul.mubr.bf16.vlgmr.msra.gmra.mrb[0].mxu0 %v5758_v18 }
  0x42   :  { %611 = vmatprep.mubr.bf16.mxu0 %v5761_v19 }
  0x49   :  { %612 = vmatmul.mubr.bf16.gmra.mrb[4].mxu0 %v5763_v20 }
  0x4a   :  { %619 = vmatprep.mubr.bf16.mxu0 %v5764_v21 }
  0x51   :  { %620 = vmatmul.mubr.bf16.gmra.mrb[8].mxu0 %v5766_v22 }
  0x52   :  { %627 = vmatprep.mubr.bf16.mxu0 %v5767_v23 }
  0x59   :  { %628 = vmatmul.mubr.bf16.gmra.mrb[12].mxu0 %v5769_v24 }
  0x5a   :  { %635 = vmatprep.mubr.bf16.mxu0 %v5770_v25 }
  0x61   :  { %636 = vmatmul.mubr.bf16.gmra.mrb[16].mxu0 %v5772_v26 }
  0x62   :  { %643 = vmatprep.mubr.bf16.mxu0 %v5773_v27 }
  0x69   :  { %644 = vmatmul.mubr.bf16.gmra.mrb[20].mxu0 %v5775_v28 }
  0x6a   :  { %651 = vmatprep.mubr.bf16.mxu0 %v5776_v29 }
  0x71   :  { %652 = vmatmul.mubr.bf16.gmra.mrb[24].mxu0 %v5778_v30 }
  0x72   :  { %659 = vmatprep.mubr.bf16.mxu0 %v5779_v31 }
  0x79   :  { %660 = vmatmul.mubr.bf16.gmra.mrb[28].mxu0 %v5781_v32 }
  0x7a   :  { %667 = vmatprep.mubr.bf16.mxu0 %v5782_v33 }
  0x7b   :  { %20 = vsyncpa [#allocation8], 0  ;;  %v5787_v36 = vld [vmem:[%s9538_s0 + $0x90] ss:$8 sps:$4 sm:$0xff]   ;;  %v5788_v37 = vld [vmem:[%s9538_s0 + $0xa4] ss:$8 sps:$4 sm:$0xff]  }
  0x7c   :  { %v5790_v38 = vld [vmem:[%s9538_s0 + $0xa0] ss:$8 sps:$4 sm:$0xff]   ;;  %v5791_v39 = vld [vmem:[%s9538_s0 + $0xb4] ss:$8 sps:$4 sm:$0xff]   ;;  %v5793_v40 = vld [vmem:[%s9538_s0 + $0xb0] ss:$8 sps:$4 sm:$0xff]  }
  0x7d   :  { %v5794_v41 = vld [vmem:[%s9538_s0 + $0xc4] ss:$8 sps:$4 sm:$0xff]   ;;  %v5796_v42 = vld [vmem:[%s9538_s0 + $0xc0] ss:$8 sps:$4 sm:$0xff]   ;;  %v5797_v43 = vld [vmem:[%s9538_s0 + $0xd4] ss:$8 sps:$4 sm:$0xff]  }
  0x7e   :  { %v5799_v44 = vld [vmem:[%s9538_s0 + $0xd0] ss:$8 sps:$4 sm:$0xff]   ;;  %v5800_v45 = vld [vmem:[%s9538_s0 + $0xe4] ss:$8 sps:$4 sm:$0xff]   ;;  %v5802_v46 = vld [vmem:[%s9538_s0 + $0xe0] ss:$8 sps:$4 sm:$0xff]  }
  0x7f   :  { %v5803_v47 = vld [vmem:[%s9538_s0 + $0xf4] ss:$8 sps:$4 sm:$0xff]   ;;  %v5805_v48 = vld [vmem:[%s9538_s0 + $0xf0] ss:$8 sps:$4 sm:$0xff]   ;;  %v5806_v49 = vld [vmem:[%s9538_s0 + $0x104] ss:$8 sps:$4 sm:$0xff]  }
  0x80   :  { %v5808_v50 = vld [vmem:[%s9538_s0 + $0x100] ss:$8 sps:$4 sm:$0xff]   ;;  %v5809_v51 = vld [vmem:[%s9538_s0 + $0x114] ss:$8 sps:$4 sm:$0xff]   ;;  %v5811_v52 = vld [vmem:[%s9538_s0 + $0x110] ss:$8 sps:$4 sm:$0xff]  }
  0x81   :  { %668 = vmatmul.mubr.bf16.gmra.mrb[32].mxu0 %v5784_v34  ;;  %v5812_v53 = vld [vmem:[%s9538_s0 + $0x124] ss:$8 sps:$4 sm:$0xff]   ;;  %v5814_v54 = vld [vmem:[%s9538_s0 + $0x120] ss:$8 sps:$4 sm:$0xff]   ;;  %v5815_v55 = vld [vmem:[%s9538_s0 + $0x134] ss:$8 sps:$4 sm:$0xff]  }
  0x82   :  { %675 = vmatprep.mubr.bf16.mxu0 %v5785_v35  ;;  %v5817_v56 = vld [vmem:[%s9538_s0 + $0x130] ss:$8 sps:$4 sm:$0xff]   ;;  %v5818_v57 = vld [vmem:[%s9538_s0 + $0x144] ss:$8 sps:$4 sm:$0xff]   ;;  %v5820_v58 = vld [vmem:[%s9538_s0 + $0x140] ss:$8 sps:$4 sm:$0xff]  }
  0x83   :  { %v5821_v59 = vld [vmem:[%s9538_s0 + $0x154] ss:$8 sps:$4 sm:$0xff]   ;;  %v5823_v60 = vld [vmem:[%s9538_s0 + $0x150] ss:$8 sps:$4 sm:$0xff]   ;;  %v5824_v61 = vld [vmem:[%s9538_s0 + $0x164] ss:$8 sps:$4 sm:$0xff]  }
  0x84   :  { %v5826_v62 = vld [vmem:[%s9538_s0 + $0x160] ss:$8 sps:$4 sm:$0xff]   ;;  %v5827_v63 = vld [vmem:[%s9538_s0 + $0x174] ss:$8 sps:$4 sm:$0xff]   ;;  %v5829_v0 = vld [vmem:[%s9538_s0 + $0x170] ss:$8 sps:$4 sm:$0xff]  }
  0x85   :  { %v5830_v2 = vld [vmem:[%s9538_s0 + $0x184] ss:$8 sps:$4 sm:$0xff]   ;;  %v5832_v3 = vld [vmem:[%s9538_s0 + $0x180] ss:$8 sps:$4 sm:$0xff]   ;;  %v5833_v4 = vld [vmem:[%s9538_s0 + $0x194] ss:$8 sps:$4 sm:$0xff]  }
  0x86   :  { %v5835_v5 = vld [vmem:[%s9538_s0 + $0x190] ss:$8 sps:$4 sm:$0xff]   ;;  %v5836_v6 = vld [vmem:[%s9538_s0 + $0x1a4] ss:$8 sps:$4 sm:$0xff]   ;;  %v5838_v7 = vld [vmem:[%s9538_s0 + $0x1a0] ss:$8 sps:$4 sm:$0xff]  }
  0x87   :  { %v5839_v8 = vld [vmem:[%s9538_s0 + $0x1b4] ss:$8 sps:$4 sm:$0xff]   ;;  %v5841_v11 = vld [vmem:[%s9538_s0 + $0x1b0] ss:$8 sps:$4 sm:$0xff]   ;;  %v5842_v13 = vld [vmem:[%s9538_s0 + $0x1c4] ss:$8 sps:$4 sm:$0xff]  }
  0x88   :  { %v5844_v17 = vld [vmem:[%s9538_s0 + $0x1c0] ss:$8 sps:$4 sm:$0xff]   ;;  %v5845_v19 = vld [vmem:[%s9538_s0 + $0x1d4] ss:$8 sps:$4 sm:$0xff]   ;;  %v5847_v23 = vld [vmem:[%s9538_s0 + $0x1d0] ss:$8 sps:$4 sm:$0xff]  }
  0x89   :  { %676 = vmatmul.mubr.bf16.gmra.mrb[36].mxu0 %v5787_v36  ;;  %v5848_v25 = vld [vmem:[%s9538_s0 + $0x1e4] ss:$8 sps:$4 sm:$0xff]   ;;  %v5850_v29 = vld [vmem:[%s9538_s0 + $0x1e0] ss:$8 sps:$4 sm:$0xff]   ;;  %v5851_v31 = vld [vmem:[%s9538_s0 + $0x1f4] ss:$8 sps:$4 sm:$0xff]  }
  0x8a   :  { %683 = vmatprep.mubr.bf16.mxu0 %v5788_v37  ;;  %v5853_v35 = vld [vmem:[%s9538_s0 + $0x1f0] ss:$8 sps:$4 sm:$0xff]   ;;  %vm9599_vm0 = vcmask 523264   ;;  %s6139_s24 = smov 64   ;;  %s6142_s22 = smov [#allocation7]  }
  0x91   :  { %684 = vmatmul.mubr.bf16.gmra.mrb[40].mxu0 %v5790_v38 }
  0x92   :  { %691 = vmatprep.mubr.bf16.mxu0 %v5791_v39 }
  0x99   :  { %692 = vmatmul.mubr.bf16.gmra.mrb[44].mxu0 %v5793_v40 }
  0x9a   :  { %699 = vmatprep.mubr.bf16.mxu0 %v5794_v41 }
  0xa1   :  { %700 = vmatmul.mubr.bf16.gmra.mrb[48].mxu0 %v5796_v42 }
  0xa2   :  { %707 = vmatprep.mubr.bf16.mxu0 %v5797_v43 }
  0xa9   :  { %708 = vmatmul.mubr.bf16.gmra.mrb[52].mxu0 %v5799_v44 }
  0xaa   :  { %715 = vmatprep.mubr.bf16.mxu0 %v5800_v45 }
  0xb1   :  { %716 = vmatmul.mubr.bf16.gmra.mrb[56].mxu0 %v5802_v46  ;;  %v6482_v46 = vld [vmem:[%s9540_s2] ss:$0 sm:$0xff] }
  0xb2   :  { %723 = vmatprep.mubr.bf16.mxu0 %v5803_v47 }
  0xb9   :  { %724 = vmatmul.mubr.bf16.gmra.mrb[60].mxu0 %v5805_v48 }
  0xba   :  { %731 = vmatprep.mubr.bf16.mxu0 %v5806_v49 }
  0xc1   :  { %732 = vmatmul.mubr.bf16.gmra.mrb[64].mxu0 %v5808_v50 }
  0xc2   :  { %739 = vmatprep.mubr.bf16.mxu0 %v5809_v51 }
  0xc9   :  { %740 = vmatmul.mubr.bf16.gmra.mrb[68].mxu0 %v5811_v52 }
  0xca   :  { %747 = vmatprep.mubr.bf16.mxu0 %v5812_v53 }
  0xd1   :  { %748 = vmatmul.mubr.bf16.gmra.mrb[72].mxu0 %v5814_v54 }
  0xd2   :  { %755 = vmatprep.mubr.bf16.mxu0 %v5815_v55 }
  0xd9   :  { %756 = vmatmul.mubr.bf16.gmra.mrb[76].mxu0 %v5817_v56 }
  0xda   :  { %763 = vmatprep.mubr.bf16.mxu0 %v5818_v57 }
  0xe1   :  { %764 = vmatmul.mubr.bf16.gmra.mrb[80].mxu0 %v5820_v58 }
  0xe2   :  { %771 = vmatprep.mubr.bf16.mxu0 %v5821_v59 }
  0xe9   :  { %772 = vmatmul.mubr.bf16.gmra.mrb[84].mxu0 %v5823_v60 }
  0xea   :  { %779 = vmatprep.mubr.bf16.mxu0 %v5824_v61 }
  0xf1   :  { %780 = vmatmul.mubr.bf16.gmra.mrb[88].mxu0 %v5826_v62 }
  0xf2   :  { %787 = vmatprep.mubr.bf16.mxu0 %v5827_v63 }
  0xf9   :  { %788 = vmatmul.mubr.bf16.gmra.mrb[92].mxu0 %v5829_v0 }
  0xfa   :  { %795 = vmatprep.mubr.bf16.mxu0 %v5830_v2 }
 0x101   :  { %796 = vmatmul.mubr.bf16.gmra.mrb[96].mxu0 %v5832_v3 }
 0x102   :  { %803 = vmatprep.mubr.bf16.mxu0 %v5833_v4 }
 0x109   :  { %804 = vmatmul.mubr.bf16.gmra.mrb[100].mxu0 %v5835_v5 }
 0x10a   :  { %811 = vmatprep.mubr.bf16.mxu0 %v5836_v6 }
 0x111   :  { %812 = vmatmul.mubr.bf16.gmra.mrb[104].mxu0 %v5838_v7 }
 0x112   :  { %819 = vmatprep.mubr.bf16.mxu0 %v5839_v8 }
 0x114   :  { %v605_v9 = vpop.f32.mrb[0].mxu0 }
 0x115   :  { %v607_v10 = vpop.f32.mrb[1].mxu0  ;;  %v6488_v49 = vadd.f32 %v6482_v46, %v605_v9 }
 0x116   :  { %v608_v12 = vpop.f32.mrb[2].mxu0 }
 0x117   :  { %v610_v14 = vpop.f32.mrb[3].mxu0  ;;  %v6485_v47 = vadd.f32 %v6482_v46, %v608_v12  ;;  %v863_v55 = vsel %vm9599_vm0, %v6488_v49, 0.0 }
 0x119   :  { %820 = vmatmul.mubr.bf16.gmra.mrb[108].mxu0 %v5841_v11  ;;  %v864_v53 = vsel %vm9599_vm0, %v6485_v47, 0.0 }
 0x11a   :  { %827 = vmatprep.mubr.bf16.mxu0 %v5842_v13  ;;  %v865_v58 = vadd.f32 %v864_v53, %v863_v55 }
 0x11c   :  { %v613_v15 = vpop.f32.mrb[4].mxu0 }
 0x11d   :  { %v615_v16 = vpop.f32.mrb[5].mxu0  ;;  %v6491_v50 = vadd.f32 %v6482_v46, %v613_v15 }
 0x11e   :  { %v616_v18 = vpop.f32.mrb[6].mxu0 }
 0x11f   :  { %v618_v20 = vpop.f32.mrb[7].mxu0  ;;  %v866_v56 = vsel %vm9599_vm0, %v6491_v50, 0.0  ;;  %v6500_v57 = vadd.f32 %v6482_v46, %v616_v18 }
 0x120   :  { %v867_v60 = vadd.f32 %v866_v56, %v865_v58 }
 0x121   :  { %828 = vmatmul.mubr.bf16.gmra.mrb[112].mxu0 %v5844_v17  ;;  %v868_v62 = vsel %vm9599_vm0, %v6500_v57, 0.0 }
 0x122   :  { %835 = vmatprep.mubr.bf16.mxu0 %v5845_v19  ;;  %v869_v5 = vadd.f32 %v868_v62, %v867_v60 }
 0x124   :  { %v621_v21 = vpop.f32.mrb[8].mxu0 }
 0x125   :  { %v623_v22 = vpop.f32.mrb[9].mxu0  ;;  %v6503_v59 = vadd.f32 %v6482_v46, %v621_v21 }
 0x126   :  { %v624_v24 = vpop.f32.mrb[10].mxu0 }
 0x127   :  { %v626_v26 = vpop.f32.mrb[11].mxu0  ;;  %v870_v2 = vsel %vm9599_vm0, %v6503_v59, 0.0  ;;  %v6510_v3 = vadd.f32 %v6482_v46, %v624_v24 }
 0x128   :  { %v871_v7 = vadd.f32 %v870_v2, %v869_v5 }
 0x129   :  { %836 = vmatmul.mubr.bf16.gmra.mrb[116].mxu0 %v5847_v23  ;;  %v872_v8 = vsel %vm9599_vm0, %v6510_v3, 0.0 }
 0x12a   :  { %843 = vmatprep.mubr.bf16.mxu0 %v5848_v25  ;;  %v873_v13 = vadd.f32 %v872_v8, %v871_v7 }
 0x12c   :  { %v629_v27 = vpop.f32.mrb[12].mxu0 }
 0x12d   :  { %v631_v28 = vpop.f32.mrb[13].mxu0  ;;  %v6513_v6 = vadd.f32 %v6482_v46, %v629_v27 }
 0x12e   :  { %v632_v30 = vpop.f32.mrb[14].mxu0 }
 0x12f   :  { %v634_v32 = vpop.f32.mrb[15].mxu0  ;;  %v874_v10 = vsel %vm9599_vm0, %v6513_v6, 0.0  ;;  %v6520_v11 = vadd.f32 %v6482_v46, %v632_v30 }
 0x130   :  { %v875_v17 = vadd.f32 %v874_v10, %v873_v13 }
 0x131   :  { %844 = vmatmul.mubr.bf16.gmra.mrb[120].mxu0 %v5850_v29  ;;  %v876_v18 = vsel %vm9599_vm0, %v6520_v11, 0.0 }
 0x132   :  { %851 = vmatprep.mubr.bf16.mxu0 %v5851_v31  ;;  %v877_v21 = vadd.f32 %v876_v18, %v875_v17 }
 0x134   :  { %v637_v33 = vpop.f32.mrb[16].mxu0 }
 0x135   :  { %v639_v34 = vpop.f32.mrb[17].mxu0  ;;  %v6523_v15 = vadd.f32 %v6482_v46, %v637_v33 }
 0x136   :  { %v640_v36 = vpop.f32.mrb[18].mxu0 }
 0x137   :  { %v642_v37 = vpop.f32.mrb[19].mxu0  ;;  %v878_v19 = vsel %vm9599_vm0, %v6523_v15, 0.0  ;;  %v6530_v20 = vadd.f32 %v6482_v46, %v640_v36 }
 0x138   :  { %v879_v25 = vadd.f32 %v878_v19, %v877_v21 }
 0x139   :  { %852 = vmatmul.mubr.bf16.gmra.mrb[124].mxu0 %v5853_v35  ;;  %v880_v27 = vsel %vm9599_vm0, %v6530_v20, 0.0 }
 0x13a   :  { %v881_v31 = vadd.f32 %v880_v27, %v879_v25 }
 0x13c   :  { %v645_v38 = vpop.f32.mrb[20].mxu0 }
 0x13d   :  { %v647_v39 = vpop.f32.mrb[21].mxu0  ;;  %v6533_v23 = vadd.f32 %v6482_v46, %v645_v38 }
 0x13e   :  { %v648_v40 = vpop.f32.mrb[22].mxu0 }
 0x13f   :  { %v650_v41 = vpop.f32.mrb[23].mxu0  ;;  %v882_v29 = vsel %vm9599_vm0, %v6533_v23, 0.0  ;;  %v6540_v30 = vadd.f32 %v6482_v46, %v648_v40 }
 0x140   :  { %v883_v33 = vadd.f32 %v882_v29, %v881_v31 }
 0x141   :  { %v884_v35 = vsel %vm9599_vm0, %v6540_v30, 0.0 }
 0x142   :  { %v885_v40 = vadd.f32 %v884_v35, %v883_v33 }
 0x144   :  { %v653_v42 = vpop.f32.mrb[24].mxu0 }
 0x145   :  { %v655_v43 = vpop.f32.mrb[25].mxu0  ;;  %v6543_v32 = vadd.f32 %v6482_v46, %v653_v42 }
 0x146   :  { %v656_v44 = vpop.f32.mrb[26].mxu0 }
 0x147   :  { %v658_v45 = vpop.f32.mrb[27].mxu0  ;;  %v886_v38 = vsel %vm9599_vm0, %v6543_v32, 0.0  ;;  %v6550_v39 = vadd.f32 %v6482_v46, %v656_v44 }
 0x148   :  { %v887_v42 = vadd.f32 %v886_v38, %v885_v40 }
 0x149   :  { %v888_v45 = vsel %vm9599_vm0, %v6550_v39, 0.0 }
 0x14a   :  { %v889_v56 = vadd.f32 %v888_v45, %v887_v42 }
 0x14c   :  { %v661_v48 = vpop.f32.mrb[28].mxu0 }
 0x14d   :  { %v663_v51 = vpop.f32.mrb[29].mxu0  ;;  %v6553_v43 = vadd.f32 %v6482_v46, %v661_v48 }
 0x14e   :  { %v664_v52 = vpop.f32.mrb[30].mxu0 }
 0x14f   :  { %v666_v54 = vpop.f32.mrb[31].mxu0  ;;  %v890_v53 = vsel %vm9599_vm0, %v6553_v43, 0.0 }
 0x150   :  { %v6560_v54 = vadd.f32 %v6482_v46, %v664_v52  ;;  %v891_v48 = vadd.f32 %v890_v53, %v889_v56 }
 0x152   :  { %v892_v62 = vsel %vm9599_vm0, %v6560_v54, 0.0 }
 0x154   :  { %v669_v61 = vpop.f32.mrb[32].mxu0 }
 0x155   :  { %v671_v63 = vpop.f32.mrb[33].mxu0  ;;  %v6563_v58 = vadd.f32 %v6482_v46, %v669_v61 }
 0x156   :  { %v672_v0 = vpop.f32.mrb[34].mxu0 }
 0x157   :  { %v674_v4 = vpop.f32.mrb[35].mxu0  ;;  %v894_v63 = vsel %vm9599_vm0, %v6563_v58, 0.0  ;;  %v6570_v2 = vadd.f32 %v6482_v46, %v672_v0 }
 0x158   :  { %v893_v4 = vadd.f32 %v892_v62, %v891_v48 }
 0x159   :  { %v896_v10 = vsel %vm9599_vm0, %v6570_v2, 0.0 }
 0x15a   :  { %v895_v8 = vadd.f32 %v894_v63, %v893_v4 }
 0x15c   :  { %v677_v9 = vpop.f32.mrb[36].mxu0  ;;  %v897_v0 = vadd.f32 %v896_v10, %v895_v8 }
 0x15d   :  { %v679_v12 = vpop.f32.mrb[37].mxu0  ;;  %v6573_v5 = vadd.f32 %v6482_v46, %v677_v9 }
 0x15e   :  { %v680_v14 = vpop.f32.mrb[38].mxu0 }
 0x15f   :  { %v682_v16 = vpop.f32.mrb[39].mxu0  ;;  %v898_v13 = vsel %vm9599_vm0, %v6573_v5, 0.0 }
 0x160   :  { %v6580_v16 = vadd.f32 %v6482_v46, %v680_v14  ;;  %v899_v18 = vadd.f32 %v898_v13, %v897_v0 }
 0x162   :  { %v900_v19 = vsel %vm9599_vm0, %v6580_v16, 0.0 }
 0x163   :  { %v901_v14 = vadd.f32 %v900_v19, %v899_v18 }
 0x164   :  { %v685_v22 = vpop.f32.mrb[40].mxu0 }
 0x165   :  { %v687_v24 = vpop.f32.mrb[41].mxu0  ;;  %v6583_v17 = vadd.f32 %v6482_v46, %v685_v22 }
 0x166   :  { %v688_v26 = vpop.f32.mrb[42].mxu0 }
 0x167   :  { %v690_v28 = vpop.f32.mrb[43].mxu0  ;;  %v902_v25 = vsel %vm9599_vm0, %v6583_v17, 0.0  ;;  %v6590_v27 = vadd.f32 %v6482_v46, %v688_v26 }
 0x168   :  { %v903_v22 = vadd.f32 %v902_v25, %v901_v14 }
 0x169   :  { %v904_v31 = vsel %vm9599_vm0, %v6590_v27, 0.0 }
 0x16c   :  { %v693_v34 = vpop.f32.mrb[44].mxu0 }
 0x16d   :  { %v695_v36 = vpop.f32.mrb[45].mxu0  ;;  %v6593_v29 = vadd.f32 %v6482_v46, %v693_v34 }
 0x16e   :  { %v696_v37 = vpop.f32.mrb[46].mxu0 }
 0x16f   :  { %v698_v41 = vpop.f32.mrb[47].mxu0  ;;  %v906_v35 = vsel %vm9599_vm0, %v6593_v29, 0.0  ;;  %v6600_v36 = vadd.f32 %v6482_v46, %v696_v37 }
 0x170   :  { %v905_v41 = vadd.f32 %v904_v31, %v903_v22 }
 0x171   :  { %v908_v45 = vsel %vm9599_vm0, %v6600_v36, 0.0 }
 0x172   :  { %v907_v34 = vadd.f32 %v906_v35, %v905_v41 }
 0x174   :  { %v701_v51 = vpop.f32.mrb[48].mxu0  ;;  %v909_v56 = vadd.f32 %v908_v45, %v907_v34 }
 0x175   :  { %v703_v55 = vpop.f32.mrb[49].mxu0  ;;  %v6603_v40 = vadd.f32 %v6482_v46, %v701_v51 }
 0x176   :  { %v704_v44 = vpop.f32.mrb[50].mxu0 }
 0x177   :  { %v706_v60 = vpop.f32.mrb[51].mxu0  ;;  %v910_v53 = vsel %vm9599_vm0, %v6603_v40, 0.0  ;;  %v6610_v55 = vadd.f32 %v6482_v46, %v704_v44 }
 0x178   :  { %v911_v62 = vadd.f32 %v910_v53, %v909_v56 }
 0x179   :  { %v912_v63 = vsel %vm9599_vm0, %v6610_v55, 0.0 }
 0x17a   :  { %v913_v44 = vadd.f32 %v912_v63, %v911_v62 }
 0x17c   :  { %v709_v52 = vpop.f32.mrb[52].mxu0 }
 0x17d   :  { %v711_v7 = vpop.f32.mrb[53].mxu0  ;;  %v6613_v60 = vadd.f32 %v6482_v46, %v709_v52 }
 0x17e   :  { %v712_v61 = vpop.f32.mrb[54].mxu0 }
 0x17f   :  { %v714_v12 = vpop.f32.mrb[55].mxu0  ;;  %v914_v7 = vsel %vm9599_vm0, %v6613_v60, 0.0  ;;  %v6620_v8 = vadd.f32 %v6482_v46, %v712_v61 }
 0x180   :  { %v915_v12 = vadd.f32 %v914_v7, %v913_v44 }
 0x181   :  { %v916_v13 = vsel %vm9599_vm0, %v6620_v8, 0.0 }
 0x182   :  { %v917_v61 = vadd.f32 %v916_v13, %v915_v12 }
 0x184   :  { %v717_v9 = vpop.f32.mrb[56].mxu0 }
 0x185   :  { %v719_v21 = vpop.f32.mrb[57].mxu0  ;;  %v6623_v10 = vadd.f32 %v6482_v46, %v717_v9 }
 0x186   :  { %v720_v24 = vpop.f32.mrb[58].mxu0 }
 0x187   :  { %v722_v28 = vpop.f32.mrb[59].mxu0  ;;  %v918_v19 = vsel %vm9599_vm0, %v6623_v10, 0.0  ;;  %v6630_v21 = vadd.f32 %v6482_v46, %v720_v24 }
 0x188   :  { %v919_v9 = vadd.f32 %v918_v19, %v917_v61 }
 0x189   :  { %v920_v14 = vsel %vm9599_vm0, %v6630_v21, 0.0 }
 0x18a   :  { %v921_v41 = vadd.f32 %v920_v14, %v919_v9 }
 0x18c   :  { %v725_v33 = vpop.f32.mrb[60].mxu0 }
 0x18d   :  { %v727_v38 = vpop.f32.mrb[61].mxu0  ;;  %v6633_v28 = vadd.f32 %v6482_v46, %v725_v33 }
 0x18e   :  { %v728_v26 = vpop.f32.mrb[62].mxu0 }
 0x18f   :  { %v730_v42 = vpop.f32.mrb[63].mxu0  ;;  %v922_v31 = vsel %vm9599_vm0, %v6633_v28, 0.0  ;;  %v6640_v35 = vadd.f32 %v6482_v46, %v728_v26 }
 0x190   :  { %v923_v33 = vadd.f32 %v922_v31, %v921_v41 }
 0x191   :  { %v924_v45 = vsel %vm9599_vm0, %v6640_v35, 0.0 }
 0x194   :  { %v733_v37 = vpop.f32.mrb[64].mxu0 }
 0x195   :  { %v735_v48 = vpop.f32.mrb[65].mxu0  ;;  %v6643_v42 = vadd.f32 %v6482_v46, %v733_v37 }
 0x196   :  { %v736_v51 = vpop.f32.mrb[66].mxu0  ;;  %v925_v48 = vadd.f32 %v924_v45, %v923_v33 }
 0x197   :  { %v738_v4 = vpop.f32.mrb[67].mxu0  ;;  %v926_v53 = vsel %vm9599_vm0, %v6643_v42, 0.0  ;;  %v6650_v56 = vadd.f32 %v6482_v46, %v736_v51 }
 0x198   :  { %v927_v4 = vadd.f32 %v926_v53, %v925_v48 }
 0x199   :  { %v928_v7 = vsel %vm9599_vm0, %v6650_v56, 0.0 }
 0x19a   :  { %v929_v51 = vadd.f32 %v928_v7, %v927_v4 }
 0x19c   :  { %v741_v52 = vpop.f32.mrb[68].mxu0 }
 0x19d   :  { %v743_v0 = vpop.f32.mrb[69].mxu0  ;;  %v6653_v62 = vadd.f32 %v6482_v46, %v741_v52 }
 0x19e   :  { %v744_v18 = vpop.f32.mrb[70].mxu0 }
 0x19f   :  { %v746_v25 = vpop.f32.mrb[71].mxu0  ;;  %v930_v12 = vsel %vm9599_vm0, %v6653_v62, 0.0  ;;  %v6660_v13 = vadd.f32 %v6482_v46, %v744_v18 }
 0x1a0   :  { %v931_v19 = vadd.f32 %v930_v12, %v929_v51 }
 0x1a1   :  { %v932_v25 = vsel %vm9599_vm0, %v6660_v13, 0.0 }
 0x1a2   :  { %v933_v18 = vadd.f32 %v932_v25, %v931_v19 }
 0x1a4   :  { %v749_v22 = vpop.f32.mrb[72].mxu0 }
 0x1a5   :  { %v751_v38 = vpop.f32.mrb[73].mxu0  ;;  %v6663_v0 = vadd.f32 %v6482_v46, %v749_v22 }
 0x1a6   :  { %v752_v24 = vpop.f32.mrb[74].mxu0 }
 0x1a7   :  { %v754_v34 = vpop.f32.mrb[75].mxu0  ;;  %v934_v14 = vsel %vm9599_vm0, %v6663_v0, 0.0  ;;  %v6670_v31 = vadd.f32 %v6482_v46, %v752_v24 }
 0x1a8   :  { %v935_v22 = vadd.f32 %v934_v14, %v933_v18 }
 0x1a9   :  { %9605 = vst [vmem:[#allocation10_spill] sm:$0xff] %v6670_v31  ;;  %v936_v34 = vsel %vm9599_vm0, %v6670_v31, 0.0 }
 0x1ac   :  { %v757_v26 = vpop.f32.mrb[76].mxu0 }
 0x1ad   :  { %v759_v63 = vpop.f32.mrb[77].mxu0  ;;  %v6673_v41 = vadd.f32 %v6482_v46, %v757_v26 }
 0x1ae   :  { %v760_v37 = vpop.f32.mrb[78].mxu0  ;;  %v937_v63 = vadd.f32 %v936_v34, %v935_v22 }
 0x1af   :  { %v762_v44 = vpop.f32.mrb[79].mxu0  ;;  %9606 = vst [vmem:[#allocation11_spill] sm:$0xff] %v6673_v41  ;;  %v938_v45 = vsel %vm9599_vm0, %v6673_v41, 0.0  ;;  %v6680_v53 = vadd.f32 %v6482_v46, %v760_v37 }
 0x1b0   :  { %v939_v26 = vadd.f32 %v938_v45, %v937_v63 }
 0x1b1   :  { %9607 = vst [vmem:[#allocation12_spill] sm:$0xff] %v6680_v53  ;;  %v940_v44 = vsel %vm9599_vm0, %v6680_v53, 0.0 }
 0x1b2   :  { %v941_v19 = vadd.f32 %v940_v44, %v939_v26 }
 0x1b4   :  { %v765_v52 = vpop.f32.mrb[80].mxu0 }
 0x1b5   :  { %v767_v61 = vpop.f32.mrb[81].mxu0  ;;  %v6683_v4 = vadd.f32 %v6482_v46, %v765_v52 }
 0x1b6   :  { %v768_v9 = vpop.f32.mrb[82].mxu0 }
 0x1b7   :  { %v770_v38 = vpop.f32.mrb[83].mxu0  ;;  %9608 = vst [vmem:[#allocation13_spill] sm:$0xff] %v6683_v4  ;;  %v942_v12 = vsel %vm9599_vm0, %v6683_v4, 0.0  ;;  %v6690_v51 = vadd.f32 %v6482_v46, %v768_v9 }
 0x1b8   :  { %v943_v14 = vadd.f32 %v942_v12, %v941_v19 }
 0x1b9   :  { %9609 = vst [vmem:[#allocation14_spill] sm:$0xff] %v6690_v51  ;;  %v944_v38 = vsel %vm9599_vm0, %v6690_v51, 0.0 }
 0x1ba   :  { %v945_v9 = vadd.f32 %v944_v38, %v943_v14 }
 0x1bc   :  { %v773_v33 = vpop.f32.mrb[84].mxu0 }
 0x1bd   :  { %v775_v48 = vpop.f32.mrb[85].mxu0  ;;  %v6693_v25 = vadd.f32 %v6482_v46, %v773_v33 }
 0x1be   :  { %v776_v24 = vpop.f32.mrb[86].mxu0 }
 0x1bf   :  { %v778_v7 = vpop.f32.mrb[87].mxu0  ;;  %9610 = vst [vmem:[#allocation15_spill] sm:$0xff] %v6693_v25  ;;  %v946_v22 = vsel %vm9599_vm0, %v6693_v25, 0.0  ;;  %v6700_v34 = vadd.f32 %v6482_v46, %v776_v24 }
 0x1c0   :  { %v947_v48 = vadd.f32 %v946_v22, %v945_v9 }
 0x1c1   :  { %9611 = vst [vmem:[#allocation16_spill] sm:$0xff] %v6700_v34  ;;  %v948_v63 = vsel %vm9599_vm0, %v6700_v34, 0.0 }
 0x1c2   :  { %v949_v24 = vadd.f32 %v948_v63, %v947_v48 }
 0x1c4   :  { %v781_v37 = vpop.f32.mrb[88].mxu0 }
 0x1c5   :  { %v783_v61 = vpop.f32.mrb[89].mxu0  ;;  %v6703_v45 = vadd.f32 %v6482_v46, %v781_v37 }
 0x1c6   :  { %v784_v52 = vpop.f32.mrb[90].mxu0 }
 0x1c7   :  { %v786_v18 = vpop.f32.mrb[91].mxu0  ;;  %9612 = vst [vmem:[#allocation17_spill] sm:$0xff] %v6703_v45  ;;  %v950_v44 = vsel %vm9599_vm0, %v6703_v45, 0.0  ;;  %v6710_v12 = vadd.f32 %v6482_v46, %v784_v52 }
 0x1c8   :  { %v951_v37 = vadd.f32 %v950_v44, %v949_v24 }
 0x1c9   :  { %9613 = vst [vmem:[#allocation18_spill] sm:$0xff] %v6710_v12  ;;  %v952_v14 = vsel %vm9599_vm0, %v6710_v12, 0.0 }
 0x1cc   :  { %v789_v33 = vpop.f32.mrb[92].mxu0 }
 0x1cd   :  { %v791_v7 = vpop.f32.mrb[93].mxu0  ;;  %v6713_v61 = vadd.f32 %v6482_v46, %v789_v33 }
 0x1ce   :  { %v792_v26 = vpop.f32.mrb[94].mxu0  ;;  %v953_v7 = vadd.f32 %v952_v14, %v951_v37 }
 0x1cf   :  { %v794_v19 = vpop.f32.mrb[95].mxu0  ;;  %9614 = vst [vmem:[#allocation19_spill] sm:$0xff] %v6713_v61  ;;  %v954_v18 = vsel %vm9599_vm0, %v6713_v61, 0.0  ;;  %v6720_v22 = vadd.f32 %v6482_v46, %v792_v26 }
 0x1d0   :  { %v955_v33 = vadd.f32 %v954_v18, %v953_v7 }
 0x1d1   :  { %9615 = vst [vmem:[#allocation20_spill] sm:$0xff] %v6720_v22  ;;  %v956_v63 = vsel %vm9599_vm0, %v6720_v22, 0.0 }
 0x1d2   :  { %v957_v1 = vadd.f32 %v956_v63, %v955_v33 }
 0x1d4   :  { %v797_v38 = vpop.f32.mrb[96].mxu0 }
 0x1d5   :  { %v799_v9 = vpop.f32.mrb[97].mxu0  ;;  %v6723_v19 = vadd.f32 %v6482_v46, %v797_v38 }
 0x1d6   :  { %v800_v52 = vpop.f32.mrb[98].mxu0 }
 0x1d7   :  { %9616 = vst [vmem:[#allocation21_spill] sm:$0xff] %v6723_v19  ;;  %v802_v48 = vpop.f32.mrb[99].mxu0  ;;  %v958_v44 = vsel %vm9599_vm0, %v6723_v19, 0.0  ;;  %v6730_v24 = vadd.f32 %v6482_v46, %v800_v52 }
 0x1d8   :  { %v959_v14 = vadd.f32 %v958_v44, %v957_v1 }
 0x1d9   :  { %9617 = vst [vmem:[#allocation22_spill] sm:$0xff] %v6730_v24  ;;  %v960_v18 = vsel %vm9599_vm0, %v6730_v24, 0.0 }
 0x1da   :  { %v961_v52 = vadd.f32 %v960_v18, %v959_v14 }
 0x1dc   :  { %v805_v26 = vpop.f32.mrb[100].mxu0 }
 0x1dd   :  { %v6733_v9 = vadd.f32 %v6482_v46, %v805_v26  ;;  %v807_v37 = vpop.f32.mrb[101].mxu0 }
 0x1de   :  { %v808_v38 = vpop.f32.mrb[102].mxu0 }
 0x1df   :  { %9618 = vst [vmem:[#allocation23_spill] sm:$0xff] %v6733_v9  ;;  %v810_v7 = vpop.f32.mrb[103].mxu0  ;;  %v962_v48 = vsel %vm9599_vm0, %v6733_v9, 0.0  ;;  %v6740_v19 = vadd.f32 %v6482_v46, %v808_v38 }
 0x1e0   :  { %v963_v22 = vadd.f32 %v962_v48, %v961_v52 }
 0x1e1   :  { %9619 = vst [vmem:[#allocation24_spill] sm:$0xff] %v6740_v19  ;;  %v964_v63 = vsel %vm9599_vm0, %v6740_v19, 0.0 }
 0x1e2   :  { %v965_v38 = vadd.f32 %v964_v63, %v963_v22 }
 0x1e4   :  { %v813_v33 = vpop.f32.mrb[104].mxu0 }
 0x1e5   :  { %v6745_v26 = vadd.f32 %v6482_v46, %v813_v33  ;;  %v815_v1 = vpop.f32.mrb[105].mxu0 }
 0x1e6   :  { %v816_v44 = vpop.f32.mrb[106].mxu0 }
 0x1e7   :  { %9620 = vst [vmem:[#allocation25_spill] sm:$0xff] %v6745_v26  ;;  %v966_v37 = vsel %vm9599_vm0, %v6745_v26, 0.0  ;;  %v6750_v7 = vadd.f32 %v6482_v46, %v816_v44  ;;  %v818_v9 = vpop.f32.mrb[107].mxu0 }
 0x1e8   :  { %v967_v24 = vadd.f32 %v966_v37, %v965_v38 }
 0x1e9   :  { %9621 = vst [vmem:[#allocation26_spill] sm:$0xff] %v6750_v7  ;;  %v968_v14 = vsel %vm9599_vm0, %v6750_v7, 0.0 }
 0x1ea   :  { %v969_v33 = vadd.f32 %v968_v14, %v967_v24 }
 0x1ec   :  { %v821_v18 = vpop.f32.mrb[108].mxu0 }
 0x1ed   :  { %v822_v48 = vadd.f32 %v6482_v46, %v821_v18  ;;  %v823_v52 = vpop.f32.mrb[109].mxu0 }
 0x1ee   :  { %v824_v19 = vpop.f32.mrb[110].mxu0 }
 0x1ef   :  { %v970_v1 = vsel %vm9599_vm0, %v822_v48, 0.0  ;;  %v825_v61 = vadd.f32 %v6482_v46, %v824_v19  ;;  %v826_v26 = vpop.f32.mrb[111].mxu0 }
 0x1f0   :  { %v971_v12 = vadd.f32 %v970_v1, %v969_v33 }
 0x1f1   :  { %v972_v44 = vsel %vm9599_vm0, %v825_v61, 0.0 }
 0x1f2   :  { %v973_v9 = vadd.f32 %v972_v44, %v971_v12 }
 0x1f4   :  { %v829_v22 = vpop.f32.mrb[112].mxu0 }
 0x1f5   :  { %v830_v63 = vadd.f32 %v6482_v46, %v829_v22  ;;  %v831_v37 = vpop.f32.mrb[113].mxu0 }
 0x1f6   :  { %v832_v38 = vpop.f32.mrb[114].mxu0 }
 0x1f7   :  { %v974_v7 = vsel %vm9599_vm0, %v830_v63, 0.0  ;;  %v833_v18 = vadd.f32 %v6482_v46, %v832_v38  ;;  %v834_v24 = vpop.f32.mrb[115].mxu0 }
 0x1f8   :  { %v975_v14 = vadd.f32 %v974_v7, %v973_v9 }
 0x1f9   :  { %v976_v52 = vsel %vm9599_vm0, %v833_v18, 0.0 }
 0x1fa   :  { %v977_v45 = vadd.f32 %v976_v52, %v975_v14 }
 0x1fc   :  { %v837_v19 = vpop.f32.mrb[116].mxu0 }
 0x1fd   :  { %v838_v26 = vadd.f32 %v6482_v46, %v837_v19  ;;  %v839_v33 = vpop.f32.mrb[117].mxu0 }
 0x1fe   :  { %v840_v1 = vpop.f32.mrb[118].mxu0 }
 0x1ff   :  { %v978_v12 = vsel %vm9599_vm0, %v838_v26, 0.0  ;;  %v841_v44 = vadd.f32 %v6482_v46, %v840_v1  ;;  %v842_v22 = vpop.f32.mrb[119].mxu0 }
 0x200   :  { %v979_v37 = vadd.f32 %v978_v12, %v977_v45 }
 0x201   :  { %v980_v34 = vsel %vm9599_vm0, %v841_v44, 0.0 }
 0x202   :  { %v981_v25 = vadd.f32 %v980_v34, %v979_v37 }
 0x204   :  { %v845_v38 = vpop.f32.mrb[120].mxu0 }
 0x205   :  { %v846_v7 = vadd.f32 %v6482_v46, %v845_v38  ;;  %v847_v9 = vpop.f32.mrb[121].mxu0 }
 0x206   :  { %v848_v24 = vpop.f32.mrb[122].mxu0 }
 0x207   :  { %v982_v14 = vsel %vm9599_vm0, %v846_v7, 0.0  ;;  %v849_v52 = vadd.f32 %v6482_v46, %v848_v24  ;;  %v850_v19 = vpop.f32.mrb[123].mxu0 }
 0x208   :  { %v983_v33 = vadd.f32 %v982_v14, %v981_v25 }
 0x209   :  { %v984_v51 = vsel %vm9599_vm0, %v849_v52, 0.0 }
 0x20a   :  { %v985_v4 = vadd.f32 %v984_v51, %v983_v33 }
 0x20c   :  { %v853_v1 = vpop.f32.mrb[124].mxu0 }
 0x20d   :  { %v854_v45 = vadd.f32 %v6482_v46, %v853_v1  ;;  %v855_v12 = vpop.f32.mrb[125].mxu0 }
 0x20e   :  { %v856_v22 = vpop.f32.mrb[126].mxu0 }
 0x20f   :  { %v986_v34 = vsel %vm9599_vm0, %v854_v45, 0.0  ;;  %v857_v37 = vadd.f32 %v6482_v46, %v856_v22  ;;  %v858_v38 = vpop.f32.mrb[127].mxu0 }
 0x210   :  { %v987_v9 = vadd.f32 %v986_v34, %v985_v4 }
 0x211   :  { %v988_v53 = vsel %vm9599_vm0, %v857_v37, 0.0 }
 0x212   :  { %v989_v41 = vadd.f32 %v988_v53, %v987_v9 }
 0x214   :  { %v990_v24 = vrot.slane %v989_v41, 4 }
 0x216   :  { %v991_v19 = vadd.f32 %v990_v24, %v989_v41 }
 0x218   :  { %v992_v25 = vrot.slane %v991_v19, 2 }
 0x21a   :  { %v993_v14 = vadd.f32 %v992_v25, %v991_v19 }
 0x21c   :  { %v994_v31 = vrot.slane %v993_v14, 1 }
 0x21e   :  { %v995_v51 = vadd.f32 %v994_v31, %v993_v14 }
 0x220   :  { %v6774_v33 = vmul.f32 0.001953125, %v995_v51 }
 0x222   :  { %v6777_v1 = vsub.f32 %v822_v48, %v6774_v33  ;;  %v6780_v12 = vsub.f32 %v825_v61, %v6774_v33  ;;  %v6783_v46 = vsub.f32 %v830_v63, %v6774_v33  ;;  %v6786_v4 = vsub.f32 %v833_v18, %v6774_v33 }
 0x223   :  { %v6789_v41 = vsub.f32 %v838_v26, %v6774_v33  ;;  %v6792_v53 = vsub.f32 %v841_v44, %v6774_v33  ;;  %v6795_v31 = vsub.f32 %v846_v7, %v6774_v33  ;;  %v6798_v48 = vsub.f32 %v849_v52, %v6774_v33 }
 0x224   :  { %9622 = vst [vmem:[#allocation27_spill] sm:$0xff] %v6783_v46  ;;  %v6801_v61 = vsub.f32 %v854_v45, %v6774_v33  ;;  %v6804_v63 = vsub.f32 %v857_v37, %v6774_v33  ;;  %v6808_v18 = vsub.f32 %v6488_v49, %v6774_v33  ;;  %v6812_v26 = vsub.f32 %v6485_v47, %v6774_v33 }
 0x225   :  { %9623 = vst [vmem:[#allocation28_spill] sm:$0xff] %v6795_v31  ;;  %9624 = vst [vmem:[#allocation29_spill] sm:$0xff] %v6798_v48  ;;  %v6816_v44 = vsub.f32 %v6491_v50, %v6774_v33  ;;  %v6820_v7 = vsub.f32 %v6500_v57, %v6774_v33  ;;  %v6828_v49 = vsub.f32 %v6503_v59, %v6774_v33 }
 0x226   :  { %9625 = vst [vmem:[#allocation30_spill] sm:$0xff] %v6801_v61  ;;  %v1061_v52 = vmul.f32 %v6808_v18, %v6808_v18  ;;  %v1062_v45 = vmul.f32 %v6812_v26, %v6812_v26  ;;  %v6834_v50 = vsub.f32 %v6510_v3, %v6774_v33  ;;  %v6842_v38 = vsub.f32 %v6513_v6, %v6774_v33 }
 0x227   :  { %v1063_v47 = vmul.f32 %v6816_v44, %v6816_v44  ;;  %v1064_v57 = vmul.f32 %v6820_v7, %v6820_v7  ;;  %v1065_v59 = vmul.f32 %v6828_v49, %v6828_v49  ;;  %v6849_v3 = vsub.f32 %v6520_v11, %v6774_v33 }
 0x228   :  { %v1125_v22 = vsel %vm9599_vm0, %v1061_v52, 0.0  ;;  %v1126_v34 = vsel %vm9599_vm0, %v1062_v45, 0.0  ;;  %v1066_v19 = vmul.f32 %v6834_v50, %v6834_v50  ;;  %v6856_v6 = vsub.f32 %v6523_v15, %v6774_v33 }
 0x229   :  { %v1127_v37 = vadd.f32 %v1126_v34, %v1125_v22  ;;  %v1128_v9 = vsel %vm9599_vm0, %v1063_v47, 0.0  ;;  %v1130_v25 = vsel %vm9599_vm0, %v1064_v57, 0.0  ;;  %v1067_v51 = vmul.f32 %v6842_v38, %v6842_v38 }
 0x22a   :  { %v1132_v52 = vsel %vm9599_vm0, %v1065_v59, 0.0  ;;  %v6863_v11 = vsub.f32 %v6530_v20, %v6774_v33  ;;  %v1068_v47 = vmul.f32 %v6849_v3, %v6849_v3  ;;  %v1134_v57 = vsel %vm9599_vm0, %v1066_v19, 0.0 }
 0x22b   :  { %v1129_v24 = vadd.f32 %v1128_v9, %v1127_v37  ;;  %v6870_v15 = vsub.f32 %v6533_v23, %v6774_v33  ;;  %v1069_v34 = vmul.f32 %v6856_v6, %v6856_v6  ;;  %v1136_v37 = vsel %vm9599_vm0, %v1067_v51, 0.0 }
 0x22c   :  { %v6877_v20 = vsub.f32 %v6540_v30, %v6774_v33  ;;  %v1070_v9 = vmul.f32 %v6863_v11, %v6863_v11  ;;  %v6884_v23 = vsub.f32 %v6543_v32, %v6774_v33  ;;  %v6891_v30 = vsub.f32 %v6550_v39, %v6774_v33 }
 0x22d   :  { %v1131_v14 = vadd.f32 %v1130_v25, %v1129_v24  ;;  %v1138_v24 = vsel %vm9599_vm0, %v1068_v47, 0.0  ;;  %v1071_v25 = vmul.f32 %v6870_v15, %v6870_v15  ;;  %v6898_v32 = vsub.f32 %v6553_v43, %v6774_v33 }
 0x22e   :  { %v6905_v39 = vsub.f32 %v6560_v54, %v6774_v33  ;;  %v6912_v43 = vsub.f32 %v6563_v58, %v6774_v33  ;;  %v6919_v54 = vsub.f32 %v6570_v2, %v6774_v33  ;;  %v6926_v58 = vsub.f32 %v6573_v5, %v6774_v33 }
 0x22f   :  { %v1133_v45 = vadd.f32 %v1132_v52, %v1131_v14  ;;  %v1140_v14 = vsel %vm9599_vm0, %v1069_v34, 0.0  ;;  %v1072_v52 = vmul.f32 %v6877_v20, %v6877_v20  ;;  %v6933_v2 = vsub.f32 %v6580_v16, %v6774_v33 }
 0x230   :  { %v6940_v5 = vsub.f32 %v6583_v17, %v6774_v33  ;;  %v6947_v16 = vsub.f32 %v6590_v27, %v6774_v33  ;;  %v6954_v17 = vsub.f32 %v6593_v29, %v6774_v33  ;;  %v6961_v27 = vsub.f32 %v6600_v36, %v6774_v33 }
 0x231   :  { %v1135_v22 = vadd.f32 %v1134_v57, %v1133_v45  ;;  %v1142_v45 = vsel %vm9599_vm0, %v1070_v9, 0.0  ;;  %v1073_v57 = vmul.f32 %v6884_v23, %v6884_v23  ;;  %v6968_v29 = vsub.f32 %v6603_v40, %v6774_v33 }
 0x232   :  { %v6975_v36 = vsub.f32 %v6610_v55, %v6774_v33  ;;  %v6982_v40 = vsub.f32 %v6613_v60, %v6774_v33  ;;  %v6989_v55 = vsub.f32 %v6620_v8, %v6774_v33  ;;  %v6996_v60 = vsub.f32 %v6623_v10, %v6774_v33 }
 0x233   :  { %v1137_v59 = vadd.f32 %v1136_v37, %v1135_v22  ;;  %v1144_v22 = vsel %vm9599_vm0, %v1071_v25, 0.0  ;;  %v1074_v37 = vmul.f32 %v6891_v30, %v6891_v30  ;;  %v7003_v8 = vsub.f32 %v6630_v21, %v6774_v33 }
 0x234   :  { %v7010_v10 = vsub.f32 %v6633_v28, %v6774_v33  ;;  %v7017_v21 = vsub.f32 %v6640_v35, %v6774_v33  ;;  %v7024_v28 = vsub.f32 %v6643_v42, %v6774_v33  ;;  %v7031_v35 = vsub.f32 %v6650_v56, %v6774_v33 }
 0x235   :  { %v1139_v19 = vadd.f32 %v1138_v24, %v1137_v59  ;;  %v1146_v59 = vsel %vm9599_vm0, %v1072_v52, 0.0  ;;  %v1075_v24 = vmul.f32 %v6898_v32, %v6898_v32  ;;  %v7038_v42 = vsub.f32 %v6653_v62, %v6774_v33 }
 0x236   :  { %v7045_v56 = vsub.f32 %v6660_v13, %v6774_v33  ;;  %v7052_v62 = vsub.f32 %v6663_v0, %v6774_v33 }
 0x237   :  { %v1141_v51 = vadd.f32 %v1140_v14, %v1139_v19  ;;  %v1148_v19 = vsel %vm9599_vm0, %v1073_v57, 0.0  ;;  %v1076_v14 = vmul.f32 %v6905_v39, %v6905_v39 }
 0x239   :  { %v1143_v47 = vadd.f32 %v1142_v45, %v1141_v51  ;;  %v1150_v51 = vsel %vm9599_vm0, %v1074_v37, 0.0  ;;  %v1077_v45 = vmul.f32 %v6912_v43, %v6912_v43 }
 0x23b   :  { %v1145_v34 = vadd.f32 %v1144_v22, %v1143_v47  ;;  %v1152_v47 = vsel %vm9599_vm0, %v1075_v24, 0.0  ;;  %v1078_v22 = vmul.f32 %v6919_v54, %v6919_v54 }
 0x23d   :  { %v1147_v9 = vadd.f32 %v1146_v59, %v1145_v34  ;;  %v1154_v34 = vsel %vm9599_vm0, %v1076_v14, 0.0  ;;  %v1079_v59 = vmul.f32 %v6926_v58, %v6926_v58 }
 0x23f   :  { %v1149_v25 = vadd.f32 %v1148_v19, %v1147_v9  ;;  %v1156_v9 = vsel %vm9599_vm0, %v1077_v45, 0.0  ;;  %v1080_v19 = vmul.f32 %v6933_v2, %v6933_v2 }
 0x241   :  { %v1151_v52 = vadd.f32 %v1150_v51, %v1149_v25  ;;  %v1158_v25 = vsel %vm9599_vm0, %v1078_v22, 0.0  ;;  %v1081_v51 = vmul.f32 %v6940_v5, %v6940_v5 }
 0x243   :  { %v1153_v57 = vadd.f32 %v1152_v47, %v1151_v52  ;;  %v1160_v52 = vsel %vm9599_vm0, %v1079_v59, 0.0  ;;  %v1082_v47 = vmul.f32 %v6947_v16, %v6947_v16 }
 0x245   :  { %v1155_v37 = vadd.f32 %v1154_v34, %v1153_v57  ;;  %v1162_v57 = vsel %vm9599_vm0, %v1080_v19, 0.0  ;;  %v1083_v34 = vmul.f32 %v6954_v17, %v6954_v17 }
 0x247   :  { %v1157_v24 = vadd.f32 %v1156_v9, %v1155_v37  ;;  %v1164_v37 = vsel %vm9599_vm0, %v1081_v51, 0.0  ;;  %v1084_v9 = vmul.f32 %v6961_v27, %v6961_v27 }
 0x249   :  { %v1159_v14 = vadd.f32 %v1158_v25, %v1157_v24  ;;  %v1166_v24 = vsel %vm9599_vm0, %v1082_v47, 0.0  ;;  %v1085_v25 = vmul.f32 %v6968_v29, %v6968_v29 }
 0x24b   :  { %v1161_v45 = vadd.f32 %v1160_v52, %v1159_v14  ;;  %v1168_v14 = vsel %vm9599_vm0, %v1083_v34, 0.0  ;;  %v1086_v52 = vmul.f32 %v6975_v36, %v6975_v36 }
 0x24d   :  { %v1163_v22 = vadd.f32 %v1162_v57, %v1161_v45  ;;  %v1170_v45 = vsel %vm9599_vm0, %v1084_v9, 0.0  ;;  %v1087_v57 = vmul.f32 %v6982_v40, %v6982_v40 }
 0x24f   :  { %v1165_v59 = vadd.f32 %v1164_v37, %v1163_v22  ;;  %v1172_v22 = vsel %vm9599_vm0, %v1085_v25, 0.0  ;;  %v1088_v37 = vmul.f32 %v6989_v55, %v6989_v55 }
 0x251   :  { %v1167_v19 = vadd.f32 %v1166_v24, %v1165_v59  ;;  %v1174_v59 = vsel %vm9599_vm0, %v1086_v52, 0.0  ;;  %v1089_v24 = vmul.f32 %v6996_v60, %v6996_v60 }
 0x253   :  { %v1169_v51 = vadd.f32 %v1168_v14, %v1167_v19  ;;  %v1176_v19 = vsel %vm9599_vm0, %v1087_v57, 0.0  ;;  %v1090_v14 = vmul.f32 %v7003_v8, %v7003_v8 }
 0x255   :  { %v1171_v47 = vadd.f32 %v1170_v45, %v1169_v51  ;;  %v1178_v51 = vsel %vm9599_vm0, %v1088_v37, 0.0  ;;  %v1091_v45 = vmul.f32 %v7010_v10, %v7010_v10 }
 0x257   :  { %v1173_v34 = vadd.f32 %v1172_v22, %v1171_v47  ;;  %v1180_v47 = vsel %vm9599_vm0, %v1089_v24, 0.0  ;;  %v1092_v22 = vmul.f32 %v7017_v21, %v7017_v21 }
 0x259   :  { %v1175_v9 = vadd.f32 %v1174_v59, %v1173_v34  ;;  %v1182_v34 = vsel %vm9599_vm0, %v1090_v14, 0.0  ;;  %v1093_v59 = vmul.f32 %v7024_v28, %v7024_v28 }
 0x25b   :  { %v1177_v25 = vadd.f32 %v1176_v19, %v1175_v9  ;;  %v1184_v9 = vsel %vm9599_vm0, %v1091_v45, 0.0  ;;  %v1094_v19 = vmul.f32 %v7031_v35, %v7031_v35 }
 0x25d   :  { %v1179_v52 = vadd.f32 %v1178_v51, %v1177_v25  ;;  %v1186_v25 = vsel %vm9599_vm0, %v1092_v22, 0.0  ;;  %v1095_v51 = vmul.f32 %v7038_v42, %v7038_v42  ;;  %v1190_v22 = vsel %vm9599_vm0, %v1094_v19, 0.0 }
 0x25f   :  { %v1181_v57 = vadd.f32 %v1180_v47, %v1179_v52  ;;  %v1188_v52 = vsel %vm9599_vm0, %v1093_v59, 0.0  ;;  %v9626_v47 = vld [vmem:[#allocation10_spill] sm:$0xff]  ;;  %v1192_v59 = vsel %vm9599_vm0, %v1095_v51, 0.0 }
 0x260   :  { %v7059_v13 = vsub.f32 %v9626_v47, %v6774_v33  ;;  %v9632_v47 = vld [vmem:[#allocation13_spill] sm:$0xff] }
 0x261   :  { %v1183_v37 = vadd.f32 %v1182_v34, %v1181_v57  ;;  %v1096_v57 = vmul.f32 %v7045_v56, %v7045_v56 }
 0x262   :  { %9627 = vst [vmem:[#allocation10_spill] sm:$0xff] %v7059_v13 }
 0x263   :  { %v1185_v24 = vadd.f32 %v1184_v9, %v1183_v37  ;;  %v9628_v37 = vld [vmem:[#allocation11_spill] sm:$0xff]  ;;  %v1097_v9 = vmul.f32 %v7052_v62, %v7052_v62  ;;  %v1194_v19 = vsel %vm9599_vm0, %v1096_v57, 0.0 }
 0x264   :  { %v7066_v0 = vsub.f32 %v9628_v37, %v6774_v33 }
 0x265   :  { %v1187_v14 = vadd.f32 %v1186_v25, %v1185_v24  ;;  %v9630_v25 = vld [vmem:[#allocation12_spill] sm:$0xff]  ;;  %v1196_v51 = vsel %vm9599_vm0, %v1097_v9, 0.0 }
 0x266   :  { %9629 = vst [vmem:[#allocation11_spill] sm:$0xff] %v7066_v0  ;;  %v1099_v37 = vmul.f32 %v7066_v0, %v7066_v0 }
 0x267   :  { %v1189_v45 = vadd.f32 %v1188_v52, %v1187_v14  ;;  %v7073_v14 = vsub.f32 %v9630_v25, %v6774_v33  ;;  %v1098_v52 = vmul.f32 %v7059_v13, %v7059_v13 }
 0x268   :  { %v1200_v9 = vsel %vm9599_vm0, %v1099_v37, 0.0 }
 0x269   :  { %v1191_v34 = vadd.f32 %v1190_v22, %v1189_v45  ;;  %9631 = vst [vmem:[#allocation12_spill] sm:$0xff] %v7073_v14  ;;  %v7080_v22 = vsub.f32 %v9632_v47, %v6774_v33  ;;  %v1100_v13 = vmul.f32 %v7073_v14, %v7073_v14  ;;  %v1198_v57 = vsel %vm9599_vm0, %v1098_v52, 0.0 }
 0x26b   :  { %v1193_v24 = vadd.f32 %v1192_v59, %v1191_v34  ;;  %9633 = vst [vmem:[#allocation13_spill] sm:$0xff] %v7080_v22  ;;  %v9634_v59 = vld [vmem:[#allocation14_spill] sm:$0xff]  ;;  %v1101_v0 = vmul.f32 %v7080_v22, %v7080_v22  ;;  %v1202_v52 = vsel %vm9599_vm0, %v1100_v13, 0.0 }
 0x26c   :  { %v7087_v25 = vsub.f32 %v9634_v59, %v6774_v33 }
 0x26d   :  { %v1195_v45 = vadd.f32 %v1194_v19, %v1193_v24  ;;  %v9636_v19 = vld [vmem:[#allocation15_spill] sm:$0xff]  ;;  %v1204_v37 = vsel %vm9599_vm0, %v1101_v0, 0.0 }
 0x26e   :  { %9635 = vst [vmem:[#allocation14_spill] sm:$0xff] %v7087_v25  ;;  %v7094_v47 = vsub.f32 %v9636_v19, %v6774_v33  ;;  %v1102_v14 = vmul.f32 %v7087_v25, %v7087_v25 }
 0x26f   :  { %v1197_v34 = vadd.f32 %v1196_v51, %v1195_v45  ;;  %v9638_v51 = vld [vmem:[#allocation16_spill] sm:$0xff] }
 0x270   :  { %9637 = vst [vmem:[#allocation15_spill] sm:$0xff] %v7094_v47  ;;  %v7101_v59 = vsub.f32 %v9638_v51, %v6774_v33  ;;  %v1103_v22 = vmul.f32 %v7094_v47, %v7094_v47  ;;  %v1206_v13 = vsel %vm9599_vm0, %v1102_v14, 0.0 }
 0x271   :  { %v1199_v24 = vadd.f32 %v1198_v57, %v1197_v34  ;;  %v9640_v57 = vld [vmem:[#allocation17_spill] sm:$0xff] }
 0x272   :  { %9639 = vst [vmem:[#allocation16_spill] sm:$0xff] %v7101_v59  ;;  %v7108_v19 = vsub.f32 %v9640_v57, %v6774_v33  ;;  %v1104_v25 = vmul.f32 %v7101_v59, %v7101_v59  ;;  %v1208_v0 = vsel %vm9599_vm0, %v1103_v22, 0.0 }
 0x273   :  { %v1201_v45 = vadd.f32 %v1200_v9, %v1199_v24  ;;  %v9642_v9 = vld [vmem:[#allocation18_spill] sm:$0xff] }
 0x274   :  { %9641 = vst [vmem:[#allocation17_spill] sm:$0xff] %v7108_v19  ;;  %v7115_v51 = vsub.f32 %v9642_v9, %v6774_v33  ;;  %v1105_v47 = vmul.f32 %v7108_v19, %v7108_v19  ;;  %v1210_v14 = vsel %vm9599_vm0, %v1104_v25, 0.0 }
 0x275   :  { %v1203_v34 = vadd.f32 %v1202_v52, %v1201_v45  ;;  %v9644_v52 = vld [vmem:[#allocation19_spill] sm:$0xff] }
 0x276   :  { %9643 = vst [vmem:[#allocation18_spill] sm:$0xff] %v7115_v51  ;;  %v7122_v57 = vsub.f32 %v9644_v52, %v6774_v33  ;;  %v1106_v59 = vmul.f32 %v7115_v51, %v7115_v51  ;;  %v1212_v22 = vsel %vm9599_vm0, %v1105_v47, 0.0 }
 0x277   :  { %v1205_v24 = vadd.f32 %v1204_v37, %v1203_v34  ;;  %v9646_v37 = vld [vmem:[#allocation20_spill] sm:$0xff] }
 0x278   :  { %9645 = vst [vmem:[#allocation19_spill] sm:$0xff] %v7122_v57  ;;  %v7129_v9 = vsub.f32 %v9646_v37, %v6774_v33  ;;  %v1107_v19 = vmul.f32 %v7122_v57, %v7122_v57  ;;  %v1214_v25 = vsel %vm9599_vm0, %v1106_v59, 0.0 }
 0x279   :  { %v1207_v45 = vadd.f32 %v1206_v13, %v1205_v24  ;;  %v9648_v13 = vld [vmem:[#allocation21_spill] sm:$0xff] }
 0x27a   :  { %9647 = vst [vmem:[#allocation20_spill] sm:$0xff] %v7129_v9  ;;  %v7136_v52 = vsub.f32 %v9648_v13, %v6774_v33  ;;  %v1108_v51 = vmul.f32 %v7129_v9, %v7129_v9  ;;  %v1216_v47 = vsel %vm9599_vm0, %v1107_v19, 0.0 }
 0x27b   :  { %v1209_v34 = vadd.f32 %v1208_v0, %v1207_v45  ;;  %v9650_v0 = vld [vmem:[#allocation22_spill] sm:$0xff] }
 0x27c   :  { %9649 = vst [vmem:[#allocation21_spill] sm:$0xff] %v7136_v52  ;;  %v7143_v37 = vsub.f32 %v9650_v0, %v6774_v33  ;;  %v1109_v57 = vmul.f32 %v7136_v52, %v7136_v52  ;;  %v1218_v59 = vsel %vm9599_vm0, %v1108_v51, 0.0 }
 0x27d   :  { %v1211_v24 = vadd.f32 %v1210_v14, %v1209_v34  ;;  %v9652_v14 = vld [vmem:[#allocation23_spill] sm:$0xff] }
 0x27e   :  { %9651 = vst [vmem:[#allocation22_spill] sm:$0xff] %v7143_v37  ;;  %v7150_v13 = vsub.f32 %v9652_v14, %v6774_v33  ;;  %v1110_v9 = vmul.f32 %v7143_v37, %v7143_v37  ;;  %v1220_v19 = vsel %vm9599_vm0, %v1109_v57, 0.0  ;;  %v5856_v57 = vld [vmem:[%s9543_s5 + $0x48] sm:$0xff]  }
 0x27f   :  { %v1213_v45 = vadd.f32 %v1212_v22, %v1211_v24  ;;  %v9653_v22 = vld [vmem:[#allocation24_spill] sm:$0xff] }
 0x280   :  { %v7157_v0 = vsub.f32 %v9653_v22, %v6774_v33  ;;  %v1111_v52 = vmul.f32 %v7150_v13, %v7150_v13  ;;  %v1222_v51 = vsel %vm9599_vm0, %v1110_v9, 0.0 }
 0x281   :  { %v1215_v34 = vadd.f32 %v1214_v25, %v1213_v45  ;;  %v9655_v25 = vld [vmem:[#allocation25_spill] sm:$0xff] }
 0x282   :  { %9654 = vst [vmem:[#allocation23_spill] sm:$0xff] %v7157_v0  ;;  %v7164_v14 = vsub.f32 %v9655_v25, %v6774_v33  ;;  %v1112_v37 = vmul.f32 %v7157_v0, %v7157_v0  ;;  %v1224_v25 = vsel %vm9599_vm0, %v1111_v52, 0.0  ;;  %v1115_v52 = vmul.f32 %v6777_v1, %v6777_v1 }
 0x283   :  { %v1217_v24 = vadd.f32 %v1216_v47, %v1215_v34  ;;  %v9656_v47 = vld [vmem:[#allocation26_spill] sm:$0xff] }
 0x284   :  { %v7171_v22 = vsub.f32 %v9656_v47, %v6774_v33  ;;  %v1113_v33 = vmul.f32 %v7164_v14, %v7164_v14  ;;  %v1226_v0 = vsel %vm9599_vm0, %v1112_v37, 0.0  ;;  %v1116_v37 = vmul.f32 %v6780_v12, %v6780_v12 }
 0x285   :  { %v1219_v45 = vadd.f32 %v1218_v59, %v1217_v24  ;;  %v5854_v24 = vld [vmem:[%s9543_s5 + $0x40] sm:$0xff]  }
 0x286   :  { %v5855_v59 = vld [vmem:[%s9543_s5] sm:$0xff]   ;;  %5466 = vmatprep.subr.bf16.mxu0 %v5854_v24  ;;  %v1114_v47 = vmul.f32 %v7171_v22, %v7171_v22  ;;  %v1228_v24 = vsel %vm9599_vm0, %v1113_v33, 0.0  ;;  %v1117_v33 = vmul.f32 %v6783_v46, %v6783_v46 }
 0x287   :  { %v1221_v34 = vadd.f32 %v1220_v19, %v1219_v45  ;;  %5467 = vmatpush3.bf16.msra.mxu0 %v5855_v59  ;;  %v5857_v19 = vld [vmem:[%s9543_s5 + $0x8] sm:$0xff]  }
 0x288   :  { %5468 = vmatprep.subr.bf16.mxu0 %v5856_v57  ;;  %v1230_v57 = vsel %vm9599_vm0, %v1114_v47, 0.0  ;;  %v1118_v47 = vmul.f32 %v6786_v4, %v6786_v4 }
 0x289   :  { %v1223_v45 = vadd.f32 %v1222_v51, %v1221_v34  ;;  %v5858_v34 = vld [vmem:[%s9543_s5 + $0x50] sm:$0xff]  }
 0x28b   :  { %v1225_v9 = vadd.f32 %v1224_v25, %v1223_v45  ;;  %5469 = vmatpush3.bf16.msra.mxu0 %v5857_v19  ;;  %v5859_v45 = vld [vmem:[%s9543_s5 + $0x10] sm:$0xff]  }
 0x28c   :  { %5470 = vmatprep.subr.bf16.mxu0 %v5858_v34  ;;  %v1234_v34 = vsel %vm9599_vm0, %v1116_v37, 0.0 }
 0x28d   :  { %v1227_v51 = vadd.f32 %v1226_v0, %v1225_v9  ;;  %v5860_v0 = vld [vmem:[%s9543_s5 + $0x58] sm:$0xff]   ;;  %v1232_v9 = vsel %vm9599_vm0, %v1115_v52, 0.0  ;;  %v1120_v52 = vmul.f32 %v6792_v53, %v6792_v53 }
 0x28f   :  { %v1229_v59 = vadd.f32 %v1228_v24, %v1227_v51  ;;  %5471 = vmatpush3.bf16.msra.mxu0 %v5859_v45  ;;  %v5861_v51 = vld [vmem:[%s9543_s5 + $0x18] sm:$0xff]   ;;  %v1238_v45 = vsel %vm9599_vm0, %v1118_v47, 0.0  ;;  %v1124_v47 = vmul.f32 %v6804_v63, %v6804_v63 }
 0x290   :  { %5472 = vmatprep.subr.bf16.mxu0 %v5860_v0 }
 0x291   :  { %v1231_v25 = vadd.f32 %v1230_v57, %v1229_v59  ;;  %v1119_v59 = vmul.f32 %v6789_v41, %v6789_v41  ;;  %v1236_v57 = vsel %vm9599_vm0, %v1117_v33, 0.0 }
 0x293   :  { %v1233_v19 = vadd.f32 %v1232_v9, %v1231_v25  ;;  %5473 = vmatpush3.bf16.msra.mxu0 %v5861_v51  ;;  %v1121_v9 = vmul.f32 %v6795_v31, %v6795_v31  ;;  %v1240_v37 = vsel %vm9599_vm0, %v1119_v59, 0.0  ;;  %v1123_v51 = vmul.f32 %v6801_v61, %v6801_v61 }
 0x295   :  { %v1235_v24 = vadd.f32 %v1234_v34, %v1233_v19  ;;  %v1122_v19 = vmul.f32 %v6798_v48, %v6798_v48  ;;  %v1242_v34 = vsel %vm9599_vm0, %v1120_v52, 0.0  ;;  %v1248_v52 = vsel %vm9599_vm0, %v1123_v51, 0.0 }
 0x297   :  { %v1237_v46 = vadd.f32 %v1236_v57, %v1235_v24  ;;  %v1244_v24 = vsel %vm9599_vm0, %v1121_v9, 0.0  ;;  %v1246_v59 = vsel %vm9599_vm0, %v1122_v19, 0.0  ;;  %v1250_v9 = vsel %vm9599_vm0, %v1124_v47, 0.0  ;;  %v5864_v47 = vld [vmem:[%s9543_s5 + $0x68] sm:$0xff]  }
 0x299   :  { %v1239_v25 = vadd.f32 %v1238_v45, %v1237_v46  ;;  %v5862_v46 = vld [vmem:[%s9543_s5 + $0x60] sm:$0xff]  }
 0x29a   :  { %5474 = vmatprep.subr.bf16.mxu0 %v5862_v46  ;;  %v1609_v46 = vlaneseq }
 0x29b   :  { %v1241_v0 = vadd.f32 %v1240_v37, %v1239_v25  ;;  %v5863_v37 = vld [vmem:[%s9543_s5 + $0x20] sm:$0xff]  }
 0x29c   :  { %5475 = vmatpush3.bf16.msra.mxu0 %v5863_v37  ;;  %v7244_v51 = vshrl.u32 %v1609_v46, 7  ;;  %v5868_v46 = vld [vmem:[%s9543_s5 + $0xc0] sm:$0xff]  }
 0x29d   :  { %v1243_v33 = vadd.f32 %v1242_v34, %v1241_v0  ;;  %5476 = vmatprep.subr.bf16.mxu0 %v5864_v47  ;;  %v5869_v47 = vld [vmem:[%s9543_s5 + $0x80] sm:$0xff]   ;;  %5530 = vmatprep.subr.bf16.mxu1 %v5868_v46  ;;  %v5872_v46 = vld [vmem:[%s9543_s5 + $0xd0] sm:$0xff]  }
 0x29e   :  { %9657 = vst [vmem:[#allocation24_spill] sm:$0xff] %v7244_v51  ;;  %v7268_v37 = vadd.s32 32, %v7244_v51  ;;  %5531 = vmatpush3.bf16.msra.mxu1 %v5869_v47  ;;  %v9663_v47 = vld [vmem:[#allocation10_spill] sm:$0xff] }
 0x29f   :  { %v1245_v57 = vadd.f32 %v1244_v24, %v1243_v33 }
 0x2a0   :  { %9661 = vst [vmem:[#allocation32_spill] sm:$0xff] %v7268_v37  ;;  %v9669_v37 = vld [vmem:[#allocation15_spill] sm:$0xff] }
 0x2a1   :  { %v1247_v45 = vadd.f32 %v1246_v59, %v1245_v57  ;;  %v7247_v59 = vadd.s32 8, %v7244_v51 }
 0x2a3   :  { %v1249_v25 = vadd.f32 %v1248_v52, %v1247_v45  ;;  %9658 = vst [vmem:[#allocation25_spill] sm:$0xff] %v7247_v59  ;;  %v7253_v45 = vadd.s32 16, %v7244_v51  ;;  %v9667_v59 = vld [vmem:[#allocation14_spill] sm:$0xff] }
 0x2a5   :  { %v1251_v0 = vadd.f32 %v1250_v9, %v1249_v25  ;;  %9659 = vst [vmem:[#allocation26_spill] sm:$0xff] %v7253_v45  ;;  %v7265_v25 = vadd.s32 24, %v7244_v51  ;;  %v9671_v51 = vld [vmem:[#allocation16_spill] sm:$0xff]  ;;  %v9674_v45 = vld [vmem:[#allocation18_spill] sm:$0xff] }
 0x2a7   :  { %v1252_v34 = vrot.slane %v1251_v0, 4  ;;  %9660 = vst [vmem:[#allocation31_spill] sm:$0xff] %v7265_v25  ;;  %v9673_v25 = vld [vmem:[#allocation17_spill] sm:$0xff] }
 0x2a9   :  { %v1253_v33 = vadd.f32 %v1252_v34, %v1251_v0 }
 0x2ab   :  { %v1254_v24 = vrot.slane %v1253_v33, 2 }
 0x2ad   :  { %v1255_v61 = vadd.f32 %v1254_v24, %v1253_v33  ;;  %v7287_v24 = vld [vmem:[%s9542_s4] ss:$0 sm:$0xff] }
 0x2ae   :  { %9662 = vst [vmem:[#allocation33_spill] sm:$0xff] %v7287_v24 }
 0x2af   :  { %v1256_v48 = vrot.slane %v1255_v61, 1 }
 0x2b1   :  { %v1257_v31 = vadd.f32 %v1256_v48, %v1255_v61  ;;  %v5867_v61 = vld [vmem:[%s9543_s5 + $0x30] sm:$0xff]  }
 0x2b3   :  { %v1258_v19 = vmul.f32 0.001953125, %v1257_v31  ;;  %v7260_v31 = vld [vmem:[%s9541_s3] ss:$0 sm:$0xff] }
 0x2b5   :  { %v1259_v57 = vadd.f32 1e-05, %v1258_v19  ;;  %v5865_v19 = vld [vmem:[%s9543_s5 + $0x28] sm:$0xff]  }
 0x2b6   :  { %5477 = vmatpush3.bf16.msra.mxu0 %v5865_v19 }
 0x2b7   :  { %6106 = vrsqrt.f32 %v1259_v57 }
 0x2c1   :  { %v7255_v52 = vpop.eup %6106 }
 0x2c2   :  { %v1324_v9 = vmul.f32 %v7255_v52, %v6804_v63  ;;  %v7274_v0 = vmul.f32 %v7255_v52, %v6808_v18  ;;  %v7278_v34 = vmul.f32 %v7255_v52, %v6812_v26  ;;  %v7282_v33 = vmul.f32 %v7255_v52, %v6816_v44 }
 0x2c3   :  { %v7291_v63 = vmul.f32 %v7255_v52, %v6820_v7  ;;  %v7295_v18 = vmul.f32 %v7255_v52, %v6828_v49  ;;  %v7299_v26 = vmul.f32 %v7255_v52, %v6834_v50  ;;  %v7303_v44 = vmul.f32 %v7255_v52, %v6842_v38  ;;  %v5866_v7 = vld [vmem:[%s9543_s5 + $0x70] sm:$0xff]  }
 0x2c4   :  { %v1394_v57 = vmul.f32 %v7260_v31, %v1324_v9  ;;  %v7314_v49 = vmul.f32 %v7255_v52, %v6849_v3  ;;  %v7318_v50 = vmul.f32 %v7255_v52, %v6856_v6  ;;  %v7322_v38 = vmul.f32 %v7255_v52, %v6863_v11  ;;  %5478 = vmatprep.subr.bf16.mxu0 %v5866_v7 }
 0x2c5   :  { %v7332_v3 = vmul.f32 %v7255_v52, %v6870_v15  ;;  %v7336_v6 = vmul.f32 %v7255_v52, %v6877_v20  ;;  %v7340_v11 = vmul.f32 %v7255_v52, %v6884_v23  ;;  %v7344_v9 = vmul.f32 %v7255_v52, %v6891_v30  ;;  %v5870_v30 = vld [vmem:[%s9543_s5 + $0xc8] sm:$0xff]   ;;  %5479 = vmatpush3.bf16.msra.mxu0 %v5867_v61 }
 0x2c6   :  { %v1464_v15 = vadd.f32 %v7287_v24, %v1394_v57  ;;  %v7352_v48 = vmul.f32 %v7255_v52, %v6898_v32  ;;  %v7356_v20 = vmul.f32 %v7255_v52, %v6905_v39  ;;  %v7360_v23 = vmul.f32 %v7255_v52, %v6912_v43  ;;  %5532 = vmatprep.subr.bf16.mxu1 %v5870_v30  ;;  %v9665_v30 = vld [vmem:[#allocation12_spill] sm:$0xff]  ;;  %v9676_v24 = vld [vmem:[#allocation19_spill] sm:$0xff] }
 0x2c7   :  { %v7367_v19 = vmul.f32 %v7255_v52, %v6919_v54  ;;  %v7371_v32 = vmul.f32 %v7255_v52, %v6926_v58  ;;  %v7375_v39 = vmul.f32 %v7255_v52, %v6933_v2  ;;  %v7379_v43 = vmul.f32 %v7255_v52, %v6940_v5  ;;  %v5871_v2 = vld [vmem:[%s9543_s5 + $0x88] sm:$0xff]  }
 0x2c8   :  { %v1528_v7 = vmax.f32 %v1464_v15, 0.0  ;;  %v7383_v57 = vmul.f32 %v7255_v52, %v6947_v16  ;;  %v7387_v54 = vmul.f32 %v7255_v52, %v6954_v17  ;;  %v7391_v58 = vmul.f32 %v7255_v52, %v6961_v27  ;;  %v9664_v15 = vld [vmem:[#allocation11_spill] sm:$0xff]  ;;  %5533 = vmatpush3.bf16.msra.mxu1 %v5871_v2  ;;  %v5874_v2 = vld [vmem:[%s9543_s5 + $0xd8] sm:$0xff]  }
 0x2c9   :  { %v7398_v5 = vmul.f32 %v7255_v52, %v6968_v29  ;;  %v7402_v16 = vmul.f32 %v7255_v52, %v6975_v36  ;;  %v7406_v17 = vmul.f32 %v7255_v52, %v6982_v40  ;;  %v7410_v27 = vmul.f32 %v7255_v52, %v6989_v55  ;;  %5534 = vmatprep.subr.bf16.mxu1 %v5872_v46  ;;  %v9678_v46 = vld [vmem:[#allocation21_spill] sm:$0xff] }
 0x2ca   :  { %1592 = vst.msk [vmem:[#allocation2 + $0x1f8] sm:$0xff] %vm9599_vm0, %v1528_v7  ;;  %v7418_v29 = vmul.f32 %v7255_v52, %v6996_v60  ;;  %v7422_v36 = vmul.f32 %v7255_v52, %v7003_v8  ;;  %v7426_v40 = vmul.f32 %v7255_v52, %v7010_v10  ;;  %v7430_v55 = vmul.f32 %v7255_v52, %v7017_v21  ;;  %v9666_v7 = vld [vmem:[#allocation13_spill] sm:$0xff] }
 0x2cb   :  { %v7434_v61 = vmul.f32 %v7255_v52, %v7024_v28  ;;  %v7438_v60 = vmul.f32 %v7255_v52, %v7031_v35  ;;  %v7442_v8 = vmul.f32 %v7255_v52, %v7038_v42  ;;  %v7446_v10 = vmul.f32 %v7255_v52, %v7045_v56  ;;  %v5873_v56 = vld [vmem:[%s9543_s5 + $0x90] sm:$0xff]  }
 0x2cc   :  { %v7450_v21 = vmul.f32 %v7255_v52, %v7052_v62  ;;  %v7454_v28 = vmul.f32 %v7255_v52, %v9663_v47  ;;  %v7458_v35 = vmul.f32 %v7255_v52, %v9664_v15  ;;  %v7462_v42 = vmul.f32 %v7255_v52, %v9665_v30  ;;  %5535 = vmatpush3.bf16.msra.mxu1 %v5873_v56  ;;  %v5876_v56 = vld [vmem:[%s9543_s5 + $0xe0] sm:$0xff]  }
 0x2cd   :  { %v7469_v62 = vmul.f32 %v7255_v52, %v9666_v7  ;;  %v7473_v47 = vmul.f32 %v7255_v52, %v9667_v59  ;;  %v7477_v15 = vmul.f32 %v7255_v52, %v9669_v37  ;;  %v7481_v30 = vmul.f32 %v7255_v52, %v9671_v51  ;;  %5536 = vmatprep.subr.bf16.mxu1 %v5874_v2 }
 0x2ce   :  { %v7488_v7 = vmul.f32 %v7255_v52, %v9673_v25  ;;  %v7492_v59 = vmul.f32 %v7255_v52, %v9674_v45  ;;  %v7496_v37 = vmul.f32 %v7255_v52, %v9676_v24  ;;  %v7512_v45 = vmul.f32 %v7255_v52, %v7150_v13 }
 0x2cf   :  { %9668 = vst [vmem:[#allocation10_spill] sm:$0xff] %v7473_v47  ;;  %9670 = vst [vmem:[#allocation11_spill] sm:$0xff] %v7477_v15  ;;  %v9677_v15 = vld [vmem:[#allocation20_spill] sm:$0xff]  ;;  %v9679_v47 = vld [vmem:[#allocation22_spill] sm:$0xff]  ;;  %v7532_v13 = vmul.f32 %v7255_v52, %v6780_v12  ;;  %v7551_v12 = vmul.f32 %v7255_v52, %v6792_v53  ;;  %v7570_v53 = vmul.f32 %v7260_v31, %v7274_v0 }
 0x2d0   :  { %9672 = vst [vmem:[#allocation12_spill] sm:$0xff] %v7481_v30  ;;  %9675 = vst [vmem:[#allocation13_spill] sm:$0xff] %v7492_v59  ;;  %v7500_v51 = vmul.f32 %v7255_v52, %v9677_v15  ;;  %v7504_v30 = vmul.f32 %v7255_v52, %v9678_v46  ;;  %v7508_v25 = vmul.f32 %v7255_v52, %v9679_v47  ;;  %v9680_v59 = vld [vmem:[#allocation23_spill] sm:$0xff] }
 0x2d1   :  { %v7516_v24 = vmul.f32 %v7255_v52, %v9680_v59  ;;  %v7520_v15 = vmul.f32 %v7255_v52, %v7164_v14  ;;  %v7524_v46 = vmul.f32 %v7255_v52, %v7171_v22  ;;  %v7528_v47 = vmul.f32 %v7255_v52, %v6777_v1  ;;  %9682 = vst [vmem:[#allocation15_spill] sm:$0xff] %v7532_v13  ;;  %v5875_v59 = vld [vmem:[%s9543_s5 + $0x98] sm:$0xff]  }
 0x2d2   :  { %v7543_v22 = vmul.f32 %v7255_v52, %v6786_v4  ;;  %v7547_v1 = vmul.f32 %v7255_v52, %v6789_v41  ;;  %v9686_v13 = vld [vmem:[#allocation28_spill] sm:$0xff]  ;;  %v7574_v2 = vmul.f32 %v7260_v31, %v7278_v34  ;;  %v7590_v0 = vmul.f32 %v7260_v31, %v7299_v26  ;;  %5537 = vmatpush3.bf16.msra.mxu1 %v5875_v59  ;;  %v5878_v59 = vld [vmem:[%s9543_s5 + $0xe8] sm:$0xff]  }
 0x2d3   :  { %9681 = vst [vmem:[#allocation14_spill] sm:$0xff] %v7516_v24  ;;  %v9683_v24 = vld [vmem:[#allocation27_spill] sm:$0xff]  ;;  %v7594_v34 = vmul.f32 %v7260_v31, %v7303_v44  ;;  %v7609_v26 = vmul.f32 %v7260_v31, %v7322_v38  ;;  %v7613_v44 = vmul.f32 %v7260_v31, %v7332_v3  ;;  %5538 = vmatprep.subr.bf16.mxu1 %v5876_v56 }
 0x2d4   :  { %v7539_v14 = vmul.f32 %v7255_v52, %v9683_v24  ;;  %9685 = vst [vmem:[#allocation17_spill] sm:$0xff] %v7543_v22  ;;  %v7558_v24 = vmul.f32 %v7255_v52, %v9686_v13  ;;  %v9688_v22 = vld [vmem:[#allocation30_spill] sm:$0xff]  ;;  %v7578_v13 = vmul.f32 %v7260_v31, %v7282_v33  ;;  %v7598_v33 = vmul.f32 %v7260_v31, %v7314_v49 }
 0x2d5   :  { %v7566_v41 = vmul.f32 %v7255_v52, %v9688_v22  ;;  %v7617_v49 = vmul.f32 %v7260_v31, %v7336_v6  ;;  %v7628_v38 = vmul.f32 %v7260_v31, %v7344_v9  ;;  %v7632_v3 = vmul.f32 %v7260_v31, %v7352_v48 }
 0x2d6   :  { %9684 = vst [vmem:[#allocation16_spill] sm:$0xff] %v7539_v14  ;;  %v9687_v14 = vld [vmem:[#allocation29_spill] sm:$0xff]  ;;  %v7636_v6 = vmul.f32 %v7260_v31, %v7356_v20  ;;  %v7644_v22 = vmul.f32 %v7260_v31, %v7367_v19  ;;  %v7648_v9 = vmul.f32 %v7260_v31, %v7371_v32  ;;  %v7652_v48 = vmul.f32 %v7260_v31, %v7375_v39  ;;  %v9690_v56 = vld [vmem:[#allocation10_spill] sm:$0xff] }
 0x2d7   :  { %v7562_v4 = vmul.f32 %v7255_v52, %v9687_v14  ;;  %v7582_v14 = vmul.f32 %v7260_v31, %v7291_v63  ;;  %v7586_v52 = vmul.f32 %v7260_v31, %v7295_v18  ;;  %v7602_v63 = vmul.f32 %v7260_v31, %v7318_v50  ;;  %v5877_v18 = vld [vmem:[%s9543_s5 + $0xa0] sm:$0xff]  }
 0x2d8   :  { %v7621_v50 = vmul.f32 %v7260_v31, %v7340_v11  ;;  %v7640_v11 = vmul.f32 %v7260_v31, %v7360_v23  ;;  %v7656_v20 = vmul.f32 %v7260_v31, %v7379_v43  ;;  %v7660_v23 = vmul.f32 %v7260_v31, %v7383_v57  ;;  %5539 = vmatpush3.bf16.msra.mxu1 %v5877_v18  ;;  %v9691_v18 = vld [vmem:[#allocation11_spill] sm:$0xff] }
 0x2d9   :  { %v7664_v19 = vmul.f32 %v7260_v31, %v7387_v54  ;;  %v7668_v32 = vmul.f32 %v7260_v31, %v7391_v58  ;;  %v7672_v39 = vmul.f32 %v7260_v31, %v7398_v5  ;;  %v7676_v43 = vmul.f32 %v7260_v31, %v7402_v16  ;;  %5540 = vmatprep.subr.bf16.mxu1 %v5878_v59  ;;  %v9692_v59 = vld [vmem:[#allocation12_spill] sm:$0xff] }
 0x2da   :  { %v7680_v57 = vmul.f32 %v7260_v31, %v7406_v17  ;;  %v7684_v54 = vmul.f32 %v7260_v31, %v7410_v27  ;;  %v7688_v58 = vmul.f32 %v7260_v31, %v7418_v29  ;;  %v7692_v5 = vmul.f32 %v7260_v31, %v7422_v36 }
 0x2db   :  { %v7696_v16 = vmul.f32 %v7260_v31, %v7426_v40  ;;  %v7700_v17 = vmul.f32 %v7260_v31, %v7430_v55  ;;  %v7704_v27 = vmul.f32 %v7260_v31, %v7434_v61  ;;  %v7708_v29 = vmul.f32 %v7260_v31, %v7438_v60 }
 0x2dc   :  { %v7712_v36 = vmul.f32 %v7260_v31, %v7442_v8  ;;  %v7716_v40 = vmul.f32 %v7260_v31, %v7446_v10  ;;  %v7720_v55 = vmul.f32 %v7260_v31, %v7450_v21  ;;  %v7724_v61 = vmul.f32 %v7260_v31, %v7454_v28 }
 0x2dd   :  { %v7728_v60 = vmul.f32 %v7260_v31, %v7458_v35  ;;  %v7732_v8 = vmul.f32 %v7260_v31, %v7462_v42  ;;  %v7736_v10 = vmul.f32 %v7260_v31, %v7469_v62  ;;  %v7740_v21 = vmul.f32 %v7260_v31, %v9690_v56 }
 0x2de   :  { %v7744_v28 = vmul.f32 %v7260_v31, %v9691_v18  ;;  %v7748_v35 = vmul.f32 %v7260_v31, %v9692_v59  ;;  %v7752_v42 = vmul.f32 %v7260_v31, %v7488_v7  ;;  %v7760_v56 = vmul.f32 %v7260_v31, %v7496_v37 }
 0x2df   :  { %9689 = vst [vmem:[#allocation18_spill] sm:$0xff] %v7732_v8  ;;  %v9693_v8 = vld [vmem:[#allocation13_spill] sm:$0xff]  ;;  %v7764_v18 = vmul.f32 %v7260_v31, %v7500_v51  ;;  %v7768_v59 = vmul.f32 %v7260_v31, %v7504_v30  ;;  %v7772_v7 = vmul.f32 %v7260_v31, %v7508_v25  ;;  %v7784_v51 = vmul.f32 %v7260_v31, %v7520_v15 }
 0x2e0   :  { %v7756_v62 = vmul.f32 %v7260_v31, %v9693_v8  ;;  %v7776_v8 = vmul.f32 %v7260_v31, %v7512_v45  ;;  %v7788_v30 = vmul.f32 %v7260_v31, %v7524_v46  ;;  %v7792_v25 = vmul.f32 %v7260_v31, %v7528_v47 }
 0x2e1   :  { %9695 = vst [vmem:[#allocation20_spill] sm:$0xff] %v7772_v7  ;;  %v9699_v7 = vld [vmem:[#allocation15_spill] sm:$0xff]  ;;  %v7808_v46 = vmul.f32 %v7260_v31, %v7547_v1  ;;  %v7812_v47 = vmul.f32 %v7260_v31, %v7551_v12 }
 0x2e2   :  { %9694 = vst [vmem:[#allocation19_spill] sm:$0xff] %v7756_v62  ;;  %9696 = vst [vmem:[#allocation21_spill] sm:$0xff] %v7776_v8  ;;  %v9697_v62 = vld [vmem:[#allocation14_spill] sm:$0xff]  ;;  %v7796_v45 = vmul.f32 %v7260_v31, %v9699_v7  ;;  %v9700_v8 = vld [vmem:[#allocation16_spill] sm:$0xff]  ;;  %v7816_v7 = vmul.f32 %v7260_v31, %v7558_v24 }
 0x2e3   :  { %v7780_v37 = vmul.f32 %v7260_v31, %v9697_v62  ;;  %v7800_v62 = vmul.f32 %v7260_v31, %v9700_v8  ;;  %v7820_v8 = vmul.f32 %v7260_v31, %v7562_v4 }
 0x2e5   :  { %9698 = vst [vmem:[#allocation22_spill] sm:$0xff] %v7780_v37  ;;  %v9701_v37 = vld [vmem:[#allocation17_spill] sm:$0xff] }
 0x2e6   :  { %v7804_v15 = vmul.f32 %v7260_v31, %v9701_v37  ;;  %v7824_v37 = vmul.f32 %v7260_v31, %v7566_v41 }
 0x2e8   :  { %9702 = vst [vmem:[#allocation23_spill] sm:$0xff] %v7804_v15  ;;  %v9703_v15 = vld [vmem:[#allocation33_spill] sm:$0xff] }
 0x2e9   :  { %v7828_v1 = vadd.f32 %v9703_v15, %v7570_v53  ;;  %v7832_v12 = vadd.f32 %v9703_v15, %v7574_v2  ;;  %v7836_v24 = vadd.f32 %v9703_v15, %v7578_v13  ;;  %v7840_v4 = vadd.f32 %v9703_v15, %v7582_v14 }
 0x2ea   :  { %v7844_v31 = vadd.f32 %v9703_v15, %v7586_v52  ;;  %v7848_v41 = vadd.f32 %v9703_v15, %v7590_v0  ;;  %v7852_v53 = vadd.f32 %v9703_v15, %v7594_v34  ;;  %v7856_v2 = vadd.f32 %v9703_v15, %v7598_v33 }
 0x2eb   :  { %v7860_v13 = vadd.f32 %v9703_v15, %v7602_v63  ;;  %v7864_v14 = vadd.f32 %v9703_v15, %v7609_v26  ;;  %v7868_v52 = vadd.f32 %v9703_v15, %v7613_v44  ;;  %v7872_v0 = vadd.f32 %v9703_v15, %v7617_v49 }
 0x2ec   :  { %v7876_v34 = vadd.f32 %v9703_v15, %v7621_v50  ;;  %v7880_v33 = vadd.f32 %v9703_v15, %v7628_v38  ;;  %v7884_v63 = vadd.f32 %v9703_v15, %v7632_v3  ;;  %v7888_v26 = vadd.f32 %v9703_v15, %v7636_v6 }
 0x2ed   :  { %v7892_v44 = vadd.f32 %v9703_v15, %v7640_v11  ;;  %v7896_v49 = vadd.f32 %v9703_v15, %v7644_v22  ;;  %v7900_v50 = vadd.f32 %v9703_v15, %v7648_v9  ;;  %v7904_v38 = vadd.f32 %v9703_v15, %v7652_v48 }
 0x2ee   :  { %v7908_v3 = vadd.f32 %v9703_v15, %v7656_v20  ;;  %v7912_v6 = vadd.f32 %v9703_v15, %v7660_v23  ;;  %v7916_v11 = vadd.f32 %v9703_v15, %v7664_v19  ;;  %v7920_v22 = vadd.f32 %v9703_v15, %v7668_v32 }
 0x2ef   :  { %v7924_v9 = vadd.f32 %v9703_v15, %v7672_v39  ;;  %v7928_v48 = vadd.f32 %v9703_v15, %v7676_v43  ;;  %v7932_v20 = vadd.f32 %v9703_v15, %v7680_v57  ;;  %v7936_v23 = vadd.f32 %v9703_v15, %v7684_v54 }
 0x2f0   :  { %v7940_v19 = vadd.f32 %v9703_v15, %v7688_v58  ;;  %v7944_v32 = vadd.f32 %v9703_v15, %v7692_v5  ;;  %v7948_v39 = vadd.f32 %v9703_v15, %v7696_v16  ;;  %v7952_v43 = vadd.f32 %v9703_v15, %v7700_v17 }
 0x2f1   :  { %v7956_v57 = vadd.f32 %v9703_v15, %v7704_v27  ;;  %v7960_v54 = vadd.f32 %v9703_v15, %v7708_v29  ;;  %v7964_v58 = vadd.f32 %v9703_v15, %v7712_v36  ;;  %v7968_v5 = vadd.f32 %v9703_v15, %v7716_v40  ;;  %v9704_v29 = vld [vmem:[#allocation18_spill] sm:$0xff] }
 0x2f2   :  { %v7972_v16 = vadd.f32 %v9703_v15, %v7720_v55  ;;  %v7976_v17 = vadd.f32 %v9703_v15, %v7724_v61  ;;  %v7980_v27 = vadd.f32 %v9703_v15, %v7728_v60  ;;  %v7984_v36 = vadd.f32 %v9703_v15, %v9704_v29 }
 0x2f3   :  { %v7988_v40 = vadd.f32 %v9703_v15, %v7736_v10  ;;  %v7992_v55 = vadd.f32 %v9703_v15, %v7740_v21  ;;  %v7996_v61 = vadd.f32 %v9703_v15, %v7744_v28  ;;  %v8000_v60 = vadd.f32 %v9703_v15, %v7748_v35 }
 0x2f4   :  { %9705 = vst [vmem:[#allocation27_spill] sm:$0xff] %v7984_v36  ;;  %v8004_v29 = vadd.f32 %v9703_v15, %v7752_v42  ;;  %v9708_v36 = vld [vmem:[#allocation19_spill] sm:$0xff]  ;;  %v8012_v21 = vadd.f32 %v9703_v15, %v7760_v56  ;;  %v8016_v28 = vadd.f32 %v9703_v15, %v7764_v18  ;;  %v8020_v35 = vadd.f32 %v9703_v15, %v7768_v59 }
 0x2f5   :  { %9706 = vst [vmem:[#allocation28_spill] sm:$0xff] %v8000_v60  ;;  %v8008_v10 = vadd.f32 %v9703_v15, %v9708_v36  ;;  %v9710_v60 = vld [vmem:[#allocation20_spill] sm:$0xff]  ;;  %v8036_v18 = vadd.f32 %v9703_v15, %v7784_v51  ;;  %v8040_v59 = vadd.f32 %v9703_v15, %v7788_v30  ;;  %v8060_v30 = vadd.f32 %v9703_v15, %v7808_v46 }
 0x2f6   :  { %9707 = vst [vmem:[#allocation29_spill] sm:$0xff] %v8004_v29  ;;  %v8024_v42 = vadd.f32 %v9703_v15, %v9710_v60  ;;  %v9711_v29 = vld [vmem:[#allocation21_spill] sm:$0xff]  ;;  %v8044_v60 = vadd.f32 %v9703_v15, %v7792_v25  ;;  %v8064_v25 = vadd.f32 %v9703_v15, %v7812_v47  ;;  %v1466_v46 = vmax.f32 %v7832_v12, 0.0 }
 0x2f7   :  { %9709 = vst [vmem:[#allocation30_spill] sm:$0xff] %v8008_v10  ;;  %v8028_v36 = vadd.f32 %v9703_v15, %v9711_v29  ;;  %v9712_v10 = vld [vmem:[#allocation22_spill] sm:$0xff]  ;;  %v8048_v29 = vadd.f32 %v9703_v15, %v7796_v45  ;;  %9716 = vst [vmem:[#allocation12_spill] sm:$0xff] %v8060_v30  ;;  %v8068_v45 = vadd.f32 %v9703_v15, %v7816_v7  ;;  %v1467_v30 = vmax.f32 %v7836_v24, 0.0 }
 0x2f8   :  { %v8032_v56 = vadd.f32 %v9703_v15, %v9712_v10  ;;  %v8052_v10 = vadd.f32 %v9703_v15, %v7800_v62  ;;  %9717 = vst [vmem:[#allocation13_spill] sm:$0xff] %v8064_v25  ;;  %v8072_v62 = vadd.f32 %v9703_v15, %v7820_v8  ;;  %v1468_v47 = vmax.f32 %v7840_v4, 0.0  ;;  %1530 = vst.msk [vmem:[#allocation2 + $0x8] sm:$0xff] %vm9599_vm0, %v1466_v46 }
 0x2f9   :  { %9718 = vst [vmem:[#allocation14_spill] sm:$0xff] %v8068_v45  ;;  %v1469_v25 = vmax.f32 %v7844_v31, 0.0  ;;  %v1470_v7 = vmax.f32 %v7848_v41, 0.0  ;;  %v1471_v45 = vmax.f32 %v7852_v53, 0.0  ;;  %v1472_v8 = vmax.f32 %v7856_v2, 0.0  ;;  %1531 = vst.msk [vmem:[#allocation2 + $0x10] sm:$0xff] %vm9599_vm0, %v1467_v30 }
 0x2fa   :  { %9713 = vst [vmem:[#allocation10_spill] sm:$0xff] %v8032_v56  ;;  %v9714_v56 = vld [vmem:[#allocation23_spill] sm:$0xff]  ;;  %9719 = vst [vmem:[#allocation15_spill] sm:$0xff] %v8072_v62  ;;  %v1473_v62 = vmax.f32 %v7860_v13, 0.0  ;;  %v1477_v12 = vmax.f32 %v7876_v34, 0.0  ;;  %v1478_v24 = vmax.f32 %v7880_v33, 0.0 }
 0x2fb   :  { %v8056_v51 = vadd.f32 %v9703_v15, %v9714_v56  ;;  %v8076_v56 = vadd.f32 %v9703_v15, %v7824_v37  ;;  %v1474_v15 = vmax.f32 %v7864_v14, 0.0  ;;  %v1475_v37 = vmax.f32 %v7868_v52, 0.0  ;;  %1532 = vst.msk [vmem:[#allocation2 + $0x18] sm:$0xff] %vm9599_vm0, %v1468_v47  ;;  %1533 = vst.msk [vmem:[#allocation2 + $0x20] sm:$0xff] %vm9599_vm0, %v1469_v25 }
 0x2fc   :  { %v1479_v4 = vmax.f32 %v7884_v63, 0.0  ;;  %1534 = vst.msk [vmem:[#allocation2 + $0x28] sm:$0xff] %vm9599_vm0, %v1470_v7  ;;  %1535 = vst.msk [vmem:[#allocation2 + $0x30] sm:$0xff] %vm9599_vm0, %v1471_v45  ;;  %v1480_v31 = vmax.f32 %v7888_v26, 0.0  ;;  %v1481_v41 = vmax.f32 %v7892_v44, 0.0  ;;  %v1482_v53 = vmax.f32 %v7896_v49, 0.0 }
 0x2fd   :  { %9715 = vst [vmem:[#allocation11_spill] sm:$0xff] %v8056_v51  ;;  %v1465_v51 = vmax.f32 %v7828_v1, 0.0  ;;  %v1476_v1 = vmax.f32 %v7872_v0, 0.0  ;;  %v1483_v2 = vmax.f32 %v7900_v50, 0.0  ;;  %1536 = vst.msk [vmem:[#allocation2 + $0x38] sm:$0xff] %vm9599_vm0, %v1472_v8  ;;  %v1484_v13 = vmax.f32 %v7904_v38, 0.0 }
 0x2fe   :  { %1537 = vst.msk [vmem:[#allocation2 + $0x40] sm:$0xff] %vm9599_vm0, %v1473_v62  ;;  %1538 = vst.msk [vmem:[#allocation2 + $0x48] sm:$0xff] %vm9599_vm0, %v1474_v15  ;;  %v1485_v14 = vmax.f32 %v7908_v3, 0.0  ;;  %v1486_v52 = vmax.f32 %v7912_v6, 0.0  ;;  %v1487_v0 = vmax.f32 %v7916_v11, 0.0  ;;  %v1488_v34 = vmax.f32 %v7920_v22, 0.0 }
 0x2ff   :  { %1529 = vst.msk [vmem:[#allocation2] sm:$0xff] %vm9599_vm0, %v1465_v51  ;;  %1539 = vst.msk [vmem:[#allocation2 + $0x50] sm:$0xff] %vm9599_vm0, %v1475_v37  ;;  %v1489_v33 = vmax.f32 %v7924_v9, 0.0  ;;  %v1490_v63 = vmax.f32 %v7928_v48, 0.0  ;;  %v1491_v26 = vmax.f32 %v7932_v20, 0.0  ;;  %v1492_v44 = vmax.f32 %v7936_v23, 0.0 }
 0x300   :  { %1540 = vst.msk [vmem:[#allocation2 + $0x58] sm:$0xff] %vm9599_vm0, %v1476_v1  ;;  %1541 = vst.msk [vmem:[#allocation2 + $0x60] sm:$0xff] %vm9599_vm0, %v1477_v12  ;;  %v1493_v49 = vmax.f32 %v7940_v19, 0.0  ;;  %v1494_v50 = vmax.f32 %v7944_v32, 0.0  ;;  %v1495_v38 = vmax.f32 %v7948_v39, 0.0  ;;  %v1496_v3 = vmax.f32 %v7952_v43, 0.0 }
 0x301   :  { %1542 = vst.msk [vmem:[#allocation2 + $0x68] sm:$0xff] %vm9599_vm0, %v1478_v24  ;;  %1543 = vst.msk [vmem:[#allocation2 + $0x70] sm:$0xff] %vm9599_vm0, %v1479_v4  ;;  %v1497_v6 = vmax.f32 %v7956_v57, 0.0  ;;  %v1498_v11 = vmax.f32 %v7960_v54, 0.0  ;;  %v1499_v22 = vmax.f32 %v7964_v58, 0.0  ;;  %v5879_v9 = vld [vmem:[%s9543_s5 + $0xa8] sm:$0xff]  }
 0x302   :  { %1544 = vst.msk [vmem:[#allocation2 + $0x78] sm:$0xff] %vm9599_vm0, %v1480_v31  ;;  %1545 = vst.msk [vmem:[#allocation2 + $0x80] sm:$0xff] %vm9599_vm0, %v1481_v41  ;;  %v5880_v48 = vld [vmem:[%s9543_s5 + $0xf0] sm:$0xff]   ;;  %v1500_v20 = vmax.f32 %v7968_v5, 0.0  ;;  %v1501_v23 = vmax.f32 %v7972_v16, 0.0  ;;  %v1502_v19 = vmax.f32 %v7976_v17, 0.0  ;;  %5541 = vmatpush3.bf16.msra.mxu1 %v5879_v9 }
 0x303   :  { %1546 = vst.msk [vmem:[#allocation2 + $0x88] sm:$0xff] %vm9599_vm0, %v1482_v53  ;;  %1547 = vst.msk [vmem:[#allocation2 + $0x90] sm:$0xff] %vm9599_vm0, %v1483_v2  ;;  %v1503_v32 = vmax.f32 %v7980_v27, 0.0  ;;  %v9720_v39 = vld [vmem:[#allocation27_spill] sm:$0xff]  ;;  %v1505_v57 = vmax.f32 %v7988_v40, 0.0  ;;  %v1506_v54 = vmax.f32 %v7992_v55, 0.0  ;;  %5542 = vmatprep.subr.bf16.mxu1 %v5880_v48 }
 0x304   :  { %1548 = vst.msk [vmem:[#allocation2 + $0x98] sm:$0xff] %vm9599_vm0, %v1484_v13  ;;  %1549 = vst.msk [vmem:[#allocation2 + $0xa0] sm:$0xff] %vm9599_vm0, %v1485_v14  ;;  %v1504_v43 = vmax.f32 %v9720_v39, 0.0  ;;  %v1507_v58 = vmax.f32 %v7996_v61, 0.0  ;;  %v9721_v5 = vld [vmem:[#allocation28_spill] sm:$0xff]  ;;  %v9722_v17 = vld [vmem:[#allocation29_spill] sm:$0xff] }
 0x305   :  { %1550 = vst.msk [vmem:[#allocation2 + $0xa8] sm:$0xff] %vm9599_vm0, %v1486_v52  ;;  %1551 = vst.msk [vmem:[#allocation2 + $0xb0] sm:$0xff] %vm9599_vm0, %v1487_v0  ;;  %v1508_v16 = vmax.f32 %v9721_v5, 0.0  ;;  %v1509_v27 = vmax.f32 %v9722_v17, 0.0  ;;  %v9723_v51 = vld [vmem:[#allocation30_spill] sm:$0xff]  ;;  %v1511_v40 = vmax.f32 %v8012_v21, 0.0 }
 0x306   :  { %1552 = vst.msk [vmem:[#allocation2 + $0xb8] sm:$0xff] %vm9599_vm0, %v1488_v34  ;;  %1553 = vst.msk [vmem:[#allocation2 + $0xc0] sm:$0xff] %vm9599_vm0, %v1489_v33  ;;  %v1510_v30 = vmax.f32 %v9723_v51, 0.0  ;;  %v1512_v55 = vmax.f32 %v8016_v28, 0.0  ;;  %v1513_v61 = vmax.f32 %v8020_v35, 0.0  ;;  %v1514_v25 = vmax.f32 %v8024_v42, 0.0 }
 0x307   :  { %1554 = vst.msk [vmem:[#allocation2 + $0xc8] sm:$0xff] %vm9599_vm0, %v1490_v63  ;;  %1555 = vst.msk [vmem:[#allocation2 + $0xd0] sm:$0xff] %vm9599_vm0, %v1491_v26  ;;  %v1515_v45 = vmax.f32 %v8028_v36, 0.0  ;;  %v5881_v21 = vld [vmem:[%s9543_s5 + $0xb0] sm:$0xff]   ;;  %v5882_v28 = vld [vmem:[%s9543_s5 + $0xf8] sm:$0xff]   ;;  %v1517_v36 = vmax.f32 %v8036_v18, 0.0 }
 0x308   :  { %1556 = vst.msk [vmem:[#allocation2 + $0xd8] sm:$0xff] %vm9599_vm0, %v1492_v44  ;;  %1557 = vst.msk [vmem:[#allocation2 + $0xe0] sm:$0xff] %vm9599_vm0, %v1493_v49  ;;  %v9724_v35 = vld [vmem:[#allocation10_spill] sm:$0xff]  ;;  %v1518_v62 = vmax.f32 %v8040_v59, 0.0  ;;  %v1519_v46 = vmax.f32 %v8044_v60, 0.0  ;;  %v2301_v47 = vld [vmem:[#allocation2 + $0x10] sm:$0xff]  ;;  %5543 = vmatpush3.bf16.msra.mxu1 %v5881_v21 }
 0x309   :  { %1558 = vst.msk [vmem:[#allocation2 + $0xe8] sm:$0xff] %vm9599_vm0, %v1494_v50  ;;  %1559 = vst.msk [vmem:[#allocation2 + $0xf0] sm:$0xff] %vm9599_vm0, %v1495_v38  ;;  %v1516_v42 = vmax.f32 %v9724_v35, 0.0  ;;  %v2299_v7 = vld [vmem:[#allocation2] sm:$0xff]  ;;  %v1520_v8 = vmax.f32 %v8048_v29, 0.0  ;;  %v1521_v15 = vmax.f32 %v8052_v10, 0.0  ;;  %5544 = vmatprep.subr.bf16.mxu1 %v5882_v28 }
 0x30a   :  { %1560 = vst.msk [vmem:[#allocation2 + $0xf8] sm:$0xff] %vm9599_vm0, %v1496_v3  ;;  %1561 = vst.msk [vmem:[#allocation2 + $0x100] sm:$0xff] %vm9599_vm0, %v1497_v6  ;;  %v9725_v37 = vld [vmem:[#allocation11_spill] sm:$0xff]  ;;  %v9726_v1 = vld [vmem:[#allocation12_spill] sm:$0xff]  ;;  %v1527_v53 = vmax.f32 %v8076_v56, 0.0 }
 0x30b   :  { %1562 = vst.msk [vmem:[#allocation2 + $0x108] sm:$0xff] %vm9599_vm0, %v1498_v11  ;;  %1563 = vst.msk [vmem:[#allocation2 + $0x110] sm:$0xff] %vm9599_vm0, %v1499_v22  ;;  %v1522_v18 = vmax.f32 %v9725_v37, 0.0  ;;  %v1523_v59 = vmax.f32 %v9726_v1, 0.0  ;;  %v2302_v60 = vld [vmem:[#allocation2 + $0x18] sm:$0xff]  ;;  %v2300_v12 = vld [vmem:[#allocation2 + $0x8] sm:$0xff] }
 0x30c   :  { %1564 = vst.msk [vmem:[#allocation2 + $0x118] sm:$0xff] %vm9599_vm0, %v1500_v20  ;;  %1565 = vst.msk [vmem:[#allocation2 + $0x120] sm:$0xff] %vm9599_vm0, %v1501_v23  ;;  %v9727_v24 = vld [vmem:[#allocation13_spill] sm:$0xff]  ;;  %v9728_v29 = vld [vmem:[#allocation14_spill] sm:$0xff]  ;;  %v2316_v3 = vpack.c.bf16 %v2302_v60, %v2301_v47  ;;  %v2315_v6 = vpack.c.bf16 %v2300_v12, %v2299_v7 }
 0x30d   :  { %1566 = vst.msk [vmem:[#allocation2 + $0x128] sm:$0xff] %vm9599_vm0, %v1502_v19  ;;  %1567 = vst.msk [vmem:[#allocation2 + $0x130] sm:$0xff] %vm9599_vm0, %v1503_v32  ;;  %v1524_v4 = vmax.f32 %v9727_v24, 0.0  ;;  %v1525_v31 = vmax.f32 %v9728_v29, 0.0  ;;  %v9729_v10 = vld [vmem:[#allocation15_spill] sm:$0xff]  ;;  %v2303_v2 = vld [vmem:[#allocation2 + $0x20] sm:$0xff] }
 0x30e   :  { %1568 = vst.msk [vmem:[#allocation2 + $0x138] sm:$0xff] %vm9599_vm0, %v1504_v43  ;;  %1569 = vst.msk [vmem:[#allocation2 + $0x140] sm:$0xff] %vm9599_vm0, %v1505_v57  ;;  %v1526_v41 = vmax.f32 %v9729_v10, 0.0  ;;  %v2304_v13 = vld [vmem:[#allocation2 + $0x28] sm:$0xff]  ;;  %v9732_v34 = vld [vmem:[#allocation24_spill] sm:$0xff] }
 0x30f   :  { %1570 = vst.msk [vmem:[#allocation2 + $0x148] sm:$0xff] %vm9599_vm0, %v1506_v54  ;;  %1571 = vst.msk [vmem:[#allocation2 + $0x150] sm:$0xff] %vm9599_vm0, %v1507_v58  ;;  %v9730_v56 = vld [vmem:[#allocation26_spill] sm:$0xff]  ;;  %v9731_v52 = vld [vmem:[#allocation31_spill] sm:$0xff]  ;;  %v1615_v33 = vadd.s32 40, %v9732_v34  ;;  %v8216_v63 = vadd.s32 48, %v9732_v34  ;;  %v2317_v23 = vpack.c.bf16 %v2304_v13, %v2303_v2 }
 0x310   :  { %1572 = vst.msk [vmem:[#allocation2 + $0x158] sm:$0xff] %vm9599_vm0, %v1508_v16  ;;  %1573 = vst.msk [vmem:[#allocation2 + $0x160] sm:$0xff] %vm9599_vm0, %v1509_v27  ;;  %v1852_v14 = vand.u32 7, %v9730_v56  ;;  %v1859_v0 = vand.u32 7, %v9731_v52  ;;  %v1617_v50 = vadd.s32 56, %v9732_v34  ;;  %v8230_v38 = vadd.s32 64, %v9732_v34 }
 0x311   :  { %1574 = vst.msk [vmem:[#allocation2 + $0x168] sm:$0xff] %vm9599_vm0, %v1510_v30  ;;  %1575 = vst.msk [vmem:[#allocation2 + $0x170] sm:$0xff] %vm9599_vm0, %v1511_v40  ;;  %v8224_v44 = vld [vmem:[#allocation2 + $0x100] sm:$0xff]  ;;  %v9733_v9 = vld [vmem:[#allocation32_spill] sm:$0xff]  ;;  %v1619_v20 = vadd.s32 72, %v9732_v34  ;;  %v9734_v43 = vand.u32 7, %v9732_v34 }
 0x312   :  { %1576 = vst.msk [vmem:[#allocation2 + $0x178] sm:$0xff] %vm9599_vm0, %v1512_v55  ;;  %1577 = vst.msk [vmem:[#allocation2 + $0x180] sm:$0xff] %vm9599_vm0, %v1513_v61  ;;  %v8222_v26 = vld [vmem:[#allocation2 + $0x110] sm:$0xff]  ;;  %v8226_v49 = vld [vmem:[#allocation2 + $0x108] sm:$0xff]  ;;  %v1866_v48 = vand.u32 7, %v9733_v9  ;;  %vm8255_vm3 = vcmp.ge.s32.totalorder %v1852_v14, 1 }
 0x313   :  { %1578 = vst.msk [vmem:[#allocation2 + $0x188] sm:$0xff] %vm9599_vm0, %v1514_v25  ;;  %1579 = vst.msk [vmem:[#allocation2 + $0x190] sm:$0xff] %vm9599_vm0, %v1515_v45  ;;  %v8232_v11 = vld [vmem:[#allocation2 + $0x118] sm:$0xff]  ;;  %v2459_v22 = vpack.c.bf16 %v8226_v49, %v8224_v44  ;;  %v2331_v32 = vld [vmem:[#allocation2 + $0x80] sm:$0xff]  ;;  %vm8242_vm1 = vcmp.ge.s32.totalorder %v9734_v43, 1  ;;  %vm8259_vm4 = vcmp.ge.s32.totalorder %v1859_v0, 1 }
 0x314   :  { %1580 = vst.msk [vmem:[#allocation2 + $0x198] sm:$0xff] %vm9599_vm0, %v1516_v42  ;;  %1581 = vst.msk [vmem:[#allocation2 + $0x1a0] sm:$0xff] %vm9599_vm0, %v1517_v36  ;;  %v2460_v19 = vpack.c.bf16 %v8232_v11, %v8222_v26  ;;  %v2332_v39 = vld [vmem:[#allocation2 + $0x88] sm:$0xff]  ;;  %v9737_v54 = vld [vmem:[#allocation25_spill] sm:$0xff]  ;;  %v1873_v30 = vand.u32 7, %v1615_v33  ;;  %v1620_v40 = vadd.s32 80, %v9732_v34 }
 0x315   :  { %1582 = vst.msk [vmem:[#allocation2 + $0x1a8] sm:$0xff] %vm9599_vm0, %v1518_v62  ;;  %1583 = vst.msk [vmem:[#allocation2 + $0x1b0] sm:$0xff] %vm9599_vm0, %v1519_v46  ;;  %v9738_v58 = vand.u32 7, %v9737_v54  ;;  %2475 = vrot.lane.b32.xlu0 %v2459_v22, %s6139_s24  ;;  %v2333_v16 = vld [vmem:[#allocation2 + $0x90] sm:$0xff]  ;;  %v2334_v17 = vld [vmem:[#allocation2 + $0x98] sm:$0xff]  ;;  %v1880_v61 = vand.u32 7, %v8216_v63  ;;  %v2347_v35 = vpack.c.bf16 %v2332_v39, %v2331_v32 }
 0x316   :  { %1584 = vst.msk [vmem:[#allocation2 + $0x1b8] sm:$0xff] %vm9599_vm0, %v1520_v8  ;;  %1585 = vst.msk [vmem:[#allocation2 + $0x1c0] sm:$0xff] %vm9599_vm0, %v1521_v15  ;;  %2477 = vrot.lane.b32.xlu1 %v2460_v19, %s6139_s24  ;;  %v1887_v25 = vand.u32 7, %v1617_v50  ;;  %v1894_v45 = vand.u32 7, %v8230_v38  ;;  %v1621_v21 = vadd.s32 88, %v9732_v34  ;;  %v2335_v42 = vld [vmem:[#allocation2 + $0xa0] sm:$0xff]  ;;  %v2348_v47 = vpack.c.bf16 %v2334_v17, %v2333_v16 }
 0x317   :  { %1586 = vst.msk [vmem:[#allocation2 + $0x1c8] sm:$0xff] %vm9599_vm0, %v1522_v18  ;;  %1587 = vst.msk [vmem:[#allocation2 + $0x1d0] sm:$0xff] %vm9599_vm0, %v1523_v59  ;;  %vm8248_vm2 = vcmp.ge.s32.totalorder %v9738_v58, 1  ;;  %v1901_v36 = vand.u32 7, %v1619_v20  ;;  %v1622_v62 = vadd.s32 96, %v9732_v34  ;;  %v1623_v46 = vadd.s32 104, %v9732_v34 }
 0x318   :  { %1588 = vst.msk [vmem:[#allocation2 + $0x1d8] sm:$0xff] %vm9599_vm0, %v1524_v4  ;;  %1589 = vst.msk [vmem:[#allocation2 + $0x1e0] sm:$0xff] %vm9599_vm0, %v1525_v31  ;;  %v2336_v7 = vld [vmem:[#allocation2 + $0xa8] sm:$0xff]  ;;  %v8275_v8 = vld [vmem:[#allocation2 + $0x120] sm:$0xff]  ;;  %vm8279_vm5 = vcmp.ge.s32.totalorder %v1866_v48, 1  ;;  %v8284_v18 = vadd.s32 112, %v9732_v34 }
 0x319   :  { %1590 = vst.msk [vmem:[#allocation2 + $0x1e8] sm:$0xff] %vm9599_vm0, %v1526_v41  ;;  %1591 = vst.msk [vmem:[#allocation2 + $0x1f0] sm:$0xff] %vm9599_vm0, %v1527_v53  ;;  %v8277_v15 = vld [vmem:[#allocation2 + $0x128] sm:$0xff]  ;;  %2363 = vrot.lane.b32.xlu0 %v2347_v35, %s6139_s24  ;;  %v8289_v59 = vld [vmem:[#allocation2 + $0xb0] sm:$0xff]  ;;  %vm8293_vm6 = vcmp.ge.s32.totalorder %v1873_v30, 1  ;;  %v1908_v29 = vand.u32 7, %v1620_v40  ;;  %v2349_v9 = vpack.c.bf16 %v2336_v7, %v2335_v42 }
 0x31a   :  { %2324 = vst.msk [vmem:[#allocation3 + $0x38] sm:$0xff] %vm9599_vm0, %v2316_v3  ;;  %2323 = vst.msk [vmem:[#allocation3 + $0x10] sm:$0xff] %vm9599_vm0, %v2315_v6  ;;  %v8265_v55 = vld [vmem:[#allocation2 + $0x190] sm:$0xff]  ;;  %v8291_v60 = vld [vmem:[#allocation2 + $0xb8] sm:$0xff]  ;;  %v1625_v31 = vadd.s32 120, %v9732_v34  ;;  %2365 = vrot.lane.b32.xlu1 %v2348_v47, %s6139_s24  ;;  %vm8301_vm7 = vcmp.ge.s32.totalorder %v1880_v61, 1  ;;  %v2461_v0 = vpack.c.bf16 %v8277_v15, %v8275_v8 }
 0x31b   :  { %2325 = vst.msk [vmem:[#allocation3 + $0x60] sm:$0xff] %vm9599_vm0, %v2317_v23  ;;  %v8271_v28 = vld [vmem:[#allocation2 + $0x198] sm:$0xff]  ;;  %v2220_v24 = vld [vmem:[#allocation2 + $0x87] sm:$0xff]  ;;  %v8299_v10 = vld [vmem:[#allocation2 + $0x130] sm:$0xff]  ;;  %vm8305_vm8 = vcmp.ge.s32.totalorder %v1887_v25, 1  ;;  %v1915_v14 = vand.u32 7, %v1621_v21  ;;  %v2350_v25 = vpack.c.bf16 %v8291_v60, %v8289_v59 }
 0x31c   :  { %v2524_v1 = vpack.c.bf16 %v8271_v28, %v8265_v55  ;;  %v2219_v12 = vld [vmem:[#allocation2 + $0x7f] sm:$0xff]  ;;  %v2221_v41 = vld [vmem:[#allocation2 + $0x8f] sm:$0xff]  ;;  %v2222_v53 = vld [vmem:[#allocation2 + $0x97] sm:$0xff]  ;;  %vm8316_vm9 = vcmp.ge.s32.totalorder %v1894_v45, 1  ;;  %vm8320_vm10 = vcmp.ge.s32.totalorder %v1901_v36, 1  ;;  %v1922_v6 = vand.u32 7, %v1622_v62 }
 0x31d   :  { %v2450_v33 = vld [vmem:[#allocation2 + $0x138] sm:$0xff]  ;;  %v8312_v63 = vld [vmem:[#allocation2 + $0xc0] sm:$0xff]  ;;  %v8314_v50 = vld [vmem:[#allocation2 + $0xc8] sm:$0xff]  ;;  %v1929_v22 = vand.u32 7, %v1623_v46  ;;  %v2235_v48 = vsel %vm8242_vm1, %v2219_v12, 0.0  ;;  %v2236_v20 = vsel %vm8248_vm2, %v2220_v24, 0.0  ;;  %2479 = vrot.lane.b32.xlu0 %v2461_v0, %s6139_s24 }
 0x31e   :  { %2532 = vst.msk [vmem:[#allocation3 + $0x48] sm:$0xff] %vm9599_vm0, %v2524_v1  ;;  %v8328_v23 = vld [vmem:[#allocation2 + $0x140] sm:$0xff]  ;;  %v8330_v19 = vld [vmem:[#allocation2 + $0x148] sm:$0xff]  ;;  %v8332_v32 = vld [vmem:[#allocation2 + $0xd0] sm:$0xff]  ;;  %v1936_v39 = vand.u32 7, %v8284_v18  ;;  %v2237_v43 = vsel %vm8255_vm3, %v2221_v41, 0.0  ;;  %2367 = vrot.lane.b32.xlu1 %v2349_v9, %s6139_s24  ;;  %v2462_v46 = vpack.c.bf16 %v2450_v33, %v8299_v10  ;;  %v2251_v47 = vpack.c.bf16 %v2236_v20, %v2235_v48 }
 0x31f   :  { %v2238_v58 = vsel %vm8259_vm4, %v2222_v53, 0.0  ;;  %v8340_v16 = vld [vmem:[#allocation2 + $0xd8] sm:$0xff]  ;;  %v8344_v30 = vld [vmem:[#allocation2 + $0xa7] sm:$0xff]  ;;  %vm8346_vm11 = vcmp.ge.s32.totalorder %v1908_v29, 1  ;;  %v1943_v61 = vand.u32 7, %v1625_v31  ;;  %v9600_v45 = vmov 0.0  }
 0x320   :  { %v8342_v17 = vld [vmem:[#allocation2 + $0x9f] sm:$0xff]  ;;  %v8355_v21 = vpack.c.bf16 %v8224_v44, %v9600_v45  ;;  %v8359_v42 = vld [vmem:[#allocation2 + $0x150] sm:$0xff]  ;;  %vm8363_vm12 = vcmp.ge.s32.totalorder %v1915_v14, 1  ;;  %vm8372_vm13 = vcmp.ge.s32.totalorder %v1922_v6, 1  ;;  %vm8376_vm14 = vcmp.ge.s32.totalorder %v1929_v22, 1  ;;  %v2396_v53 = vld [vmem:[#allocation2 + $0x187] sm:$0xff] }
 0x321   :  { %v8361_v36 = vld [vmem:[#allocation2 + $0x158] sm:$0xff]  ;;  %v9763_v1 = vmov 0  ;;  %v2397_v59 = vld [vmem:[#allocation2 + $0x18f] sm:$0xff]  ;;  %v8380_v60 = vpack.c.bf16 %v2238_v58, %v2237_v43  ;;  %2481 = vrot.lane.b32.xlu0 %v2462_v46, %s6139_s24  ;;  %vm8395_vm15 = vcmp.ge.s32.totalorder %v1936_v39, 1  ;;  %v9765_v0 = vmov 0  ;;  %v8412_v20 = vld [vmem:[#allocation2 + $0x1a7] sm:$0xff] }
 0x322   :  { %v9764_v1 = vsel %vm8376_vm14, 4294967295, %v9763_v1  ;;  %v8390_v31 = vld [vmem:[#allocation2 + $0x197] sm:$0xff]  ;;  %v2395_v41 = vld [vmem:[#allocation2 + $0x17f] sm:$0xff]  ;;  %v9766_v0 = vsel %vm8395_vm15, 4294967295, %v9765_v0  ;;  %vm8399_vm0 = vcmp.ge.s32.totalorder %v1943_v61, 1  ;;  %v9767_v33 = vmov 0  ;;  %2369 = vrot.lane.b32.xlu1 %v2350_v25, %s6139_s24 }
 0x323   :  { %v9768_v33 = vsel %vm8399_vm0, 4294967295, %v9767_v33  ;;  %v2413_v6 = vsel %vm8255_vm3, %v2397_v59, 0.0  ;;  %v2414_v22 = vsel %vm8259_vm4, %v8390_v31, 0.0  ;;  %v2411_v9 = vsel %vm8242_vm1, %v2395_v41, 0.0  ;;  %v8410_v48 = vld [vmem:[#allocation2 + $0x19f] sm:$0xff]  ;;  %v2305_v24 = vld [vmem:[#allocation2 + $0x30] sm:$0xff] }
 0x324   :  { %v5883_v39 = vld [vmem:[%s9543_s5 + $0xb8] sm:$0xff]   ;;  %v2428_v43 = vpack.c.bf16 %v2414_v22, %v2413_v6  ;;  %v2412_v58 = vsel %vm8248_vm2, %v2396_v53, 0.0  ;;  %v2415_v61 = vsel %vm8279_vm5, %v8410_v48, 0.0  ;;  %v2416_v57 = vsel %vm8293_vm6, %v8412_v20, 0.0  ;;  %v8435_v6 = vld [vmem:[%s9543_s5 + $0x100] sm:$0xff]   ;;  %v8437_v14 = vld [vmem:[#allocation2 + $0x1af] sm:$0xff] }
 0x325   :  { %v5884_v46 = vld [vmem:[%s9543_s5 + $0x78] sm:$0xff]   ;;  %v2427_v22 = vpack.c.bf16 %v2412_v58, %v2411_v9  ;;  %v2429_v29 = vpack.c.bf16 %v2416_v57, %v2415_v61  ;;  %5545 = vmatpush3.bf16.msra.mxu1 %v5883_v39  ;;  %v2059_v35 = vsel %vm8248_vm2, %v2395_v41, 0.0  ;;  %v2060_v7 = vsel %vm8255_vm3, %v2396_v53, 0.0  ;;  %v8449_v61 = vld [vmem:[#allocation2 + $0x180] sm:$0xff]  ;;  %2267 = vrot.lane.b32.xlu0 %v2251_v47, %s6139_s24  ;;  %v2309_v57 = vld [vmem:[#allocation2 + $0x50] sm:$0xff] }
 0x326   :  { %v5885_v25 = vld [vmem:[%s9543_s5 + $0x38] sm:$0xff]   ;;  %vm9769_vm1 = vcmask 523264   ;;  %5480 = vmatprep.subr.bf16.mxu0 %v5884_v46  ;;  %5641 = vmatprep.subr.bf16.mxu1 %v8435_v6  ;;  %v2417_v9 = vsel %vm8301_vm7, %v8437_v14, 0.0  ;;  %v9770_v39 = vmov 0.0   ;;  %v2307_v5 = vld [vmem:[#allocation2 + $0x40] sm:$0xff]  ;;  %v2061_v27 = vsel %vm8259_vm4, %v2397_v59, 0.0 }
 0x327   :  { %v2306_v12 = vld [vmem:[#allocation2 + $0x38] sm:$0xff]  ;;  %2436 = vst.msk [vmem:[#allocation3 + $0x40] sm:$0xff] %vm9769_vm1, %v2428_v43  ;;  %v2074_v58 = vpack.c.bf16 %v2059_v35, %v9770_v39  ;;  %vm9771_vm2 = vmmov %vm9769_vm1  ;;  %5481 = vmatpush3.bf16.msra.mxu0 %v5885_v25  ;;  %v2308_v35 = vld [vmem:[#allocation2 + $0x48] sm:$0xff]  ;;  %v2075_v43 = vpack.c.bf16 %v2061_v27, %v2060_v7  ;;  %v2062_v51 = vsel %vm8279_vm5, %v8390_v31, 0.0  ;;  %2138 = vrot.lane.b32.xlu1 %v8355_v21, %s6139_s24 }
 0x328   :  { %v2318_v44 = vpack.c.bf16 %v2306_v12, %v2305_v24  ;;  %v2402_v45 = vld [vmem:[#allocation2 + $0x1b7] sm:$0xff]  ;;  %2435 = vst.msk [vmem:[#allocation3 + $0x18] sm:$0xff] %vm9771_vm2, %v2427_v22  ;;  %vm9772_vm3 = vmmov %vm9769_vm1  ;;  %v2203_v24 = vpack.c.bf16 %v8449_v61, %v9770_v39  ;;  %v2403_v41 = vld [vmem:[#allocation2 + $0x1bf] sm:$0xff] }
 0x329   :  { %2437 = vst.msk [vmem:[#allocation3 + $0x68] sm:$0xff] %vm9772_vm3, %v2429_v29  ;;  %v2418_v12 = vsel %vm8305_vm8, %v2402_v45, 0.0  ;;  %v8460_v53 = vld [vmem:[#allocation2 + $0x1c7] sm:$0xff]  ;;  %vm9773_vm4 = vmmov %vm9769_vm1  ;;  %v2319_v45 = vpack.c.bf16 %v2308_v35, %v2307_v5  ;;  %v2419_v59 = vsel %vm8316_vm9, %v2403_v41, 0.0  ;;  %v2310_v31 = vld [vmem:[#allocation2 + $0x58] sm:$0xff]  ;;  %v9777_v35 = vpack.c.bf16 %v8330_v19, %v8328_v23 }
 0x32a   :  { %2326 = vst.msk [vmem:[#allocation3 + $0x88] sm:$0xff] %vm9773_vm4, %v2318_v44  ;;  %v2430_v47 = vpack.c.bf16 %v2418_v12, %v2417_v9  ;;  %v2420_v7 = vsel %vm8320_vm10, %v8460_v53, 0.0  ;;  %v8474_v29 = vld [vmem:[#allocation2 + $0x188] sm:$0xff]  ;;  %vm9774_vm2 = vmmov %vm9769_vm1  ;;  %v2320_v46 = vpack.c.bf16 %v2310_v31, %v2309_v57  ;;  %v8482_v22 = vld [vmem:[#allocation2 + $0x1d7] sm:$0xff]  ;;  %v2063_v9 = vsel %vm8293_vm6, %v8410_v48, 0.0 }
 0x32b   :  { %2082 = vst.msk [vmem:[#allocation3] sm:$0xff] %vm9769_vm1, %v2074_v58  ;;  %v2431_v21 = vpack.c.bf16 %v2420_v7, %v2419_v59  ;;  %vm9775_vm3 = vmmov %vm9769_vm1  ;;  %v2204_v44 = vpack.c.bf16 %v8265_v55, %v8474_v29  ;;  %v8480_v25 = vld [vmem:[#allocation2 + $0x1cf] sm:$0xff]  ;;  %v2422_v55 = vsel %vm8363_vm12, %v8482_v22, 0.0  ;;  %v2076_v5 = vpack.c.bf16 %v2063_v9, %v2062_v51  ;;  %v8495_v27 = vld [vmem:[#allocation2 + $0x1a0] sm:$0xff]  ;;  %2483 = vrot.lane.b32.xlu0 %v9777_v35, %s6139_s24 }
 0x32c   :  { %2211 = vst.msk [vmem:[#allocation3 + $0x8] sm:$0xff] %vm9774_vm2, %v2203_v24  ;;  %vm9776_vm4 = vmmov %vm9769_vm1  ;;  %v2421_v58 = vsel %vm8346_vm11, %v8480_v25, 0.0  ;;  %v2311_v12 = vld [vmem:[#allocation2 + $0x60] sm:$0xff]  ;;  %v2312_v24 = vld [vmem:[#allocation2 + $0x68] sm:$0xff]  ;;  %v2064_v48 = vsel %vm8301_vm7, %v8412_v20, 0.0  ;;  %v2205_v51 = vpack.c.bf16 %v8495_v27, %v8271_v28  ;;  %v2065_v20 = vsel %vm8305_vm8, %v8437_v14, 0.0 }
 0x32d   :  { %2083 = vst.msk [vmem:[#allocation3 + $0x28] sm:$0xff] %vm9775_vm3, %v2075_v43  ;;  %vm9778_vm2 = vmmov %vm9769_vm1  ;;  %v2432_v43 = vpack.c.bf16 %v2422_v55, %v2421_v58  ;;  %v2408_v59 = vld [vmem:[#allocation2 + $0x1e7] sm:$0xff]  ;;  %v9781_v57 = vpack.c.bf16 %v8314_v50, %v8312_v63  ;;  %v2314_v14 = vld [vmem:[#allocation2 + $0x78] sm:$0xff]  ;;  %v2067_v9 = vsel %vm8320_vm10, %v2403_v41, 0.0 }
 0x32e   :  { %2438 = vst.msk [vmem:[#allocation3 + $0x90] sm:$0xff] %vm9776_vm4, %v2430_v47  ;;  %vm9779_vm3 = vmmov %vm9769_vm1  ;;  %v2321_v47 = vpack.c.bf16 %v2312_v24, %v2311_v12  ;;  %v8512_v7 = vld [vmem:[#allocation2 + $0x1a8] sm:$0xff]  ;;  %v2424_v28 = vsel %vm8376_vm14, %v2408_v59, 0.0  ;;  %v2078_v12 = vpack.c.bf16 %v2067_v9, %v9770_v39  ;;  %v2180_v24 = vld [vmem:[#allocation2 + $0x1c0] sm:$0xff] }
 0x32f   :  { %2327 = vst.msk [vmem:[#allocation3 + $0xb0] sm:$0xff] %vm9769_vm1, %v2319_v45  ;;  %vm9780_vm4 = vmmov %vm9769_vm1  ;;  %v2407_v45 = vld [vmem:[#allocation2 + $0x1df] sm:$0xff]  ;;  %2371 = vrot.lane.b32.xlu1 %v9781_v57, %s6139_s24  ;;  %v2409_v55 = vld [vmem:[#allocation2 + $0x1ef] sm:$0xff]  ;;  %v2207_v35 = vpack.c.bf16 %v2180_v24, %v9770_v39  ;;  %2269 = vrot.lane.b32.xlu0 %v8380_v60, %s6139_s24 }
 0x330   :  { %2439 = vst.msk [vmem:[#allocation3 + $0xb8] sm:$0xff] %vm9778_vm2, %v2431_v21  ;;  %v2423_v31 = vsel %vm8372_vm13, %v2407_v45, 0.0  ;;  %v2077_v21 = vpack.c.bf16 %v2065_v20, %v2064_v48  ;;  %vm9782_vm2 = vmmov %vm9769_vm1  ;;  %v2425_v41 = vsel %vm8395_vm15, %v2409_v55, 0.0  ;;  %v2183_v20 = vld [vmem:[#allocation2 + $0x1d8] sm:$0xff]  ;;  %v2185_v60 = vld [vmem:[#allocation2 + $0x1e8] sm:$0xff] }
 0x331   :  { %2212 = vst.msk [vmem:[#allocation3 + $0x30] sm:$0xff] %vm9779_vm3, %v2204_v44  ;;  %v8523_v44 = vld [vmem:[#allocation2 + $0x1b0] sm:$0xff]  ;;  %vm9783_vm3 = vmmov %vm9769_vm1  ;;  %v2433_v63 = vpack.c.bf16 %v2424_v28, %v2423_v31  ;;  %v2069_v31 = vsel %vm8363_vm12, %v8480_v25, 0.0  ;;  %v2070_v28 = vsel %vm8372_vm13, %v8482_v22, 0.0  ;;  %v2522_v22 = vld [vmem:[#allocation2 + $0x1f8] sm:$0xff] }
 0x332   :  { %2328 = vst.msk [vmem:[#allocation3 + $0xd8] sm:$0xff] %vm9780_vm4, %v2320_v46  ;;  %v2313_v46 = vld [vmem:[#allocation2 + $0x70] sm:$0xff]  ;;  %vm9784_vm4 = vmmov %vm9769_vm1  ;;  %v2206_v50 = vpack.c.bf16 %v8523_v44, %v8512_v7  ;;  %v2344_v37 = vld [vmem:[#allocation2 + $0xe8] sm:$0xff] }
 0x333   :  { %2084 = vst.msk [vmem:[#allocation3 + $0x50] sm:$0xff] %vm9769_vm1, %v2076_v5  ;;  %v2322_v58 = vpack.c.bf16 %v2314_v14, %v2313_v46  ;;  %v2410_v5 = vld [vmem:[#allocation2 + $0x1f7] sm:$0xff]  ;;  %2085 = vst.msk [vmem:[#allocation3 + $0x78] sm:$0xff] %vm9769_vm1, %v2077_v21  ;;  %v2184_v21 = vld [vmem:[#allocation2 + $0x1e0] sm:$0xff]  ;;  %v9788_v14 = vpack.c.bf16 %v8222_v26, %v8226_v49  ;;  %v2073_v26 = vsel %vm8399_vm0, %v2409_v55, 0.0 }
 0x334   :  { %2440 = vst.msk [vmem:[#allocation3 + $0xe0] sm:$0xff] %vm9782_vm2, %v2432_v43  ;;  %v2426_v48 = vsel %vm8399_vm0, %v2410_v5, 0.0  ;;  %v2068_v43 = vsel %vm8346_vm11, %v8460_v53, 0.0  ;;  %vm9785_vm2 = vmmov %vm9769_vm1  ;;  %v2186_v46 = vld [vmem:[#allocation2 + $0x1f0] sm:$0xff]  ;;  %v2209_v25 = vpack.c.bf16 %v2184_v21, %v2183_v20  ;;  %v2228_v2 = vld [vmem:[#allocation2 + $0xc7] sm:$0xff] }
 0x335   :  { %2213 = vst.msk [vmem:[#allocation3 + $0x58] sm:$0xff] %vm9783_vm3, %v2205_v51  ;;  %v2181_v51 = vld [vmem:[#allocation2 + $0x1c8] sm:$0xff]  ;;  %vm9786_vm3 = vmmov %vm9769_vm1  ;;  %v2434_v57 = vpack.c.bf16 %v2426_v48, %v2425_v41  ;;  %2140 = vrot.lane.b32.xlu1 %v9788_v14, %s6139_s24  ;;  %v2079_v9 = vpack.c.bf16 %v2069_v31, %v2068_v43  ;;  %v2210_v49 = vpack.c.bf16 %v2186_v46, %v2185_v60  ;;  %v2455_v43 = vld [vmem:[#allocation2 + $0x160] sm:$0xff] }
 0x336   :  { %2329 = vst.msk [vmem:[#allocation3 + $0x100] sm:$0xff] %vm9784_vm4, %v2321_v47  ;;  %v2182_v47 = vld [vmem:[#allocation2 + $0x1d0] sm:$0xff]  ;;  %vm9787_vm4 = vmmov %vm9769_vm1  ;;  %v2527_v48 = vpack.c.bf16 %v2181_v51, %v2180_v24  ;;  %v2530_v55 = vpack.c.bf16 %v2522_v22, %v2186_v46  ;;  %v2231_v3 = vld [vmem:[#allocation2 + $0xdf] sm:$0xff] }
 0x337   :  { %2441 = vst.msk [vmem:[#allocation3 + $0x108] sm:$0xff] %vm9785_vm2, %v2433_v63  ;;  %v2208_v53 = vpack.c.bf16 %v2182_v47, %v2181_v51  ;;  %vm9789_vm2 = vmmov %vm9769_vm1  ;;  %v2071_v63 = vsel %vm8376_vm14, %v2407_v45, 0.0  ;;  %v2456_v51 = vld [vmem:[#allocation2 + $0x168] sm:$0xff]  ;;  %v2226_v4 = vld [vmem:[#allocation2 + $0xb7] sm:$0xff] }
 0x338   :  { %2214 = vst.msk [vmem:[#allocation3 + $0x80] sm:$0xff] %vm9786_vm3, %v2206_v50  ;;  %v2072_v50 = vsel %vm8395_vm15, %v2408_v59, 0.0  ;;  %vm9790_vm3 = vmmov %vm9769_vm1  ;;  %v2080_v5 = vpack.c.bf16 %v2071_v63, %v2070_v28  ;;  %v2525_v59 = vpack.c.bf16 %v8512_v7, %v8495_v27  ;;  %v9797_v27 = vpack.c.bf16 %v8340_v16, %v8332_v32  ;;  %v2343_v16 = vld [vmem:[#allocation2 + $0xe0] sm:$0xff]  ;;  %v2345_v31 = vld [vmem:[#allocation2 + $0xf0] sm:$0xff] }
 0x339   :  { %2330 = vst.msk [vmem:[#allocation3 + $0x128] sm:$0xff] %vm9787_vm4, %v2322_v58  ;;  %v2514_v58 = vld [vmem:[#allocation2 + $0x1b8] sm:$0xff]  ;;  %vm9791_vm4 = vmmov %vm9769_vm1  ;;  %v2081_v45 = vpack.c.bf16 %v2073_v26, %v2072_v50  ;;  %v9802_v7 = vsel %vm8279_vm5, %v8342_v17, 0.0  ;;  %v2124_v32 = vpack.c.bf16 %v8275_v8, %v8232_v11  ;;  %v2225_v17 = vld [vmem:[#allocation2 + $0xaf] sm:$0xff]  ;;  %v2125_v8 = vpack.c.bf16 %v8299_v10, %v8277_v15 }
 0x33a   :  { %2086 = vst.msk [vmem:[#allocation3 + $0xa0] sm:$0xff] %vm9769_vm1, %v2078_v12  ;;  %v2523_v12 = vpack.c.bf16 %v8474_v29, %v8449_v61  ;;  %2087 = vst.msk [vmem:[#allocation3 + $0xc8] sm:$0xff] %vm9769_vm1, %v2079_v9  ;;  %v2526_v41 = vpack.c.bf16 %v2514_v58, %v8523_v44  ;;  %v2528_v61 = vpack.c.bf16 %v2183_v20, %v2182_v47  ;;  %2373 = vrot.lane.b32.xlu1 %v9797_v27, %s6139_s24  ;;  %v2458_v28 = vld [vmem:[#allocation2 + $0x178] sm:$0xff]  ;;  %v2229_v15 = vld [vmem:[#allocation2 + $0xcf] sm:$0xff] }
 0x33b   :  { %2215 = vst.msk [vmem:[#allocation3 + $0xa8] sm:$0xff] %vm9789_vm2, %v2207_v35  ;;  %vm9792_vm2 = vmmov %vm9769_vm1  ;;  %v9793_v35 = vpack.c.bf16 %v8361_v36, %v8359_v42  ;;  %v2529_v29 = vpack.c.bf16 %v2185_v60, %v2184_v21  ;;  %v9803_v44 = vsel %vm8293_vm6, %v8344_v30, 0.0  ;;  %v2465_v30 = vpack.c.bf16 %v2456_v51, %v2455_v43  ;;  %v2346_v21 = vld [vmem:[#allocation2 + $0xf8] sm:$0xff]  ;;  %v2232_v58 = vld [vmem:[#allocation2 + $0xe7] sm:$0xff] }
 0x33c   :  { %2442 = vst.msk [vmem:[#allocation3 + $0x130] sm:$0xff] %vm9790_vm3, %v2434_v57  ;;  %vm9794_vm3 = vmmov %vm9769_vm1  ;;  %v2253_v24 = vpack.c.bf16 %v9803_v44, %v9802_v7  ;;  %v2353_v47 = vpack.c.bf16 %v2344_v37, %v2343_v16  ;;  %v2241_v20 = vsel %vm8301_vm7, %v2225_v17, 0.0  ;;  %v2242_v57 = vsel %vm8305_vm8, %v2226_v4, 0.0  ;;  %v2227_v60 = vld [vmem:[#allocation2 + $0xbf] sm:$0xff]  ;;  %v2230_v10 = vld [vmem:[#allocation2 + $0xd7] sm:$0xff] }
 0x33d   :  { %2216 = vst.msk [vmem:[#allocation3 + $0xd0] sm:$0xff] %vm9791_vm4, %v2208_v53  ;;  %2485 = vrot.lane.b32.xlu0 %v9793_v35, %s6139_s24  ;;  %vm9795_vm4 = vmmov %vm9769_vm1  ;;  %v2254_v11 = vpack.c.bf16 %v2242_v57, %v2241_v20  ;;  %v2457_v53 = vld [vmem:[#allocation2 + $0x170] sm:$0xff]  ;;  %v2354_v46 = vpack.c.bf16 %v2346_v21, %v2345_v31  ;;  %v2243_v14 = vsel %vm8316_vm9, %v2227_v60, 0.0  ;;  %v2244_v9 = vsel %vm8320_vm10, %v2228_v2, 0.0 }
 0x33e   :  { %2217 = vst.msk [vmem:[#allocation3 + $0xf8] sm:$0xff] %vm9792_vm2, %v2209_v25  ;;  %vm9796_vm0 = vmmov %vm9769_vm1  ;;  %2142 = vrot.lane.b32.xlu1 %v2124_v32, %s6139_s24  ;;  %v2466_v13 = vpack.c.bf16 %v2458_v28, %v2457_v53  ;;  %v2255_v63 = vpack.c.bf16 %v2244_v9, %v2243_v14  ;;  %v2126_v25 = vpack.c.bf16 %v8328_v23, %v9770_v39  ;;  %v2245_v50 = vsel %vm8346_vm11, %v2229_v15, 0.0  ;;  %v2233_v40 = vld [vmem:[#allocation2 + $0xef] sm:$0xff]  ;;  %v2234_v62 = vld [vmem:[#allocation2 + $0xf7] sm:$0xff] }
 0x33f   :  { %2088 = vst.msk [vmem:[#allocation3 + $0xf0] sm:$0xff] %vm9794_vm3, %v2080_v5  ;;  %vm9798_vm1 = vmmov %vm9796_vm0  ;;  %v2246_v38 = vsel %vm8363_vm12, %v2230_v10, 0.0  ;;  %v2127_v5 = vpack.c.bf16 %v8359_v42, %v8330_v19  ;;  %v2247_v26 = vsel %vm8372_vm13, %v2231_v3, 0.0  ;;  %vm9806_vm5 = vnez %v9764_v1  ;;  %v5888_v27 = vld [vmem:[%s9543_s5 + $0x110] sm:$0xff]  }
 0x340   :  { %2218 = vst.msk [vmem:[#allocation3 + $0x120] sm:$0xff] %vm9795_vm4, %v2210_v49  ;;  %vm9799_vm2 = vmmov %vm9796_vm0  ;;  %v2256_v22 = vpack.c.bf16 %v2246_v38, %v2245_v50  ;;  %v2248_v23 = vsel %vm9806_vm5, %v2232_v58, 0.0  ;;  %v2128_v49 = vpack.c.bf16 %v2455_v43, %v8361_v36  ;;  %vm9807_vm6 = vnez %v9766_v0 }
 0x341   :  { %2531 = vst.msk [vmem:[#allocation3 + $0x20] sm:$0xff] %vm9796_vm0, %v2523_v12  ;;  %vm9800_vm15 = vmmov %vm9796_vm0  ;;  %2271 = vrot.lane.b32.xlu0 %v2253_v24, %s6139_s24  ;;  %v2257_v39 = vpack.c.bf16 %v2248_v23, %v2247_v26  ;;  %v2249_v12 = vsel %vm9807_vm6, %v2233_v40, 0.0  ;;  %vm9808_vm7 = vnez %v9768_v33  ;;  %v2129_v18 = vpack.c.bf16 %v2457_v53, %v2456_v51  ;;  %v5889_v24 = vld [vmem:[%s9543_s5 + $0x118] sm:$0xff]  }
 0x342   :  { %2089 = vst.msk [vmem:[#allocation3 + $0x118] sm:$0xff] %vm9798_vm1, %v2081_v45  ;;  %vm9801_vm14 = vmmov %vm9796_vm0  ;;  %2375 = vrot.lane.b32.xlu1 %v2353_v47, %s6139_s24  ;;  %v2250_v19 = vsel %vm9808_vm7, %v2234_v62, 0.0  ;;  %vm2162_vm8 = vcmask 1048064   ;;  %vm6141_vm5 = vmmov 1  }
 0x343   :  { %2533 = vst.msk [vmem:[#allocation3 + $0x70] sm:$0xff] %vm9799_vm2, %v2525_v59  ;;  %vm9804_vm3 = vmmov %vm9796_vm0  ;;  %v2258_v42 = vpack.c.bf16 %v2250_v19, %v2249_v12 }
 0x344   :  { %2534 = vst.msk [vmem:[#allocation3 + $0x98] sm:$0xff] %vm9800_vm15, %v2526_v41  ;;  %vm9805_vm4 = vmmov %vm9796_vm0 }
 0x345   :  { %2535 = vst.msk [vmem:[#allocation3 + $0xc0] sm:$0xff] %vm9801_vm14, %v2527_v48  ;;  %2487 = vrot.lane.b32.xlu0 %v2465_v30, %s6139_s24  ;;  %v5887_v48 = vld [vmem:[%s9543_s5 + $0x108] sm:$0xff]   ;;  %vm9809_vm9 = vmmov %vm9796_vm0 }
 0x346   :  { %2536 = vst.msk [vmem:[#allocation3 + $0xe8] sm:$0xff] %vm9796_vm0, %v2528_v61  ;;  %2144 = vrot.lane.b32.xlu1 %v2125_v8, %s6139_s24  ;;  %vm9810_vm10 = vmmov %vm9796_vm0 }
 0x347   :  { %2537 = vst.msk [vmem:[#allocation3 + $0x110] sm:$0xff] %vm9804_vm3, %v2529_v29  ;;  %vm9811_vm11 = vmmov %vm9796_vm0 }
 0x348   :  { %2538 = vst.msk [vmem:[#allocation3 + $0x138] sm:$0xff] %vm9805_vm4, %v2530_v55  ;;  %vm9812_vm12 = vmmov %vm9796_vm0 }
 0x349   :  { %2273 = vrot.lane.b32.xlu0 %v2254_v11, %s6139_s24  ;;  %vm9813_vm13 = vmmov %vm9796_vm0 }
 0x34a   :  { %2377 = vrot.lane.b32.xlu1 %v2354_v46, %s6139_s24  ;;  %vm9814_vm14 = vmmov %vm9796_vm0 }
 0x34b   :  { %vm9815_vm15 = vmmov %vm9796_vm0 }
 0x34c   :  { %vm9816_vm1 = vmmov %vm9796_vm0 }
 0x34d   :  { %2489 = vrot.lane.b32.xlu0 %v2466_v13, %s6139_s24 }
 0x34e   :  { %2146 = vrot.lane.b32.xlu1 %v2126_v25, %s6139_s24 }
 0x351   :  { %2275 = vrot.lane.b32.xlu0 %v2255_v63, %s6139_s24 }
 0x352   :  { %2148 = vrot.lane.b32.xlu1 %v2127_v5, %s6139_s24 }
 0x355   :  { %2277 = vrot.lane.b32.xlu0 %v2256_v22, %s6139_s24 }
 0x356   :  { %2150 = vrot.lane.b32.xlu1 %v2128_v49, %s6139_s24 }
 0x359   :  { %2279 = vrot.lane.b32.xlu0 %v2257_v39, %s6139_s24 }
 0x35a   :  { %2152 = vrot.lane.b32.xlu1 %v2129_v18, %s6139_s24 }
 0x35d   :  { %2281 = vrot.lane.b32.xlu0 %v2258_v42, %s6139_s24 }
 0x387   :  { %v2476_v1 = vpop.permute.xlu0 %2475 }
 0x388   :  { %v2478_v45 = vpop.permute.xlu1 %2477  ;;  %2499 = vst.msk [vmem:[#allocation3 + $0x18] sm:$0xff] %vm2162_vm8, %v2476_v1 }
 0x389   :  { %2500 = vst.msk [vmem:[#allocation3 + $0x40] sm:$0xff] %vm2162_vm8, %v2478_v45 }
 0x38b   :  { %v2364_v36 = vpop.permute.xlu0 %2363 }
 0x38c   :  { %v2366_v0 = vpop.permute.xlu1 %2365  ;;  %2387 = vst.msk [vmem:[#allocation3 + $0x10] sm:$0xff] %vm2162_vm8, %v2364_v36 }
 0x38d   :  { %2388 = vst.msk [vmem:[#allocation3 + $0x38] sm:$0xff] %vm2162_vm8, %v2366_v0 }
 0x38f   :  { %v2480_v33 = vpop.permute.xlu0 %2479  ;;  %v2542_v59 = vld [vmem:[#allocation3 + $0x18] sm:$0xff] }
 0x390   :  { %v2368_v41 = vpop.permute.xlu1 %2367  ;;  %2501 = vst.msk [vmem:[#allocation3 + $0x68] sm:$0xff] %vm2162_vm8, %v2480_v33  ;;  %3027 = vmatprep.mubr.bf16.mxu1 %v2542_v59  ;;  %v2547_v55 = vld [vmem:[#allocation3 + $0x40] sm:$0xff] }
 0x391   :  { %2389 = vst.msk [vmem:[#allocation3 + $0x60] sm:$0xff] %vm2162_vm8, %v2368_v41  ;;  %v2543_v33 = vld [vmem:[#allocation3 + $0x20] sm:$0xff] }
 0x393   :  { %v2482_v35 = vpop.permute.xlu0 %2481  ;;  %v2541_v61 = vld [vmem:[#allocation3 + $0x10] sm:$0xff] }
 0x394   :  { %v2370_v29 = vpop.permute.xlu1 %2369  ;;  %2502 = vst.msk [vmem:[#allocation3 + $0x90] sm:$0xff] %vm2162_vm8, %v2482_v35  ;;  %3028 = vmatmul.mubr.bf16.vlgmr.msra.gmra.mrb[0].mxu1 %v2541_v61  ;;  %v2553_v35 = vld [vmem:[#allocation3 + $0x70] sm:$0xff] }
 0x395   :  { %2390 = vst.msk [vmem:[#allocation3 + $0x88] sm:$0xff] %vm2162_vm8, %v2370_v29  ;;  %5642 = vmatpush3.bf16.msra.mxu1 %v8435_v6  ;;  %3035 = vmatprep.mubr.bf16.mxu1 %v2547_v55  ;;  %v2546_v6 = vld [vmem:[#allocation3 + $0x38] sm:$0xff]  ;;  %v2563_v55 = vld [vmem:[#allocation3 + $0xc0] sm:$0xff] }
 0x396   :  { %5643 = vmatprep.subr.bf16.mxu1 %v5887_v48  ;;  %v2558_v29 = vld [vmem:[#allocation3 + $0x98] sm:$0xff] }
 0x397   :  { %v2268_v7 = vpop.permute.xlu0 %2267  ;;  %v2552_v43 = vld [vmem:[#allocation3 + $0x68] sm:$0xff] }
 0x398   :  { %2291 = vst.msk [vmem:[#allocation3 + $0x8] sm:$0xff] %vm2162_vm8, %v2268_v7  ;;  %v2551_v47 = vld [vmem:[#allocation3 + $0x60] sm:$0xff]  ;;  %v2573_v7 = vld [vmem:[#allocation3 + $0x110] sm:$0xff] }
 0x399   :  { %v2139_v44 = vpop.permute.xlu1 %2138  ;;  %5644 = vmatpush3.bf16.msra.mxu1 %v5887_v48  ;;  %v2548_v48 = vld [vmem:[#allocation3 + $0x48] sm:$0xff] }
 0x39a   :  { %2163 = vst.msk [vmem:[#allocation3] sm:$0xff] %vm2162_vm8, %v2139_v44  ;;  %5645 = vmatprep.subr.bf16.mxu1 %v5888_v27  ;;  %v2578_v44 = vld [vmem:[#allocation3 + $0x138] sm:$0xff] }
 0x39b   :  { %v2557_v57 = vld [vmem:[#allocation3 + $0x90] sm:$0xff] }
 0x39c   :  { %3036 = vmatmul.mubr.bf16.gmra.mrb[4].mxu1 %v2546_v6  ;;  %v2556_v21 = vld [vmem:[#allocation3 + $0x88] sm:$0xff] }
 0x39d   :  { %v2484_v32 = vpop.permute.xlu0 %2483  ;;  %3043 = vmatprep.mubr.bf16.mxu1 %v2552_v43  ;;  %5646 = vmatpush3.bf16.msra.mxu1 %v5888_v27  ;;  %v2568_v27 = vld [vmem:[#allocation3 + $0xe8] sm:$0xff] }
 0x39e   :  { %2503 = vst.msk [vmem:[#allocation3 + $0xb8] sm:$0xff] %vm2162_vm8, %v2484_v32  ;;  %5647 = vmatprep.subr.bf16.mxu1 %v5889_v24 }
 0x39f   :  { %v2540_v37 = vld [vmem:[#allocation3 + $0x8] sm:$0xff] }
 0x3a0   :  { %2930 = vmatprep.mubr.bf16.mxu0 %v2540_v37 }
 0x3a1   :  { %v2372_v16 = vpop.permute.xlu1 %2371  ;;  %v2270_v51 = vpop.permute.xlu0 %2269  ;;  %v2539_v4 = vld [vmem:[#allocation3] sm:$0xff]  ;;  %5648 = vmatpush3.bf16.msra.mxu1 %v5889_v24 }
 0x3a2   :  { %2391 = vst.msk [vmem:[#allocation3 + $0xb0] sm:$0xff] %vm2162_vm8, %v2372_v16  ;;  %2292 = vst.msk [vmem:[#allocation3 + $0x30] sm:$0xff] %vm2162_vm8, %v2270_v51  ;;  %2931 = vmatmul.mubr.bf16.vlgmr.msra.gmra.mrb[128].mxu0 %v2539_v4 }
 0x3a4   :  { %3044 = vmatmul.mubr.bf16.gmra.mrb[8].mxu1 %v2551_v47 }
 0x3a5   :  { %3051 = vmatprep.mubr.bf16.mxu1 %v2557_v57  ;;  %v2562_v2 = vld [vmem:[#allocation3 + $0xb8] sm:$0xff] }
 0x3a7   :  { %v2141_v17 = vpop.permute.xlu1 %2140 }
 0x3a8   :  { %2164 = vst.msk [vmem:[#allocation3 + $0x28] sm:$0xff] %vm2162_vm8, %v2141_v17 }
 0x3a9   :  { %v2545_v8 = vld [vmem:[#allocation3 + $0x30] sm:$0xff] }
 0x3aa   :  { %2938 = vmatprep.mubr.bf16.mxu0 %v2545_v8  ;;  %v2561_v10 = vld [vmem:[#allocation3 + $0xb0] sm:$0xff] }
 0x3ac   :  { %v2374_v20 = vpop.permute.xlu1 %2373  ;;  %3052 = vmatmul.mubr.bf16.gmra.mrb[12].mxu1 %v2556_v21 }
 0x3ad   :  { %2392 = vst.msk [vmem:[#allocation3 + $0xd8] sm:$0xff] %vm2162_vm8, %v2374_v20  ;;  %3059 = vmatprep.mubr.bf16.mxu1 %v2562_v2 }
 0x3af   :  { %v2486_v30 = vpop.permute.xlu0 %2485  ;;  %v2544_v53 = vld [vmem:[#allocation3 + $0x28] sm:$0xff] }
 0x3b0   :  { %2504 = vst.msk [vmem:[#allocation3 + $0xe0] sm:$0xff] %vm2162_vm8, %v2486_v30  ;;  %v2143_v31 = vpop.permute.xlu1 %2142  ;;  %2939 = vmatmul.mubr.bf16.gmra.mrb[132].mxu0 %v2544_v53 }
 0x3b1   :  { %2165 = vst.msk [vmem:[#allocation3 + $0x50] sm:$0xff] %vm2162_vm8, %v2143_v31 }
 0x3b3   :  { %v2272_v11 = vpop.permute.xlu0 %2271 }
 0x3b4   :  { %2293 = vst.msk [vmem:[#allocation3 + $0x58] sm:$0xff] %vm2162_vm8, %v2272_v11  ;;  %v2376_v60 = vpop.permute.xlu1 %2375  ;;  %3060 = vmatmul.mubr.bf16.gmra.mrb[16].mxu1 %v2561_v10  ;;  %v2566_v5 = vld [vmem:[#allocation3 + $0xd8] sm:$0xff]  ;;  %v8698_v11 = vld [vmem:[%s9544_s6] ss:$0 sm:$0xff] }
 0x3b5   :  { %2393 = vst.msk [vmem:[#allocation3 + $0x100] sm:$0xff] %vm2162_vm8, %v2376_v60 }
 0x3b7   :  { %v2488_v28 = vpop.permute.xlu0 %2487  ;;  %v2567_v25 = vld [vmem:[#allocation3 + $0xe0] sm:$0xff] }
 0x3b8   :  { %2505 = vst.msk [vmem:[#allocation3 + $0x108] sm:$0xff] %vm2162_vm8, %v2488_v28  ;;  %v2145_v14 = vpop.permute.xlu1 %2144  ;;  %v2549_v9 = vld [vmem:[#allocation3 + $0x50] sm:$0xff]  ;;  %3067 = vmatprep.mubr.bf16.mxu1 %v2567_v25 }
 0x3b9   :  { %2166 = vst.msk [vmem:[#allocation3 + $0x78] sm:$0xff] %vm2162_vm8, %v2145_v14 }
 0x3bb   :  { %v2274_v13 = vpop.permute.xlu0 %2273  ;;  %v2550_v46 = vld [vmem:[#allocation3 + $0x58] sm:$0xff] }
 0x3bc   :  { %2294 = vst.msk [vmem:[#allocation3 + $0x80] sm:$0xff] %vm2162_vm8, %v2274_v13  ;;  %2946 = vmatprep.mubr.bf16.mxu0 %v2550_v46  ;;  %v2378_v63 = vpop.permute.xlu1 %2377  ;;  %3068 = vmatmul.mubr.bf16.gmra.mrb[20].mxu1 %v2566_v5  ;;  %v2571_v42 = vld [vmem:[#allocation3 + $0x100] sm:$0xff] }
 0x3bd   :  { %2947 = vmatmul.mubr.bf16.gmra.mrb[136].mxu0 %v2549_v9  ;;  %2394 = vst.msk [vmem:[#allocation3 + $0x128] sm:$0xff] %vm2162_vm8, %v2378_v63 }
 0x3bf   :  { %v2490_v15 = vpop.permute.xlu0 %2489  ;;  %v2572_v23 = vld [vmem:[#allocation3 + $0x108] sm:$0xff] }
 0x3c0   :  { %2506 = vst.msk [vmem:[#allocation3 + $0x130] sm:$0xff] %vm2162_vm8, %v2490_v15  ;;  %v2147_v3 = vpop.permute.xlu1 %2146  ;;  %v2554_v58 = vld [vmem:[#allocation3 + $0x78] sm:$0xff]  ;;  %3075 = vmatprep.mubr.bf16.mxu1 %v2572_v23 }
 0x3c1   :  { %2167 = vst.msk [vmem:[#allocation3 + $0xa0] sm:$0xff] %vm2162_vm8, %v2147_v3 }
 0x3c3   :  { %v2276_v50 = vpop.permute.xlu0 %2275  ;;  %v2555_v38 = vld [vmem:[#allocation3 + $0x80] sm:$0xff] }
 0x3c4   :  { %2295 = vst.msk [vmem:[#allocation3 + $0xa8] sm:$0xff] %vm2162_vm8, %v2276_v50  ;;  %2954 = vmatprep.mubr.bf16.mxu0 %v2555_v38  ;;  %v2149_v26 = vpop.permute.xlu1 %2148  ;;  %3076 = vmatmul.mubr.bf16.gmra.mrb[24].mxu1 %v2571_v42  ;;  %v2576_v0 = vld [vmem:[#allocation3 + $0x128] sm:$0xff] }
 0x3c5   :  { %2955 = vmatmul.mubr.bf16.gmra.mrb[140].mxu0 %v2554_v58  ;;  %2168 = vst.msk [vmem:[#allocation3 + $0xc8] sm:$0xff] %vm2162_vm8, %v2149_v26 }
 0x3c7   :  { %v2278_v22 = vpop.permute.xlu0 %2277  ;;  %v2577_v1 = vld [vmem:[#allocation3 + $0x130] sm:$0xff] }
 0x3c8   :  { %2296 = vst.msk [vmem:[#allocation3 + $0xd0] sm:$0xff] %vm2162_vm8, %v2278_v22  ;;  %v2151_v39 = vpop.permute.xlu1 %2150  ;;  %v2559_v49 = vld [vmem:[#allocation3 + $0xa0] sm:$0xff]  ;;  %3083 = vmatprep.mubr.bf16.mxu1 %v2577_v1 }
 0x3c9   :  { %2169 = vst.msk [vmem:[#allocation3 + $0xf0] sm:$0xff] %vm2162_vm8, %v2151_v39 }
 0x3cb   :  { %v2280_v40 = vpop.permute.xlu0 %2279  ;;  %v2560_v62 = vld [vmem:[#allocation3 + $0xa8] sm:$0xff] }
 0x3cc   :  { %2297 = vst.msk [vmem:[#allocation3 + $0xf8] sm:$0xff] %vm2162_vm8, %v2280_v40  ;;  %2962 = vmatprep.mubr.bf16.mxu0 %v2560_v62  ;;  %v2153_v18 = vpop.permute.xlu1 %2152  ;;  %v2564_v45 = vld [vmem:[#allocation3 + $0xc8] sm:$0xff]  ;;  %3084 = vmatmul.mubr.bf16.gmra.mrb[28].mxu1 %v2576_v0 }
 0x3cd   :  { %2963 = vmatmul.mubr.bf16.gmra.mrb[144].mxu0 %v2559_v49  ;;  %2170 = vst.msk [vmem:[#allocation3 + $0x118] sm:$0xff] %vm2162_vm8, %v2153_v18  ;;  %5649 = vmatprep.mubr.msk.bf16.mxu1 %vm9809_vm9, %v2543_v33 }
 0x3cf   :  { %v2282_v12 = vpop.permute.xlu0 %2281  ;;  %v2565_v19 = vld [vmem:[#allocation3 + $0xd0] sm:$0xff] }
 0x3d0   :  { %2298 = vst.msk [vmem:[#allocation3 + $0x120] sm:$0xff] %vm2162_vm8, %v2282_v12  ;;  %2970 = vmatprep.mubr.bf16.mxu0 %v2565_v19  ;;  %v2569_v59 = vld [vmem:[#allocation3 + $0xf0] sm:$0xff] }
 0x3d3   :  { %v2570_v36 = vld [vmem:[#allocation3 + $0xf8] sm:$0xff] }
 0x3d4   :  { %5650 = vmatmul.mubr.msk.bf16.vlgmr.msra.gmra.mrb[32].mxu1 %vm9810_vm10, %v2548_v48  ;;  %v2574_v61 = vld [vmem:[#allocation3 + $0x118] sm:$0xff] }
 0x3d5   :  { %2971 = vmatmul.mubr.bf16.gmra.mrb[148].mxu0 %v2564_v45  ;;  %5653 = vmatprep.mubr.msk.bf16.mxu1 %vm9811_vm11, %v2553_v35 }
 0x3d6   :  { %2978 = vmatprep.mubr.bf16.mxu0 %v2570_v36 }
 0x3d7   :  { %v2575_v41 = vld [vmem:[#allocation3 + $0x120] sm:$0xff] }
 0x3dc   :  { %5654 = vmatmul.mubr.msk.bf16.gmra.mrb[36].mxu1 %vm9812_vm12, %v2558_v29 }
 0x3dd   :  { %2979 = vmatmul.mubr.bf16.gmra.mrb[152].mxu0 %v2569_v59  ;;  %5657 = vmatprep.mubr.msk.bf16.mxu1 %vm9813_vm13, %v2563_v55 }
 0x3de   :  { %2986 = vmatprep.mubr.bf16.mxu0 %v2575_v41 }
 0x3e4   :  { %5658 = vmatmul.mubr.msk.bf16.gmra.mrb[40].mxu1 %vm9814_vm14, %v2568_v27 }
 0x3e5   :  { %2987 = vmatmul.mubr.bf16.gmra.mrb[156].mxu0 %v2574_v61  ;;  %5661 = vmatprep.mubr.msk.bf16.mxu1 %vm9815_vm15, %v2573_v7 }
 0x3ec   :  { %5662 = vmatmul.mubr.msk.bf16.gmra.mrb[44].mxu1 %vm9816_vm1, %v2578_v44  ;;  %vm5055_vm1 = vcmask 1041409  }
 0x467   :  { %v5546_v24 = vpop.f32.mrb[0].mxu1 }
 0x468   :  { %v5547_v32 = vpop.f32.mrb[1].mxu1 }
 0x469   :  { %v5548_v6 = vadd.f32 %v5547_v32, %v5546_v24  ;;  %v5549_v16 = vpop.f32.mrb[2].mxu1 }
 0x46a   :  { %v5550_v43 = vpop.f32.mrb[3].mxu1 }
 0x46b   :  { %v5551_v51 = vadd.f32 %v5550_v43, %v5549_v16 }
 0x46f   :  { %v5552_v37 = vpop.f32.mrb[4].mxu1 }
 0x470   :  { %v5553_v17 = vpop.f32.mrb[5].mxu1 }
 0x471   :  { %v5554_v4 = vadd.f32 %v5553_v17, %v5552_v37  ;;  %v5555_v30 = vpop.f32.mrb[6].mxu1 }
 0x472   :  { %v5556_v47 = vpop.f32.mrb[7].mxu1 }
 0x473   :  { %v5557_v20 = vadd.f32 %v5556_v47, %v5555_v30 }
 0x475   :  { %v5482_v57 = vpop.f32.mrb[128].mxu0 }
 0x476   :  { %v5483_v8 = vpop.f32.mrb[129].mxu0 }
 0x477   :  { %v5484_v31 = vadd.f32 %v5483_v8, %v5482_v57  ;;  %v5485_v53 = vpop.f32.mrb[130].mxu0  ;;  %v5558_v21 = vpop.f32.mrb[8].mxu1 }
 0x478   :  { %v5486_v28 = vpop.f32.mrb[131].mxu0  ;;  %v5559_v13 = vpop.f32.mrb[9].mxu1 }
 0x479   :  { %v2933_v60 = vadd.f32 %v5484_v31, %v8698_v11  ;;  %v5487_v2 = vadd.f32 %v5486_v28, %v5485_v53  ;;  %v5560_v46 = vadd.f32 %v5559_v13, %v5558_v21  ;;  %v5561_v14 = vpop.f32.mrb[10].mxu1  ;;  %v5895_v21 = vld [vmem:[%s9547_s9 + $0x14] ss:$8 sps:$4 sm:$0xff]  }
 0x47a   :  { %v5562_v15 = vpop.f32.mrb[11].mxu1 }
 0x47b   :  { %v2936_v9 = vadd.f32 %v5487_v2, %v8698_v11  ;;  %v8702_v10 = vadd.f32 %v5548_v6, %v2933_v60  ;;  %v5563_v63 = vadd.f32 %v5562_v15, %v5561_v14  ;;  %v5893_v2 = vld [vmem:[%s9547_s9 + $0x10] ss:$8 sps:$4 sm:$0xff]  }
 0x47d   :  { %v8704_v50 = vadd.f32 %v5551_v51, %v2936_v9  ;;  %v5892_v51 = vld [vmem:[%s9547_s9 + $0x4] ss:$8 sps:$4 sm:$0xff]  }
 0x47e   :  { %4598 = vmatprep.subr.bf16.mxu1 %v5892_v51 }
 0x47f   :  { %v5564_v5 = vpop.f32.mrb[12].mxu1 }
 0x480   :  { %v5565_v40 = vpop.f32.mrb[13].mxu1 }
 0x481   :  { %v5566_v62 = vadd.f32 %v5565_v40, %v5564_v5  ;;  %v5567_v39 = vpop.f32.mrb[14].mxu1 }
 0x482   :  { %v5568_v12 = vpop.f32.mrb[15].mxu1 }
 0x483   :  { %v5488_v25 = vpop.f32.mrb[132].mxu0  ;;  %v5569_v42 = vadd.f32 %v5568_v12, %v5567_v39 }
 0x484   :  { %v5489_v38 = vpop.f32.mrb[133].mxu0 }
 0x485   :  { %v5490_v3 = vadd.f32 %v5489_v38, %v5488_v25  ;;  %v5491_v58 = vpop.f32.mrb[134].mxu0 }
 0x486   :  { %v5492_v22 = vpop.f32.mrb[135].mxu0 }
 0x487   :  { %v2941_v26 = vadd.f32 %v5490_v3, %v8698_v11  ;;  %v5493_v23 = vadd.f32 %v5492_v22, %v5491_v58  ;;  %v5570_v59 = vpop.f32.mrb[16].mxu1  ;;  %v5896_v3 = vld [vmem:[%s9547_s9 + $0x20] ss:$8 sps:$4 sm:$0xff]  }
 0x488   :  { %v5571_v35 = vpop.f32.mrb[17].mxu1 }
 0x489   :  { %v2944_v49 = vadd.f32 %v5493_v23, %v8698_v11  ;;  %v8708_v19 = vadd.f32 %v5554_v4, %v2941_v26  ;;  %v5572_v61 = vadd.f32 %v5571_v35, %v5570_v59  ;;  %v5573_v29 = vpop.f32.mrb[18].mxu1  ;;  %v5890_v4 = vld [vmem:[%s9547_s9] ss:$8 sps:$4 sm:$0xff]   ;;  %v5904_v59 = vld [vmem:[%s9547_s9 + $0x44] ss:$8 sps:$4 sm:$0xff]  }
 0x48a   :  { %v5574_v27 = vpop.f32.mrb[19].mxu1  ;;  %4599 = vmatpush1.bf16.msra.mxu1 %v5890_v4  ;;  %v5902_v35 = vld [vmem:[%s9547_s9 + $0x40] ss:$8 sps:$4 sm:$0xff]  }
 0x48b   :  { %v8710_v1 = vadd.f32 %v5557_v20, %v2944_v49  ;;  %v5575_v44 = vadd.f32 %v5574_v27, %v5573_v29  ;;  %4600 = vmatprep.subr.bf16.mxu1 %v5895_v21  ;;  %v5901_v49 = vld [vmem:[%s9547_s9 + $0x34] ss:$8 sps:$4 sm:$0xff]  }
 0x48e   :  { %4601 = vmatpush1.bf16.msra.mxu1 %v5893_v2 }
 0x48f   :  { %v5576_v17 = vpop.f32.mrb[20].mxu1 }
 0x490   :  { %v5494_v18 = vpop.f32.mrb[136].mxu0  ;;  %v5577_v20 = vpop.f32.mrb[21].mxu1 }
 0x491   :  { %v5495_v45 = vpop.f32.mrb[137].mxu0  ;;  %v5578_v57 = vadd.f32 %v5577_v20, %v5576_v17  ;;  %v5579_v8 = vpop.f32.mrb[22].mxu1 }
 0x492   :  { %v5496_v36 = vadd.f32 %v5495_v45, %v5494_v18  ;;  %v5497_v0 = vpop.f32.mrb[138].mxu0  ;;  %v5580_v53 = vpop.f32.mrb[23].mxu1 }
 0x493   :  { %v5498_v33 = vpop.f32.mrb[139].mxu0  ;;  %v5581_v60 = vadd.f32 %v5580_v53, %v5579_v8  ;;  %v5908_v53 = vld [vmem:[%s9547_s9 + $0x60] ss:$8 sps:$4 sm:$0xff]  }
 0x494   :  { %v2949_v41 = vadd.f32 %v5496_v36, %v8698_v11  ;;  %v5499_v48 = vadd.f32 %v5498_v33, %v5497_v0 }
 0x496   :  { %v2952_v55 = vadd.f32 %v5499_v48, %v8698_v11  ;;  %v8714_v7 = vadd.f32 %v5560_v46, %v2949_v41 }
 0x497   :  { %v5582_v38 = vpop.f32.mrb[24].mxu1 }
 0x498   :  { %v5500_v24 = vpop.f32.mrb[140].mxu0  ;;  %v8716_v32 = vadd.f32 %v5563_v63, %v2952_v55  ;;  %v5898_v63 = vld [vmem:[%s9547_s9 + $0x24] ss:$8 sps:$4 sm:$0xff]   ;;  %v5583_v5 = vpop.f32.mrb[25].mxu1 }
 0x499   :  { %v5501_v6 = vpop.f32.mrb[141].mxu0  ;;  %4602 = vmatprep.subr.bf16.mxu1 %v5898_v63  ;;  %v5584_v26 = vadd.f32 %v5583_v5, %v5582_v38  ;;  %v5585_v23 = vpop.f32.mrb[26].mxu1 }
 0x49a   :  { %v5502_v16 = vadd.f32 %v5501_v6, %v5500_v24  ;;  %v5503_v43 = vpop.f32.mrb[142].mxu0  ;;  %4603 = vmatpush1.bf16.msra.mxu1 %v5896_v3 }
 0x49b   :  { %v5504_v37 = vpop.f32.mrb[143].mxu0  ;;  %4604 = vmatprep.subr.bf16.mxu1 %v5901_v49 }
 0x49c   :  { %v2957_v30 = vadd.f32 %v5502_v16, %v8698_v11  ;;  %v5505_v47 = vadd.f32 %v5504_v37, %v5503_v43  ;;  %v5907_v43 = vld [vmem:[%s9547_s9 + $0x54] ss:$8 sps:$4 sm:$0xff]   ;;  %v5905_v37 = vld [vmem:[%s9547_s9 + $0x50] ss:$8 sps:$4 sm:$0xff]  }
 0x49e   :  { %v2960_v31 = vadd.f32 %v5505_v47, %v8698_v11  ;;  %v8726_v28 = vadd.f32 %v5566_v62, %v2957_v30  ;;  %v5586_v62 = vpop.f32.mrb[27].mxu1 }
 0x49f   :  { %v5587_v12 = vadd.f32 %v5586_v62, %v5585_v23  ;;  %v5588_v48 = vpop.f32.mrb[28].mxu1 }
 0x4a0   :  { %v5506_v13 = vpop.f32.mrb[144].mxu0  ;;  %v8734_v46 = vadd.f32 %v5569_v42, %v2960_v31  ;;  %v5899_v42 = vld [vmem:[%s9547_s9 + $0x30] ss:$8 sps:$4 sm:$0xff]   ;;  %v5589_v55 = vpop.f32.mrb[29].mxu1 }
 0x4a1   :  { %v5507_v14 = vpop.f32.mrb[145].mxu0  ;;  %4605 = vmatpush1.bf16.msra.mxu1 %v5899_v42  ;;  %v5590_v27 = vadd.f32 %v5589_v55, %v5588_v48 }
 0x4a2   :  { %v5508_v9 = vadd.f32 %v5507_v14, %v5506_v13  ;;  %v5509_v15 = vpop.f32.mrb[146].mxu0  ;;  %4606 = vmatprep.subr.bf16.mxu1 %v5904_v59 }
 0x4a3   :  { %v5510_v25 = vpop.f32.mrb[147].mxu0 }
 0x4a4   :  { %v2965_v58 = vadd.f32 %v5508_v9, %v8698_v11  ;;  %v5511_v22 = vadd.f32 %v5510_v25, %v5509_v15 }
 0x4a5   :  { %4607 = vmatpush1.bf16.msra.mxu1 %v5902_v35 }
 0x4a6   :  { %v2968_v40 = vadd.f32 %v5511_v22, %v8698_v11  ;;  %v8744_v39 = vadd.f32 %v5572_v61, %v2965_v58  ;;  %4608 = vmatprep.subr.bf16.mxu1 %v5907_v43 }
 0x4a8   :  { %v5512_v18 = vpop.f32.mrb[148].mxu0  ;;  %v8752_v45 = vadd.f32 %v5575_v44, %v2968_v40  ;;  %v5591_v44 = vpop.f32.mrb[30].mxu1 }
 0x4a9   :  { %v5513_v36 = vpop.f32.mrb[149].mxu0  ;;  %v5592_v6 = vpop.f32.mrb[31].mxu1  ;;  %4609 = vmatpush1.bf16.msra.mxu1 %v5905_v37 }
 0x4aa   :  { %v5514_v0 = vadd.f32 %v5513_v36, %v5512_v18  ;;  %v5515_v33 = vpop.f32.mrb[150].mxu0  ;;  %v5593_v51 = vadd.f32 %v5592_v6, %v5591_v44  ;;  %v5651_v31 = vpop.f32.mrb[32].mxu1  ;;  %v5917_v44 = vld [vmem:[%s9547_s9 + $0x90] ss:$8 sps:$4 sm:$0xff]  }
 0x4ab   :  { %v5516_v41 = vpop.f32.mrb[151].mxu0  ;;  %v3126_v13 = vpop.f32.mrb[33].mxu1 }
 0x4ac   :  { %v2973_v61 = vadd.f32 %v5514_v0, %v8698_v11  ;;  %v5517_v29 = vadd.f32 %v5516_v41, %v5515_v33  ;;  %v8783_v14 = vadd.f32 %v3126_v13, %v8702_v10  ;;  %v5652_v9 = vpop.f32.mrb[34].mxu1  ;;  %v5911_v10 = vld [vmem:[%s9547_s9 + $0x70] ss:$8 sps:$4 sm:$0xff]  }
 0x4ad   :  { %v8787_v63 = vadd.f32 %v5652_v9, %v8710_v1  ;;  %v3129_v25 = vpop.f32.mrb[35].mxu1 }
 0x4ae   :  { %v2976_v24 = vadd.f32 %v5517_v29, %v8698_v11  ;;  %v8762_v16 = vadd.f32 %v5578_v57, %v2973_v61  ;;  %v5910_v57 = vld [vmem:[%s9547_s9 + $0x64] ss:$8 sps:$4 sm:$0xff]   ;;  %v8795_v3 = vadd.f32 %v3129_v25, %v8704_v50 }
 0x4af   :  { %4610 = vmatprep.subr.bf16.mxu1 %v5910_v57  ;;  %v5916_v50 = vld [vmem:[%s9547_s9 + $0x84] ss:$8 sps:$4 sm:$0xff]   ;;  %v5655_v49 = vpop.f32.mrb[36].mxu1 }
 0x4b0   :  { %v5518_v17 = vpop.f32.mrb[152].mxu0  ;;  %v8770_v4 = vadd.f32 %v5581_v60, %v2976_v24  ;;  %v8780_v60 = vadd.f32 %v5651_v31, %v8708_v19  ;;  %4611 = vmatpush1.bf16.msra.mxu1 %v5908_v53  ;;  %v5913_v19 = vld [vmem:[%s9547_s9 + $0x74] ss:$8 sps:$4 sm:$0xff]   ;;  %v3191_v1 = vadd.f32 %v8795_v3, %v8783_v14  ;;  %v8813_v36 = vadd.f32 %v5655_v49, %v8726_v28  ;;  %v3142_v0 = vpop.f32.mrb[37].mxu1 }
 0x4b1   :  { %v5519_v30 = vpop.f32.mrb[153].mxu0  ;;  %4612 = vmatprep.subr.bf16.mxu1 %v5913_v19  ;;  %v8816_v33 = vadd.f32 %v3142_v0, %v8714_v7  ;;  %v5656_v41 = vpop.f32.mrb[38].mxu1  ;;  %v5919_v28 = vld [vmem:[%s9547_s9 + $0x94] ss:$8 sps:$4 sm:$0xff]  }
 0x4b2   :  { %v5520_v47 = vadd.f32 %v5519_v30, %v5518_v17  ;;  %v5521_v20 = vpop.f32.mrb[154].mxu0  ;;  %v3192_v40 = vadd.f32 %v3191_v1, %v8780_v60  ;;  %v8821_v35 = vadd.f32 %v5656_v41, %v8734_v46  ;;  %v3145_v61 = vpop.f32.mrb[39].mxu1  ;;  %v5920_v46 = vld [vmem:[%s9547_s9 + $0xa0] ss:$8 sps:$4 sm:$0xff]  }
 0x4b3   :  { %v5522_v8 = vpop.f32.mrb[155].mxu0  ;;  %v8828_v7 = vadd.f32 %v3145_v61, %v8716_v32  ;;  %v5925_v32 = vld [vmem:[%s9547_s9 + $0xb4] ss:$8 sps:$4 sm:$0xff]  }
 0x4b4   :  { %v2981_v21 = vadd.f32 %v5520_v47, %v8698_v11  ;;  %v5523_v2 = vadd.f32 %v5522_v8, %v5521_v20  ;;  %4613 = vmatpush1.bf16.msra.mxu1 %v5911_v10  ;;  %v3193_v59 = vadd.f32 %v3192_v40, %v8787_v63  ;;  %v5923_v20 = vld [vmem:[%s9547_s9 + $0xb0] ss:$8 sps:$4 sm:$0xff]   ;;  %v5937_v40 = vld [vmem:[%s9547_s9 + $0xf4] ss:$8 sps:$4 sm:$0xff]  }
 0x4b5   :  { %4614 = vmatprep.subr.bf16.mxu1 %v5916_v50  ;;  %v5929_v10 = vld [vmem:[%s9547_s9 + $0xd0] ss:$8 sps:$4 sm:$0xff]  }
 0x4b6   :  { %v2984_v15 = vadd.f32 %v5523_v2, %v8698_v11  ;;  %v8789_v38 = vadd.f32 %v5584_v26, %v2981_v21  ;;  %v3194_v55 = vadd.f32 %v3193_v59, %v8816_v33  ;;  %v5926_v21 = vld [vmem:[%s9547_s9 + $0xc0] ss:$8 sps:$4 sm:$0xff]  }
 0x4b7   :  { %v5659_v43 = vpop.f32.mrb[40].mxu1 }
 0x4b8   :  { %v5524_v58 = vpop.f32.mrb[156].mxu0  ;;  %v8800_v22 = vadd.f32 %v5587_v12, %v2984_v15  ;;  %v5914_v12 = vld [vmem:[%s9547_s9 + $0x80] ss:$8 sps:$4 sm:$0xff]   ;;  %v3158_v37 = vpop.f32.mrb[41].mxu1 }
 0x4b9   :  { %v5525_v5 = vpop.f32.mrb[157].mxu0  ;;  %4615 = vmatpush1.bf16.msra.mxu1 %v5914_v12  ;;  %v3159_v17 = vadd.f32 %v3158_v37, %v8744_v39  ;;  %v5660_v47 = vpop.f32.mrb[42].mxu1  ;;  %v5935_v12 = vld [vmem:[%s9547_s9 + $0xf0] ss:$8 sps:$4 sm:$0xff]  }
 0x4ba   :  { %v5526_v26 = vadd.f32 %v5525_v5, %v5524_v58  ;;  %v5527_v23 = vpop.f32.mrb[158].mxu0  ;;  %4616 = vmatprep.subr.bf16.mxu1 %v5919_v28  ;;  %v3170_v57 = vadd.f32 %v5660_v47, %v8770_v4  ;;  %v3161_v8 = vpop.f32.mrb[43].mxu1  ;;  %v5931_v4 = vld [vmem:[%s9547_s9 + $0xd4] ss:$8 sps:$4 sm:$0xff]   ;;  %v5934_v5 = vld [vmem:[%s9547_s9 + $0xe4] ss:$8 sps:$4 sm:$0xff]  }
 0x4bb   :  { %v5528_v62 = vpop.f32.mrb[159].mxu0  ;;  %v3162_v53 = vadd.f32 %v3161_v8, %v8752_v45 }
 0x4bc   :  { %v2989_v42 = vadd.f32 %v5526_v26, %v8698_v11  ;;  %v5529_v18 = vadd.f32 %v5528_v62, %v5527_v23 }
 0x4bd   :  { %4617 = vmatpush1.bf16.msra.mxu1 %v5917_v44 }
 0x4be   :  { %v2992_v48 = vadd.f32 %v5529_v18, %v8698_v11  ;;  %v3086_v29 = vadd.f32 %v5590_v27, %v2989_v42  ;;  %v3195_v11 = vadd.f32 %v3194_v55, %v8828_v7  ;;  %v5922_v27 = vld [vmem:[%s9547_s9 + $0xa4] ss:$8 sps:$4 sm:$0xff]  }
 0x4bf   :  { %4618 = vmatprep.subr.bf16.mxu1 %v5922_v27  ;;  %v5663_v13 = vpop.f32.mrb[44].mxu1 }
 0x4c0   :  { %v3089_v24 = vadd.f32 %v5593_v51, %v2992_v48  ;;  %v3196_v6 = vadd.f32 %v3195_v11, %v8813_v36  ;;  %v8845_v51 = vadd.f32 %v5659_v43, %v8762_v16  ;;  %v5928_v16 = vld [vmem:[%s9547_s9 + $0xc4] ss:$8 sps:$4 sm:$0xff]   ;;  %v3183_v9 = vadd.f32 %v5663_v13, %v3086_v29  ;;  %v3174_v15 = vpop.f32.mrb[45].mxu1 }
 0x4c1   :  { %4619 = vmatpush1.bf16.msra.mxu1 %v5920_v46  ;;  %v3175_v25 = vadd.f32 %v3174_v15, %v8789_v38  ;;  %v5664_v45 = vpop.f32.mrb[46].mxu1  ;;  %v5932_v38 = vld [vmem:[%s9547_s9 + $0xe0] ss:$8 sps:$4 sm:$0xff]  }
 0x4c2   :  { %v3197_v30 = vadd.f32 %v3196_v6, %v8821_v35  ;;  %4620 = vmatprep.subr.bf16.mxu1 %v5925_v32  ;;  %v3186_v58 = vadd.f32 %v5664_v45, %v3089_v24  ;;  %v3177_v1 = vpop.f32.mrb[47].mxu1 }
 0x4c3   :  { %v3178_v23 = vadd.f32 %v3177_v1, %v8800_v22  ;;  %v5940_v22 = vld [vmem:[%s9547_s9 + $0x104] ss:$8 sps:$4 sm:$0xff]  }
 0x4c4   :  { %v3198_v31 = vadd.f32 %v3197_v30, %v3159_v17 }
 0x4c5   :  { %4621 = vmatpush1.bf16.msra.mxu1 %v5923_v20 }
 0x4c6   :  { %v3199_v39 = vadd.f32 %v3198_v31, %v3162_v53  ;;  %4622 = vmatprep.subr.bf16.mxu1 %v5928_v16 }
 0x4c8   :  { %v3200_v2 = vadd.f32 %v3199_v39, %v8845_v51 }
 0x4c9   :  { %4623 = vmatpush1.bf16.msra.mxu1 %v5926_v21 }
 0x4ca   :  { %v3201_v19 = vadd.f32 %v3200_v2, %v3170_v57  ;;  %4624 = vmatprep.subr.bf16.mxu1 %v5931_v4 }
 0x4cc   :  { %v3202_v26 = vadd.f32 %v3201_v19, %v3175_v25 }
 0x4cd   :  { %4625 = vmatpush1.bf16.msra.mxu1 %v5929_v10 }
 0x4ce   :  { %v3203_v50 = vadd.f32 %v3202_v26, %v3178_v23  ;;  %4626 = vmatprep.subr.bf16.mxu1 %v5934_v5 }
 0x4d0   :  { %v3204_v62 = vadd.f32 %v3203_v50, %v3183_v9 }
 0x4d1   :  { %4627 = vmatpush1.bf16.msra.mxu1 %v5932_v38 }
 0x4d2   :  { %v3205_v49 = vadd.f32 %v3204_v62, %v3186_v58  ;;  %4628 = vmatprep.subr.bf16.mxu1 %v5937_v40 }
 0x4d4   :  { %v3206_v42 = vrot.slane %v3205_v49, 4 }
 0x4d5   :  { %4629 = vmatpush1.bf16.msra.mxu1 %v5935_v12 }
 0x4d6   :  { %v3207_v18 = vadd.f32 %v3206_v42, %v3205_v49  ;;  %4651 = vmatprep.subr.bf16.mxu1 %v5940_v22 }
 0x4d8   :  { %v3208_v0 = vrot.slane %v3207_v18, 2 }
 0x4da   :  { %v3209_v59 = vadd.f32 %v3208_v0, %v3207_v18 }
 0x4dc   :  { %v3210_v41 = vrot.slane %v3209_v59, 1 }
 0x4de   :  { %v3211_v48 = vadd.f32 %v3210_v41, %v3209_v59 }
 0x4e0   :  { %v3212_v61 = vmul.f32 0.0078125, %v3211_v48 }
 0x4e2   :  { %v3213_v29 = vsub.f32 %v8783_v14, %v3212_v61  ;;  %v3214_v28 = vsub.f32 %v8795_v3, %v3212_v61  ;;  %v3215_v55 = vsub.f32 %v8780_v60, %v3212_v61  ;;  %v3216_v44 = vsub.f32 %v8787_v63, %v3212_v61 }
 0x4e3   :  { %v3217_v24 = vsub.f32 %v8816_v33, %v3212_v61  ;;  %v3218_v11 = vsub.f32 %v8828_v7, %v3212_v61  ;;  %v3219_v46 = vsub.f32 %v8813_v36, %v3212_v61  ;;  %v3220_v27 = vsub.f32 %v8821_v35, %v3212_v61 }
 0x4e4   :  { %v3221_v32 = vsub.f32 %v3159_v17, %v3212_v61  ;;  %v3222_v6 = vsub.f32 %v3162_v53, %v3212_v61  ;;  %v3223_v43 = vsub.f32 %v8845_v51, %v3212_v61  ;;  %v3224_v37 = vsub.f32 %v3170_v57, %v3212_v61 }
 0x4e5   :  { %v3225_v14 = vsub.f32 %v3175_v25, %v3212_v61  ;;  %v3226_v30 = vsub.f32 %v3178_v23, %v3212_v61  ;;  %v3227_v3 = vsub.f32 %v3183_v9, %v3212_v61  ;;  %v3228_v47 = vsub.f32 %v3186_v58, %v3212_v61 }
 0x4e6   :  { %v3229_v60 = vmul.f32 %v3213_v29, %v3213_v29  ;;  %v3230_v20 = vmul.f32 %v3214_v28, %v3214_v28  ;;  %v3231_v63 = vmul.f32 %v3215_v55, %v3215_v55  ;;  %v3232_v33 = vmul.f32 %v3216_v44, %v3216_v44 }
 0x4e7   :  { %v3233_v7 = vmul.f32 %v3217_v24, %v3217_v24  ;;  %v3234_v36 = vmul.f32 %v3218_v11, %v3218_v11  ;;  %v3235_v35 = vmul.f32 %v3219_v46, %v3219_v46  ;;  %v3236_v53 = vmul.f32 %v3220_v27, %v3220_v27 }
 0x4e8   :  { %v3245_v8 = vadd.f32 %v3230_v20, %v3229_v60  ;;  %v3237_v51 = vmul.f32 %v3221_v32, %v3221_v32  ;;  %v3238_v4 = vmul.f32 %v3222_v6, %v3222_v6  ;;  %v3239_v13 = vmul.f32 %v3223_v43, %v3223_v43  ;;  %v5289_v60 = vld [vmem:[%s9545_s7] ss:$0 sm:$0xff]  ;;  %s5138_s7 = sshll.u32 %s6142_s22, 4  ;;  %s5139_s7 = int_to_ptr.vmem [resolvable:$true] %s5138_s7 }
 0x4e9   :  { %v3240_v15 = vmul.f32 %v3224_v37, %v3224_v37  ;;  %v3241_v19 = vmul.f32 %v3225_v14, %v3225_v14  ;;  %v3242_v10 = vmul.f32 %v3226_v30, %v3226_v30  ;;  %v3243_v1 = vmul.f32 %v3227_v3, %v3227_v3  ;;  %p6119_p1 = scmp.lt.s32.totalorder %s5139_s7, %s5139_s7 }
 0x4ea   :  { %v3246_v16 = vadd.f32 %v3245_v8, %v3231_v63  ;;  %v3244_v26 = vmul.f32 %v3228_v47, %v3228_v47 }
 0x4ec   :  { %v3247_v31 = vadd.f32 %v3246_v16, %v3232_v33 }
 0x4ee   :  { %v3248_v39 = vadd.f32 %v3247_v31, %v3233_v7 }
 0x4f0   :  { %v3249_v17 = vadd.f32 %v3248_v39, %v3234_v36 }
 0x4f2   :  { %v3250_v21 = vadd.f32 %v3249_v17, %v3235_v35 }
 0x4f4   :  { %v3251_v57 = vadd.f32 %v3250_v21, %v3236_v53  ;;  %v5290_v21 = vld [vmem:[%s9546_s8] ss:$0 sm:$0xff]  ;;  %s6114_s8 = scalar_lea.vmem %s5139_s7, 32 }
 0x4f5   :  { %p6115_p0 = scmp.ne.s32.totalorder %s5139_s7, %s6114_s8  ;;  %p6120_p2 = scmp.lt.s32.totalorder %s6114_s8, %s6114_s8 }
 0x4f6   :  { %v3252_v2 = vadd.f32 %v3251_v57, %v3237_v51 }
 0x4f7   :  { %p6121_p3 = por %p6120_p2, %p6119_p1 }
 0x4f8   :  { %v3253_v9 = vadd.f32 %v3252_v2, %v3238_v4 }
 0x4f9   :  { %p6122_p4 = pnand %p6121_p3, %p6115_p0 }
 0x4fa   :  { %v3254_v25 = vadd.f32 %v3253_v9, %v3239_v13 }
 0x4fc   :  { %v3255_v45 = vadd.f32 %v3254_v25, %v3240_v15 }
 0x4fe   :  { %v3256_v58 = vadd.f32 %v3255_v45, %v3241_v19 }
 0x500   :  { %v3257_v5 = vadd.f32 %v3256_v58, %v3242_v10 }
 0x502   :  { %v3258_v23 = vadd.f32 %v3257_v5, %v3243_v1 }
 0x504   :  { %v3259_v50 = vadd.f32 %v3258_v23, %v3244_v26 }
 0x506   :  { %v3260_v38 = vrot.slane %v3259_v50, 4 }
 0x508   :  { %v3261_v40 = vadd.f32 %v3260_v38, %v3259_v50 }
 0x50a   :  { %v3262_v62 = vrot.slane %v3261_v40, 2 }
 0x50c   :  { %v3263_v49 = vadd.f32 %v3262_v62, %v3261_v40 }
 0x50e   :  { %v3264_v12 = vrot.slane %v3263_v49, 1 }
 0x510   :  { %v3265_v22 = vadd.f32 %v3264_v12, %v3263_v49 }
 0x512   :  { %v3266_v42 = vmul.f32 0.0078125, %v3265_v22 }
 0x514   :  { %v3267_v18 = vadd.f32 1e-05, %v3266_v42 }
 0x516   :  { %6108 = vrsqrt.f32 %v3267_v18 }
 0x520   :  { %v6109_v0 = vpop.eup %6108 }
 0x521   :  { %v3269_v59 = vmul.f32 %v6109_v0, %v3213_v29  ;;  %v3270_v41 = vmul.f32 %v6109_v0, %v3214_v28  ;;  %v3271_v48 = vmul.f32 %v6109_v0, %v3215_v55  ;;  %v3272_v61 = vmul.f32 %v6109_v0, %v3216_v44 }
 0x522   :  { %v3273_v20 = vmul.f32 %v6109_v0, %v3217_v24  ;;  %v3274_v63 = vmul.f32 %v6109_v0, %v3218_v11  ;;  %v3275_v8 = vmul.f32 %v6109_v0, %v3219_v46  ;;  %v3276_v33 = vmul.f32 %v6109_v0, %v3220_v27 }
 0x523   :  { %v3277_v16 = vmul.f32 %v6109_v0, %v3221_v32  ;;  %v3278_v7 = vmul.f32 %v6109_v0, %v3222_v6  ;;  %v3279_v31 = vmul.f32 %v6109_v0, %v3223_v43  ;;  %v3280_v36 = vmul.f32 %v6109_v0, %v3224_v37 }
 0x524   :  { %v3281_v39 = vmul.f32 %v6109_v0, %v3225_v14  ;;  %v3282_v35 = vmul.f32 %v6109_v0, %v3226_v30  ;;  %v3283_v17 = vmul.f32 %v6109_v0, %v3227_v3  ;;  %v3284_v53 = vmul.f32 %v6109_v0, %v3228_v47 }
 0x525   :  { %v3291_v29 = vmul.f32 %v5289_v60, %v3269_v59  ;;  %v3292_v28 = vmul.f32 %v5289_v60, %v3270_v41  ;;  %v3293_v55 = vmul.f32 %v5289_v60, %v3271_v48  ;;  %v3294_v44 = vmul.f32 %v5289_v60, %v3272_v61 }
 0x526   :  { %v3295_v24 = vmul.f32 %v5289_v60, %v3273_v20  ;;  %v3296_v11 = vmul.f32 %v5289_v60, %v3274_v63  ;;  %v3297_v46 = vmul.f32 %v5289_v60, %v3275_v8  ;;  %v3298_v27 = vmul.f32 %v5289_v60, %v3276_v33 }
 0x527   :  { %v3299_v32 = vmul.f32 %v5289_v60, %v3277_v16  ;;  %v3300_v6 = vmul.f32 %v5289_v60, %v3278_v7  ;;  %v3301_v43 = vmul.f32 %v5289_v60, %v3279_v31  ;;  %v3302_v37 = vmul.f32 %v5289_v60, %v3280_v36 }
 0x528   :  { %v3303_v14 = vmul.f32 %v5289_v60, %v3281_v39  ;;  %v3304_v30 = vmul.f32 %v5289_v60, %v3282_v35  ;;  %v3305_v3 = vmul.f32 %v5289_v60, %v3283_v17  ;;  %v3306_v47 = vmul.f32 %v5289_v60, %v3284_v53  ;;  %v5946_v17 = vld [vmem:[%s9547_s9 + $0x124] ss:$8 sps:$4 sm:$0xff]   ;;  %v6088_v53 = vld [vmem:[%s9547_s9 + $0x420] ss:$8 sps:$4 sm:$0xff]  }
 0x529   :  { %v3313_v51 = vadd.f32 %v5290_v21, %v3291_v29  ;;  %v3314_v57 = vadd.f32 %v5290_v21, %v3292_v28  ;;  %v3315_v4 = vadd.f32 %v5290_v21, %v3293_v55  ;;  %v3316_v2 = vadd.f32 %v5290_v21, %v3294_v44 }
 0x52a   :  { %v3317_v13 = vadd.f32 %v5290_v21, %v3295_v24  ;;  %v3318_v9 = vadd.f32 %v5290_v21, %v3296_v11  ;;  %v3319_v15 = vadd.f32 %v5290_v21, %v3297_v46  ;;  %v3320_v25 = vadd.f32 %v5290_v21, %v3298_v27 }
 0x52b   :  { %v3321_v19 = vadd.f32 %v5290_v21, %v3299_v32  ;;  %v3322_v45 = vadd.f32 %v5290_v21, %v3300_v6  ;;  %v3323_v10 = vadd.f32 %v5290_v21, %v3301_v43  ;;  %v3324_v58 = vadd.f32 %v5290_v21, %v3302_v37 }
 0x52c   :  { %v3325_v1 = vadd.f32 %v5290_v21, %v3303_v14  ;;  %v3326_v5 = vadd.f32 %v5290_v21, %v3304_v30  ;;  %v3327_v26 = vadd.f32 %v5290_v21, %v3305_v3  ;;  %v3328_v23 = vadd.f32 %v5290_v21, %v3306_v47 }
 0x52d   :  { %v3329_v50 = vmax.f32 %v3313_v51, 0.0  ;;  %v3330_v38 = vmax.f32 %v3314_v57, 0.0  ;;  %v3331_v40 = vmax.f32 %v3315_v4, 0.0  ;;  %v3332_v62 = vmax.f32 %v3316_v2, 0.0 }
 0x52e   :  { %v3333_v49 = vmax.f32 %v3317_v13, 0.0  ;;  %v3334_v12 = vmax.f32 %v3318_v9, 0.0  ;;  %v3335_v22 = vmax.f32 %v3319_v15, 0.0  ;;  %v3336_v42 = vmax.f32 %v3320_v25, 0.0 }
 0x52f   :  { %v3337_v18 = vmax.f32 %v3321_v19, 0.0  ;;  %v3338_v0 = vmax.f32 %v3322_v45, 0.0  ;;  %v3339_v59 = vmax.f32 %v3323_v10, 0.0  ;;  %v3340_v41 = vmax.f32 %v3324_v58, 0.0  ;;  %3345 = vst [vmem:[#allocation4] sm:$0xff] %v3329_v50  ;;  %3346 = vst [vmem:[#allocation4 + $0x8] sm:$0xff] %v3330_v38 }
 0x530   :  { %3347 = vst [vmem:[#allocation4 + $0x10] sm:$0xff] %v3331_v40  ;;  %3348 = vst [vmem:[#allocation4 + $0x18] sm:$0xff] %v3332_v62  ;;  %v3341_v48 = vmax.f32 %v3325_v1, 0.0  ;;  %v3342_v61 = vmax.f32 %v3326_v5, 0.0  ;;  %v3343_v60 = vmax.f32 %v3327_v26, 0.0  ;;  %v3344_v20 = vmax.f32 %v3328_v23, 0.0 }
 0x531   :  { %3349 = vst [vmem:[#allocation4 + $0x20] sm:$0xff] %v3333_v49  ;;  %3350 = vst [vmem:[#allocation4 + $0x28] sm:$0xff] %v3334_v12  ;;  %v3512_v63 = vand.u32 15, %v9732_v34  ;;  %v3564_v8 = vand.u32 3, %v9732_v34  ;;  %v3571_v33 = vand.u32 3, %v9737_v54  ;;  %v3526_v16 = vand.u32 15, %v9730_v56 }
 0x532   :  { %3351 = vst [vmem:[#allocation4 + $0x30] sm:$0xff] %v3335_v22  ;;  %3352 = vst [vmem:[#allocation4 + $0x38] sm:$0xff] %v3336_v42  ;;  %v3578_v42 = vand.u32 3, %v9730_v56  ;;  %v5961_v22 = vld [vmem:[%s9547_s9 + $0x174] ss:$8 sps:$4 sm:$0xff]  }
 0x533   :  { %3353 = vst [vmem:[#allocation4 + $0x40] sm:$0xff] %v3337_v18  ;;  %3354 = vst [vmem:[#allocation4 + $0x48] sm:$0xff] %v3338_v0  ;;  %vm8905_vm2 = vcmp.ge.s32.totalorder %v3512_v63, 4  ;;  %vm8909_vm0 = vcmp.ge.s32.totalorder %v3564_v8, 1  ;;  %vm8939_vm3 = vcmp.ge.s32.totalorder %v3571_v33, 1  ;;  %vm8964_vm7 = vcmp.ge.s32.totalorder %v3526_v16, 4 }
 0x534   :  { %3355 = vst [vmem:[#allocation4 + $0x50] sm:$0xff] %v3339_v59  ;;  %3356 = vst [vmem:[#allocation4 + $0x58] sm:$0xff] %v3340_v41  ;;  %vm9004_vm10 = vcmp.ge.s32.totalorder %v3578_v42, 1  ;;  %v5959_v42 = vld [vmem:[%s9547_s9 + $0x170] ss:$8 sps:$4 sm:$0xff]  }
 0x535   :  { %3357 = vst [vmem:[#allocation4 + $0x60] sm:$0xff] %v3341_v48  ;;  %3358 = vst [vmem:[#allocation4 + $0x68] sm:$0xff] %v3342_v61  ;;  %v5938_v48 = vld [vmem:[%s9547_s9 + $0x100] ss:$8 sps:$4 sm:$0xff]   ;;  %v6093_v58 = vld [vmem:[%s9547_s9 + $0x434] ss:$8 sps:$4 sm:$0xff]  }
 0x536   :  { %3359 = vst [vmem:[#allocation4 + $0x70] sm:$0xff] %v3343_v60  ;;  %3360 = vst [vmem:[#allocation4 + $0x78] sm:$0xff] %v3344_v20  ;;  %v3433_v7 = vld [vmem:[#allocation4 + $0x8] ss:$2 sm:$0xf]  ;;  %v3585_v20 = vand.u32 3, %v9731_v52 }
 0x537   :  { %v3435_v31 = vld [vmem:[#allocation4 + $0x18] ss:$2 sm:$0xf]  ;;  %v3469_v28 = vld [vmem:[#allocation4 + $0x9] ss:$2 sm:$0xf]  ;;  %vm3612_vm4 = vmand %vm8905_vm2, %vm8909_vm0 }
 0x538   :  { %v3437_v36 = vld [vmem:[#allocation4 + $0x28] ss:$2 sm:$0xf]  ;;  %v8903_v35 = vcombine.low %v3433_v7, %v3435_v31  ;;  %v3471_v54 = vld [vmem:[#allocation4 + $0x19] ss:$2 sm:$0xf]  ;;  %vm8960_vm6 = vmpackc.low %vm6141_vm5, %vm8905_vm2 }
 0x539   :  { %v3439_v39 = vld [vmem:[#allocation4 + $0x38] ss:$2 sm:$0xf]  ;;  %v8916_v21 = vcombine.low %v3469_v28, %v3471_v54  ;;  %v3473_v6 = vld [vmem:[#allocation4 + $0x29] ss:$2 sm:$0xf]  ;;  %vm8978_vm8 = vmpackc.low %vm8939_vm3, %vm3612_vm4 }
 0x53a   :  { %v8913_v29 = vcombine.low %v3437_v36, %v3439_v39  ;;  %3464 = vst [vmem:[#allocation5 + $0x40] sm:$0xff] %v8903_v35  ;;  %v3475_v37 = vld [vmem:[#allocation4 + $0x39] ss:$2 sm:$0xf]  ;;  %vm8998_vm9 = vmpackc.low %vm6141_vm5, %vm8964_vm7  ;;  %vm9018_vm11 = vcmp.ge.s32.totalorder %v3585_v20, 1  ;;  %vm5130_vm2 = vcmask 25600  }
 0x53b   :  { %3500 = vst [vmem:[#allocation5 + $0x60] sm:$0xff] %v8916_v21  ;;  %v3441_v14 = vld [vmem:[#allocation4 + $0x48] ss:$2 sm:$0xf]  ;;  %v8924_v30 = vcombine.low %v3473_v6, %v3475_v37  ;;  %v5943_v60 = vld [vmem:[%s9547_s9 + $0x114] ss:$8 sps:$4 sm:$0xff]   ;;  %vm3614_vm12 = vmand %vm8964_vm7, %vm9004_vm10 }
 0x53c   :  { %v3445_v55 = vld [vmem:[#allocation4 + $0x68] ss:$2 sm:$0xf]  ;;  %v3481_v11 = vld [vmem:[#allocation4 + $0x69] ss:$2 sm:$0xf]  ;;  %v3692_v27 = vpack.c.bf16 %v8913_v29, %v8903_v35  ;;  %vm5445_vm13 = vmpackc.low %vm9018_vm11, %vm3614_vm12 }
 0x53d   :  { %v3447_v44 = vld [vmem:[#allocation4 + $0x78] ss:$2 sm:$0xf]  ;;  %v3409_v46 = vld [vmem:[#allocation4 + $0x61] ss:$2 sm:$0xf]  ;;  %v3700_v25 = vpack.c.bf16 %v8924_v30, %v8916_v21  ;;  %vm5448_vm14 = vmpackc.low %vm8939_vm3, %vm8909_vm0 }
 0x53e   :  { %v3459_v24 = vcombine.low %v3445_v55, %v3447_v44  ;;  %3465 = vst [vmem:[#allocation5 + $0x48] sm:$0xff] %v8913_v29  ;;  %v3411_v32 = vld [vmem:[#allocation4 + $0x71] ss:$2 sm:$0xf]  ;;  %3501 = vst [vmem:[#allocation5 + $0x68] sm:$0xff] %v8924_v30  ;;  %v5012_v21 = vld [vmem:[%s9551_s13] sm:$0xff] }
 0x53f   :  { %v8922_v43 = vcombine.low %v3409_v46, %v3411_v32  ;;  %v3443_v3 = vld [vmem:[#allocation4 + $0x58] ss:$2 sm:$0xf]  ;;  %v3477_v47 = vld [vmem:[#allocation4 + $0x49] ss:$2 sm:$0xf]  ;;  %vm5454_vm15 = vmpackc.low %vm9018_vm11, %vm9004_vm10 }
 0x540   :  { %3467 = vst [vmem:[#allocation5 + $0x58] sm:$0xff] %v3459_v24  ;;  %v8927_v51 = vcombine.low %v3441_v14, %v3443_v3  ;;  %v3479_v57 = vld [vmem:[#allocation4 + $0x59] ss:$2 sm:$0xf]  ;;  %v5944_v3 = vld [vmem:[%s9547_s9 + $0x120] ss:$8 sps:$4 sm:$0xff]  }
 0x541   :  { %3431 = vst [vmem:[#allocation5 + $0x38] sm:$0xff] %v8922_v43  ;;  %v3483_v4 = vld [vmem:[#allocation4 + $0x79] ss:$2 sm:$0xf]  ;;  %v8930_v2 = vcombine.low %v3477_v47, %v3479_v57  ;;  %v5962_v59 = vld [vmem:[%s9547_s9 + $0x180] ss:$8 sps:$4 sm:$0xff]  }
 0x542   :  { %v8932_v13 = vcombine.low %v3481_v11, %v3483_v4  ;;  %v3373_v9 = vld [vmem:[#allocation4 + $0x60] ss:$2 sm:$0xf]  ;;  %v3375_v15 = vld [vmem:[#allocation4 + $0x70] ss:$2 sm:$0xf] }
 0x543   :  { %3466 = vst [vmem:[#allocation5 + $0x50] sm:$0xff] %v8927_v51  ;;  %v8937_v19 = vcombine.low %v3373_v9, %v3375_v15  ;;  %v3397_v45 = vld [vmem:[#allocation4 + $0x1] ss:$2 sm:$0xf]  ;;  %3502 = vst [vmem:[#allocation5 + $0x70] sm:$0xff] %v8930_v2  ;;  %v5013_v30 = vld [vmem:[%s9551_s13 + $0x8] sm:$0xff] }
 0x544   :  { %v3399_v10 = vld [vmem:[#allocation4 + $0x11] ss:$2 sm:$0xf]  ;;  %3503 = vst [vmem:[#allocation5 + $0x78] sm:$0xff] %v8932_v13  ;;  %v3701_v26 = vpack.c.bf16 %v8932_v13, %v8930_v2  ;;  %v5992_v49 = vld [vmem:[%s9547_s9 + $0x220] ss:$8 sps:$4 sm:$0xff]  }
 0x545   :  { %v3401_v1 = vld [vmem:[#allocation4 + $0x21] ss:$2 sm:$0xf]  ;;  %v8945_v5 = vcombine.low %v3397_v45, %v3399_v10  ;;  %3395 = vst [vmem:[#allocation5 + $0x18] sm:$0xff] %v8937_v19  ;;  %v5941_v36 = vld [vmem:[%s9547_s9 + $0x110] ss:$8 sps:$4 sm:$0xff]  }
 0x546   :  { %v3403_v23 = vld [vmem:[#allocation4 + $0x31] ss:$2 sm:$0xf]  ;;  %v3405_v50 = vld [vmem:[#allocation4 + $0x41] ss:$2 sm:$0xf] }
 0x547   :  { %v3625_v38 = vld [vmem:[#allocation5 + $0x44] sm:$0xff]  ;;  %v8954_v40 = vcombine.low %v3401_v1, %v3403_v23  ;;  %3428 = vst [vmem:[#allocation5 + $0x20] sm:$0xff] %v8945_v5  ;;  %v3407_v62 = vld [vmem:[#allocation4 + $0x51] ss:$2 sm:$0xf]  ;;  %v3504_v12 = vld [vmem:[#allocation5 + $0x5b] sm:$0xff] }
 0x548   :  { %v8969_v18 = vcombine.low %v3405_v50, %v3407_v62  ;;  %v3624_v0 = vld [vmem:[#allocation5 + $0x3c] sm:$0xff]  ;;  %v3363_v54 = vld [vmem:[#allocation4 + $0x10] ss:$2 sm:$0xf]  ;;  %v5952_v23 = vld [vmem:[%s9547_s9 + $0x144] ss:$8 sps:$4 sm:$0xff]  }
 0x549   :  { %3429 = vst [vmem:[#allocation5 + $0x28] sm:$0xff] %v8954_v40  ;;  %v3672_v41 = vpack.c.bf16 %v8954_v40, %v8945_v5  ;;  %v5437_v56 = vpack.c.bf16 %v3625_v38, %v3624_v0  ;;  %v3505_v61 = vld [vmem:[#allocation5 + $0x63] sm:$0xff]  ;;  %v3367_v44 = vld [vmem:[#allocation4 + $0x30] ss:$2 sm:$0xf]  ;;  %v5031_v13 = vld [vmem:[%s9551_s13 + $0x98] sm:$0xff] }
 0x54a   :  { %3430 = vst [vmem:[#allocation5 + $0x30] sm:$0xff] %v8969_v18  ;;  %v3673_v63 = vpack.c.bf16 %v8922_v43, %v8969_v18  ;;  %v5440_v8 = vpack.c.bf16 %v3505_v61, %v3504_v12  ;;  %v3626_v33 = vld [vmem:[#allocation5 + $0x4c] sm:$0xff]  ;;  %v3627_v16 = vld [vmem:[#allocation5 + $0x54] sm:$0xff]  ;;  %v3361_v39 = vld [vmem:[#allocation4] ss:$2 sm:$0xf] }
 0x54b   :  { %5438 = vmatprep.mubr.msk.bf16.mxu1 %vm8960_vm6, %v5437_v56  ;;  %v5443_v31 = vpack.c.bf16 %v3627_v16, %v3626_v33  ;;  %v3365_v55 = vld [vmem:[#allocation4 + $0x20] ss:$2 sm:$0xf]  ;;  %v3384_v24 = vcombine.low %v3361_v39, %v3363_v54  ;;  %v3506_v11 = vld [vmem:[#allocation5 + $0x6b] sm:$0xff]  ;;  %v3507_v46 = vld [vmem:[#allocation5 + $0x73] sm:$0xff] }
 0x54c   :  { %5441 = vmatmul.mubr.msk.bf16.vlgmr.msra.gmra.mrb[48].mxu1 %vm8978_vm8, %v5440_v8  ;;  %v3385_v32 = vcombine.low %v3365_v55, %v3367_v44  ;;  %v3369_v14 = vld [vmem:[#allocation4 + $0x40] ss:$2 sm:$0xf]  ;;  %v3371_v57 = vld [vmem:[#allocation4 + $0x50] ss:$2 sm:$0xf]  ;;  %v5446_v4 = vpack.c.bf16 %v3507_v46, %v3506_v11 }
 0x54d   :  { %4652 = vmatpush1.bf16.msra.mxu1 %v5938_v48  ;;  %5444 = vmatprep.mubr.msk.bf16.mxu1 %vm8998_vm9, %v5443_v31  ;;  %v5949_v9 = vld [vmem:[%s9547_s9 + $0x134] ss:$8 sps:$4 sm:$0xff]   ;;  %v3386_v15 = vcombine.low %v3369_v14, %v3371_v57  ;;  %v5947_v1 = vld [vmem:[%s9547_s9 + $0x130] ss:$8 sps:$4 sm:$0xff]   ;;  %v5958_v62 = vld [vmem:[%s9547_s9 + $0x164] ss:$8 sps:$4 sm:$0xff]  }
 0x54e   :  { %4653 = vmatprep.subr.bf16.mxu1 %v5943_v60  ;;  %v3648_v6 = vld [vmem:[#allocation5 + $0x1f] sm:$0xff]  ;;  %v9031_v47 = vpack.c.bf16 %v3385_v32, %v3384_v24  ;;  %v5953_v38 = vld [vmem:[%s9547_s9 + $0x150] ss:$8 sps:$4 sm:$0xff]  }
 0x54f   :  { %v9041_v10 = vpack.c.bf16 %v8937_v19, %v3386_v15  ;;  %v5950_v19 = vld [vmem:[%s9547_s9 + $0x140] ss:$8 sps:$4 sm:$0xff]   ;;  %v5955_v50 = vld [vmem:[%s9547_s9 + $0x154] ss:$8 sps:$4 sm:$0xff]   ;;  %v5964_v0 = vld [vmem:[%s9547_s9 + $0x184] ss:$8 sps:$4 sm:$0xff]  }
 0x550   :  { %v3649_v37 = vld [vmem:[#allocation5 + $0x27] sm:$0xff]  ;;  %v5967_v56 = vld [vmem:[%s9547_s9 + $0x194] ss:$8 sps:$4 sm:$0xff]   ;;  %v5965_v48 = vld [vmem:[%s9547_s9 + $0x190] ss:$8 sps:$4 sm:$0xff]  }
 0x551   :  { %4654 = vmatpush1.bf16.msra.mxu1 %v5941_v36  ;;  %v5449_v45 = vpack.c.bf16 %v3649_v37, %v3648_v6  ;;  %v5956_v12 = vld [vmem:[%s9547_s9 + $0x160] ss:$8 sps:$4 sm:$0xff]   ;;  %v5970_v61 = vld [vmem:[%s9547_s9 + $0x1a4] ss:$8 sps:$4 sm:$0xff]   ;;  %v5973_v20 = vld [vmem:[%s9547_s9 + $0x1b4] ss:$8 sps:$4 sm:$0xff]  }
 0x552   :  { %4655 = vmatprep.subr.bf16.mxu1 %v5946_v17  ;;  %v5968_v60 = vld [vmem:[%s9547_s9 + $0x1a0] ss:$8 sps:$4 sm:$0xff]   ;;  %v5971_v8 = vld [vmem:[%s9547_s9 + $0x1b0] ss:$8 sps:$4 sm:$0xff]   ;;  %v5976_v33 = vld [vmem:[%s9547_s9 + $0x1c4] ss:$8 sps:$4 sm:$0xff]  }
 0x553   :  { %v5974_v16 = vld [vmem:[%s9547_s9 + $0x1c0] ss:$8 sps:$4 sm:$0xff]   ;;  %v5979_v31 = vld [vmem:[%s9547_s9 + $0x1d4] ss:$8 sps:$4 sm:$0xff]   ;;  %v5977_v36 = vld [vmem:[%s9547_s9 + $0x1d0] ss:$8 sps:$4 sm:$0xff]  }
 0x554   :  { %5447 = vmatmul.mubr.msk.bf16.gmra.mrb[52].mxu1 %vm5445_vm13, %v5446_v4  ;;  %v5982_v39 = vld [vmem:[%s9547_s9 + $0x1e4] ss:$8 sps:$4 sm:$0xff]   ;;  %v5980_v17 = vld [vmem:[%s9547_s9 + $0x1e0] ss:$8 sps:$4 sm:$0xff]   ;;  %v5985_v54 = vld [vmem:[%s9547_s9 + $0x1f4] ss:$8 sps:$4 sm:$0xff]  }
 0x555   :  { %4656 = vmatpush1.bf16.msra.mxu1 %v5944_v3  ;;  %5450 = vmatprep.mubr.msk.bf16.mxu1 %vm5448_vm14, %v5449_v45  ;;  %v5983_v55 = vld [vmem:[%s9547_s9 + $0x1f0] ss:$8 sps:$4 sm:$0xff]   ;;  %v5988_v44 = vld [vmem:[%s9547_s9 + $0x204] ss:$8 sps:$4 sm:$0xff]   ;;  %v3636_v24 = vld [vmem:[#allocation5 + $0x5c] sm:$0xff] }
 0x556   :  { %4657 = vmatprep.subr.bf16.mxu1 %v5949_v9  ;;  %v3637_v11 = vld [vmem:[#allocation5 + $0x64] sm:$0xff]  ;;  %v3650_v46 = vld [vmem:[#allocation5 + $0x2f] sm:$0xff]  ;;  %v3651_v32 = vld [vmem:[#allocation5 + $0x37] sm:$0xff] }
 0x557   :  { %v5986_v6 = vld [vmem:[%s9547_s9 + $0x200] ss:$8 sps:$4 sm:$0xff]   ;;  %v5452_v37 = vpack.c.bf16 %v3637_v11, %v3636_v24  ;;  %v5991_v14 = vld [vmem:[%s9547_s9 + $0x214] ss:$8 sps:$4 sm:$0xff]   ;;  %v5455_v3 = vpack.c.bf16 %v3651_v32, %v3650_v46  ;;  %v5989_v57 = vld [vmem:[%s9547_s9 + $0x210] ss:$8 sps:$4 sm:$0xff]  }
 0x558   :  { %v5994_v4 = vld [vmem:[%s9547_s9 + $0x224] ss:$8 sps:$4 sm:$0xff]   ;;  %v3639_v15 = vld [vmem:[#allocation5 + $0x74] sm:$0xff]  ;;  %v5998_v7 = vld [vmem:[%s9547_s9 + $0x240] ss:$8 sps:$4 sm:$0xff]  }
 0x559   :  { %4658 = vmatpush1.bf16.msra.mxu1 %v5947_v1  ;;  %v3638_v9 = vld [vmem:[#allocation5 + $0x6c] sm:$0xff]  ;;  %v5997_v1 = vld [vmem:[%s9547_s9 + $0x234] ss:$8 sps:$4 sm:$0xff]   ;;  %v6040_v11 = vld [vmem:[%s9547_s9 + $0x320] ss:$8 sps:$4 sm:$0xff]  }
 0x55a   :  { %4659 = vmatprep.subr.bf16.mxu1 %v5952_v23  ;;  %v5458_v45 = vpack.c.bf16 %v3639_v15, %v3638_v9  ;;  %v5995_v23 = vld [vmem:[%s9547_s9 + $0x230] ss:$8 sps:$4 sm:$0xff]   ;;  %v6003_v5 = vld [vmem:[%s9547_s9 + $0x254] ss:$8 sps:$4 sm:$0xff]   ;;  %v6042_v24 = vld [vmem:[%s9547_s9 + $0x324] ss:$8 sps:$4 sm:$0xff]  }
 0x55b   :  { %v6001_v40 = vld [vmem:[%s9547_s9 + $0x250] ss:$8 sps:$4 sm:$0xff]   ;;  %v6045_v43 = vld [vmem:[%s9547_s9 + $0x334] ss:$8 sps:$4 sm:$0xff]   ;;  %v6094_v28 = vld [vmem:[%s9547_s9 + $0x440] ss:$8 sps:$4 sm:$0xff]  }
 0x55c   :  { %v6043_v18 = vld [vmem:[%s9547_s9 + $0x330] ss:$8 sps:$4 sm:$0xff]   ;;  %v6051_v35 = vld [vmem:[%s9547_s9 + $0x354] ss:$8 sps:$4 sm:$0xff]  }
 0x55d   :  { %4660 = vmatpush1.bf16.msra.mxu1 %v5950_v19  ;;  %v6000_v19 = vld [vmem:[%s9547_s9 + $0x244] ss:$8 sps:$4 sm:$0xff]   ;;  %v6049_v29 = vld [vmem:[%s9547_s9 + $0x350] ss:$8 sps:$4 sm:$0xff]   ;;  %v6057_v46 = vld [vmem:[%s9547_s9 + $0x374] ss:$8 sps:$4 sm:$0xff]  }
 0x55e   :  { %4661 = vmatprep.subr.bf16.mxu1 %v5955_v50  ;;  %v6004_v50 = vld [vmem:[%s9547_s9 + $0x260] ss:$8 sps:$4 sm:$0xff]   ;;  %v6055_v32 = vld [vmem:[%s9547_s9 + $0x370] ss:$8 sps:$4 sm:$0xff]   ;;  %v6069_v9 = vld [vmem:[%s9547_s9 + $0x3b4] ss:$8 sps:$4 sm:$0xff]  }
 0x55f   :  { %v6067_v15 = vld [vmem:[%s9547_s9 + $0x3b0] ss:$8 sps:$4 sm:$0xff]   ;;  %v6099_v52 = vld [vmem:[%s9547_s9 + $0x454] ss:$8 sps:$4 sm:$0xff]  }
 0x560   :  { %v5030_v2 = vld [vmem:[%s9551_s13 + $0x90] sm:$0xff] }
 0x561   :  { %4662 = vmatpush1.bf16.msra.mxu1 %v5953_v38  ;;  %v6009_v38 = vld [vmem:[%s9547_s9 + $0x274] ss:$8 sps:$4 sm:$0xff]  }
 0x562   :  { %4663 = vmatprep.subr.bf16.mxu1 %v5958_v62  ;;  %v6007_v62 = vld [vmem:[%s9547_s9 + $0x270] ss:$8 sps:$4 sm:$0xff]  }
 0x565   :  { %4664 = vmatpush1.bf16.msra.mxu1 %v5956_v12  ;;  %v6012_v12 = vld [vmem:[%s9547_s9 + $0x284] ss:$8 sps:$4 sm:$0xff]  }
 0x566   :  { %4665 = vmatprep.subr.bf16.mxu1 %v5961_v22  ;;  %v6010_v22 = vld [vmem:[%s9547_s9 + $0x280] ss:$8 sps:$4 sm:$0xff]  }
 0x569   :  { %4666 = vmatpush1.bf16.msra.mxu1 %v5959_v42  ;;  %v6015_v42 = vld [vmem:[%s9547_s9 + $0x294] ss:$8 sps:$4 sm:$0xff]  }
 0x56a   :  { %4667 = vmatprep.subr.bf16.mxu1 %v5964_v0  ;;  %v6013_v0 = vld [vmem:[%s9547_s9 + $0x290] ss:$8 sps:$4 sm:$0xff]  }
 0x56d   :  { %4668 = vmatpush1.bf16.msra.mxu1 %v5962_v59  ;;  %v6018_v59 = vld [vmem:[%s9547_s9 + $0x2a4] ss:$8 sps:$4 sm:$0xff]  }
 0x56e   :  { %4669 = vmatprep.subr.bf16.mxu1 %v5967_v56  ;;  %v6016_v56 = vld [vmem:[%s9547_s9 + $0x2a0] ss:$8 sps:$4 sm:$0xff]  }
 0x571   :  { %4670 = vmatpush1.bf16.msra.mxu1 %v5965_v48  ;;  %v6021_v48 = vld [vmem:[%s9547_s9 + $0x2b4] ss:$8 sps:$4 sm:$0xff]  }
 0x572   :  { %4671 = vmatprep.subr.bf16.mxu1 %v5970_v61  ;;  %v6019_v61 = vld [vmem:[%s9547_s9 + $0x2b0] ss:$8 sps:$4 sm:$0xff]  }
 0x575   :  { %4672 = vmatpush1.bf16.msra.mxu1 %v5968_v60  ;;  %v6024_v60 = vld [vmem:[%s9547_s9 + $0x2c4] ss:$8 sps:$4 sm:$0xff]  }
 0x576   :  { %4673 = vmatprep.subr.bf16.mxu1 %v5973_v20  ;;  %v6022_v20 = vld [vmem:[%s9547_s9 + $0x2c0] ss:$8 sps:$4 sm:$0xff]  }
 0x579   :  { %4674 = vmatpush1.bf16.msra.mxu1 %v5971_v8  ;;  %v6027_v8 = vld [vmem:[%s9547_s9 + $0x2d4] ss:$8 sps:$4 sm:$0xff]  }
 0x57a   :  { %4675 = vmatprep.subr.bf16.mxu1 %v5976_v33  ;;  %v6025_v33 = vld [vmem:[%s9547_s9 + $0x2d0] ss:$8 sps:$4 sm:$0xff]  }
 0x57d   :  { %4676 = vmatpush1.bf16.msra.mxu1 %v5974_v16  ;;  %v6030_v16 = vld [vmem:[%s9547_s9 + $0x2e4] ss:$8 sps:$4 sm:$0xff]  }
 0x57e   :  { %4677 = vmatprep.subr.bf16.mxu1 %v5979_v31  ;;  %v6028_v31 = vld [vmem:[%s9547_s9 + $0x2e0] ss:$8 sps:$4 sm:$0xff]  }
 0x581   :  { %4678 = vmatpush1.bf16.msra.mxu1 %v5977_v36  ;;  %v6033_v36 = vld [vmem:[%s9547_s9 + $0x2f4] ss:$8 sps:$4 sm:$0xff]  }
 0x582   :  { %4679 = vmatprep.subr.bf16.mxu1 %v5982_v39  ;;  %v6031_v39 = vld [vmem:[%s9547_s9 + $0x2f0] ss:$8 sps:$4 sm:$0xff]  }
 0x585   :  { %4680 = vmatpush1.bf16.msra.mxu1 %v5980_v17  ;;  %v6036_v17 = vld [vmem:[%s9547_s9 + $0x304] ss:$8 sps:$4 sm:$0xff]  }
 0x586   :  { %4681 = vmatprep.subr.bf16.mxu1 %v5985_v54  ;;  %v6034_v54 = vld [vmem:[%s9547_s9 + $0x300] ss:$8 sps:$4 sm:$0xff]  }
 0x589   :  { %4682 = vmatpush1.bf16.msra.mxu1 %v5983_v55  ;;  %v6039_v55 = vld [vmem:[%s9547_s9 + $0x314] ss:$8 sps:$4 sm:$0xff]  }
 0x58a   :  { %4704 = vmatprep.subr.bf16.mxu1 %v5988_v44  ;;  %v6037_v44 = vld [vmem:[%s9547_s9 + $0x310] ss:$8 sps:$4 sm:$0xff]  }
 0x58c   :  { %5453 = vmatmul.mubr.msk.bf16.vlgmr.msra.gmra.mrb[48].mxu1 %vm8960_vm6, %v5452_v37  ;;  %v6058_v37 = vld [vmem:[%s9547_s9 + $0x380] ss:$8 sps:$4 sm:$0xff]  }
 0x58d   :  { %5456 = vmatprep.mubr.msk.bf16.mxu1 %vm5454_vm15, %v5455_v3  ;;  %4705 = vmatpush1.bf16.msra.mxu1 %v5986_v6  ;;  %v6060_v6 = vld [vmem:[%s9547_s9 + $0x384] ss:$8 sps:$4 sm:$0xff]   ;;  %v6061_v3 = vld [vmem:[%s9547_s9 + $0x390] ss:$8 sps:$4 sm:$0xff]  }
 0x58e   :  { %4706 = vmatprep.subr.bf16.mxu1 %v5991_v14  ;;  %v6063_v14 = vld [vmem:[%s9547_s9 + $0x394] ss:$8 sps:$4 sm:$0xff]  }
 0x591   :  { %4707 = vmatpush1.bf16.msra.mxu1 %v5989_v57  ;;  %v6066_v57 = vld [vmem:[%s9547_s9 + $0x3a4] ss:$8 sps:$4 sm:$0xff]  }
 0x592   :  { %4708 = vmatprep.subr.bf16.mxu1 %v5994_v4  ;;  %v6064_v4 = vld [vmem:[%s9547_s9 + $0x3a0] ss:$8 sps:$4 sm:$0xff]  }
 0x594   :  { %5459 = vmatmul.mubr.msk.bf16.gmra.mrb[52].mxu1 %vm8998_vm9, %v5458_v45  ;;  %v6070_v45 = vld [vmem:[%s9547_s9 + $0x3c0] ss:$8 sps:$4 sm:$0xff]  }
 0x595   :  { %4709 = vmatpush1.bf16.msra.mxu1 %v5992_v49  ;;  %4736 = vmatprep.mubr.bf16.mxu1 %v3672_v41  ;;  %v6006_v41 = vld [vmem:[%s9547_s9 + $0x264] ss:$8 sps:$4 sm:$0xff]  }
 0x596   :  { %4710 = vmatprep.subr.bf16.mxu1 %v5997_v1  ;;  %v6072_v49 = vld [vmem:[%s9547_s9 + $0x3c4] ss:$8 sps:$4 sm:$0xff]   ;;  %v6075_v1 = vld [vmem:[%s9547_s9 + $0x3d4] ss:$8 sps:$4 sm:$0xff]  }
 0x599   :  { %4711 = vmatpush1.bf16.msra.mxu1 %v5995_v23  ;;  %v6073_v23 = vld [vmem:[%s9547_s9 + $0x3d0] ss:$8 sps:$4 sm:$0xff]  }
 0x59a   :  { %4712 = vmatprep.subr.bf16.mxu1 %v6000_v19  ;;  %v6078_v19 = vld [vmem:[%s9547_s9 + $0x3e4] ss:$8 sps:$4 sm:$0xff]  }
 0x59d   :  { %4713 = vmatpush1.bf16.msra.mxu1 %v5998_v7  ;;  %v6076_v7 = vld [vmem:[%s9547_s9 + $0x3e0] ss:$8 sps:$4 sm:$0xff]  }
 0x59e   :  { %4714 = vmatprep.subr.bf16.mxu1 %v6003_v5  ;;  %v6081_v5 = vld [vmem:[%s9547_s9 + $0x3f4] ss:$8 sps:$4 sm:$0xff]  }
 0x5a1   :  { %4715 = vmatpush1.bf16.msra.mxu1 %v6001_v40  ;;  %v6079_v40 = vld [vmem:[%s9547_s9 + $0x3f0] ss:$8 sps:$4 sm:$0xff]  }
 0x5a2   :  { %4716 = vmatprep.subr.bf16.mxu1 %v6006_v41  ;;  %v6084_v41 = vld [vmem:[%s9547_s9 + $0x404] ss:$8 sps:$4 sm:$0xff]  }
 0x5a5   :  { %4717 = vmatpush1.bf16.msra.mxu1 %v6004_v50  ;;  %v3676_v50 = vld [vmem:[#allocation5 + $0x5f] sm:$0xff] }
 0x5a6   :  { %4718 = vmatprep.subr.bf16.mxu1 %v6009_v38  ;;  %v3677_v38 = vld [vmem:[#allocation5 + $0x67] sm:$0xff] }
 0x5a9   :  { %4719 = vmatpush1.bf16.msra.mxu1 %v6007_v62  ;;  %v3691_v62 = vld [vmem:[#allocation5 + $0x58] sm:$0xff] }
 0x5aa   :  { %4720 = vmatprep.subr.bf16.mxu1 %v6012_v12  ;;  %v6082_v12 = vld [vmem:[%s9547_s9 + $0x400] ss:$8 sps:$4 sm:$0xff]  }
 0x5ad   :  { %4721 = vmatpush1.bf16.msra.mxu1 %v6010_v22  ;;  %v5461_v22 = vpack.c.bf16 %v3677_v38, %v3676_v50  ;;  %v5024_v50 = vld [vmem:[%s9551_s13 + $0x60] sm:$0xff]  ;;  %v5025_v38 = vld [vmem:[%s9551_s13 + $0x68] sm:$0xff] }
 0x5ae   :  { %4722 = vmatprep.subr.bf16.mxu1 %v6015_v42  ;;  %v6087_v42 = vld [vmem:[%s9547_s9 + $0x414] ss:$8 sps:$4 sm:$0xff]  }
 0x5b1   :  { %4723 = vmatpush1.bf16.msra.mxu1 %v6013_v0  ;;  %v3693_v0 = vpack.c.bf16 %v3691_v62, %v8927_v51  ;;  %v5042_v62 = vld [vmem:[%s9551_s13 + $0xf0] sm:$0xff] }
 0x5b2   :  { %4724 = vmatprep.subr.bf16.mxu1 %v6018_v59  ;;  %v6085_v59 = vld [vmem:[%s9547_s9 + $0x410] ss:$8 sps:$4 sm:$0xff]  }
 0x5b5   :  { %4725 = vmatpush1.bf16.msra.mxu1 %v6016_v56  ;;  %v6090_v56 = vld [vmem:[%s9547_s9 + $0x424] ss:$8 sps:$4 sm:$0xff]  }
 0x5b6   :  { %4726 = vmatprep.subr.bf16.mxu1 %v6021_v48  ;;  %v3678_v48 = vld [vmem:[#allocation5 + $0x6f] sm:$0xff] }
 0x5b9   :  { %4727 = vmatpush1.bf16.msra.mxu1 %v6019_v61  ;;  %v3679_v61 = vld [vmem:[#allocation5 + $0x77] sm:$0xff] }
 0x5ba   :  { %4728 = vmatprep.subr.bf16.mxu1 %v6024_v60  ;;  %v5464_v51 = vpack.c.bf16 %v3679_v61, %v3678_v48  ;;  %v6091_v60 = vld [vmem:[%s9547_s9 + $0x430] ss:$8 sps:$4 sm:$0xff]   ;;  %v9503_v48 = vsub.s32 0, %v9732_v34  ;;  %v3866_v61 = vld [vmem:[%s9548_s10] sm:$0x3] }
 0x5bd   :  { %4729 = vmatpush1.bf16.msra.mxu1 %v6022_v20  ;;  %v9835_v20 = vmov 0  }
 0x5be   :  { %4730 = vmatprep.subr.bf16.mxu1 %v6027_v8  ;;  %v6096_v8 = vld [vmem:[%s9547_s9 + $0x444] ss:$8 sps:$4 sm:$0xff]  }
 0x5c1   :  { %4731 = vmatpush1.bf16.msra.mxu1 %v6025_v33  ;;  %v6097_v33 = vld [vmem:[%s9547_s9 + $0x450] ss:$8 sps:$4 sm:$0xff]  }
 0x5c2   :  { %4732 = vmatprep.subr.bf16.mxu1 %v6030_v16  ;;  %v6102_v16 = vld [vmem:[%s9547_s9 + $0x464] ss:$8 sps:$4 sm:$0xff]  }
 0x5c5   :  { %4733 = vmatpush1.bf16.msra.mxu1 %v6028_v31  ;;  %v6100_v31 = vld [vmem:[%s9547_s9 + $0x460] ss:$8 sps:$4 sm:$0xff]  }
 0x5c6   :  { %4734 = vmatprep.subr.bf16.mxu1 %v6033_v36  ;;  %v6105_v36 = vld [vmem:[%s9547_s9 + $0x474] ss:$8 sps:$4 sm:$0xff]  }
 0x5c9   :  { %4735 = vmatpush1.bf16.msra.mxu1 %v6031_v39  ;;  %v6103_v39 = vld [vmem:[%s9547_s9 + $0x470] ss:$8 sps:$4 sm:$0xff]  }
 0x5ca   :  { %4757 = vmatprep.subr.bf16.mxu1 %v6036_v17  ;;  %v5028_v17 = vld [vmem:[%s9551_s13 + $0x80] sm:$0xff] }
 0x5cc   :  { %4737 = vmatmul.mubr.bf16.vlgmr.msra.gmra.mrb[48].mxu1 %v9031_v47  ;;  %v6046_v47 = vld [vmem:[%s9547_s9 + $0x340] ss:$8 sps:$4 sm:$0xff]  }
 0x5cd   :  { %4746 = vmatprep.mubr.bf16.mxu1 %v3673_v63  ;;  %4758 = vmatpush1.bf16.msra.mxu1 %v6034_v54  ;;  %v6048_v63 = vld [vmem:[%s9547_s9 + $0x344] ss:$8 sps:$4 sm:$0xff]  }
 0x5ce   :  { %4759 = vmatprep.subr.bf16.mxu1 %v6039_v55  ;;  %v5029_v54 = vld [vmem:[%s9551_s13 + $0x88] sm:$0xff] }
 0x5cf   :  { %v5665_v55 = vpack.c.bf16 %v5029_v54, %v5028_v17 }
 0x5d1   :  { %4760 = vmatpush1.bf16.msra.mxu1 %v6037_v44  ;;  %5666 = vmatprep.subr.bf16.mxu0 %v5665_v55  ;;  %v5669_v44 = vpack.c.bf16 %v5031_v13, %v5030_v2 }
 0x5d2   :  { %4761 = vmatprep.subr.bf16.mxu1 %v6042_v24  ;;  %v5015_v24 = vld [vmem:[%s9551_s13 + $0x18] sm:$0xff] }
 0x5d4   :  { %4747 = vmatmul.mubr.bf16.gmra.mrb[52].mxu1 %v9041_v10  ;;  %v6052_v10 = vld [vmem:[%s9547_s9 + $0x360] ss:$8 sps:$4 sm:$0xff]  }
 0x5d5   :  { %4762 = vmatpush1.bf16.msra.mxu1 %v6040_v11  ;;  %4789 = vmatprep.mubr.bf16.mxu1 %v3692_v27  ;;  %v6054_v27 = vld [vmem:[%s9547_s9 + $0x364] ss:$8 sps:$4 sm:$0xff]  }
 0x5d6   :  { %4763 = vmatprep.subr.bf16.mxu1 %v6045_v43  ;;  %v5032_v11 = vld [vmem:[%s9551_s13 + $0xa0] sm:$0xff]  ;;  %v5033_v43 = vld [vmem:[%s9551_s13 + $0xa8] sm:$0xff] }
 0x5d9   :  { %4764 = vmatpush1.bf16.msra.mxu1 %v6043_v18 }
 0x5da   :  { %4765 = vmatprep.subr.bf16.mxu1 %v6048_v63  ;;  %v5673_v63 = vpack.c.bf16 %v5033_v43, %v5032_v11 }
 0x5dd   :  { %4766 = vmatpush1.bf16.msra.mxu1 %v6046_v47  ;;  %v5016_v47 = vld [vmem:[%s9551_s13 + $0x20] sm:$0xff] }
 0x5de   :  { %4767 = vmatprep.subr.bf16.mxu1 %v6051_v35  ;;  %v5017_v35 = vld [vmem:[%s9551_s13 + $0x28] sm:$0xff] }
 0x5e1   :  { %4768 = vmatpush1.bf16.msra.mxu1 %v6049_v29  ;;  %v5034_v29 = vld [vmem:[%s9551_s13 + $0xb0] sm:$0xff] }
 0x5e2   :  { %4769 = vmatprep.subr.bf16.mxu1 %v6054_v27  ;;  %v5035_v27 = vld [vmem:[%s9551_s13 + $0xb8] sm:$0xff] }
 0x5e5   :  { %4770 = vmatpush1.bf16.msra.mxu1 %v6052_v10  ;;  %v5675_v10 = vpack.c.bf16 %v5017_v35, %v5016_v47 }
 0x5e6   :  { %4771 = vmatprep.subr.bf16.mxu1 %v6057_v46  ;;  %v5677_v46 = vpack.c.bf16 %v5035_v27, %v5034_v29 }
 0x5e9   :  { %4772 = vmatpush1.bf16.msra.mxu1 %v6055_v32  ;;  %v5018_v32 = vld [vmem:[%s9551_s13 + $0x30] sm:$0xff] }
 0x5ea   :  { %4773 = vmatprep.subr.bf16.mxu1 %v6060_v6  ;;  %v5019_v6 = vld [vmem:[%s9551_s13 + $0x38] sm:$0xff] }
 0x5ed   :  { %4774 = vmatpush1.bf16.msra.mxu1 %v6058_v37  ;;  %v5036_v37 = vld [vmem:[%s9551_s13 + $0xc0] sm:$0xff] }
 0x5ee   :  { %4775 = vmatprep.subr.bf16.mxu1 %v6063_v14  ;;  %v5037_v14 = vld [vmem:[%s9551_s13 + $0xc8] sm:$0xff] }
 0x5f1   :  { %4776 = vmatpush1.bf16.msra.mxu1 %v6061_v3  ;;  %v5679_v3 = vpack.c.bf16 %v5019_v6, %v5018_v32 }
 0x5f2   :  { %4777 = vmatprep.subr.bf16.mxu1 %v6066_v57  ;;  %v5681_v57 = vpack.c.bf16 %v5037_v14, %v5036_v37 }
 0x5f5   :  { %4778 = vmatpush1.bf16.msra.mxu1 %v6064_v4  ;;  %v5020_v4 = vld [vmem:[%s9551_s13 + $0x40] sm:$0xff] }
 0x5f6   :  { %4779 = vmatprep.subr.bf16.mxu1 %v6069_v9  ;;  %v5021_v9 = vld [vmem:[%s9551_s13 + $0x48] sm:$0xff] }
 0x5f9   :  { %4780 = vmatpush1.bf16.msra.mxu1 %v6067_v15  ;;  %v5038_v15 = vld [vmem:[%s9551_s13 + $0xd0] sm:$0xff] }
 0x5fa   :  { %4781 = vmatprep.subr.bf16.mxu1 %v6072_v49  ;;  %v5039_v49 = vld [vmem:[%s9551_s13 + $0xd8] sm:$0xff] }
 0x5fd   :  { %4782 = vmatpush1.bf16.msra.mxu1 %v6070_v45  ;;  %v5683_v45 = vpack.c.bf16 %v5021_v9, %v5020_v4 }
 0x5fe   :  { %4783 = vmatprep.subr.bf16.mxu1 %v6075_v1  ;;  %v5685_v1 = vpack.c.bf16 %v5039_v49, %v5038_v15 }
 0x601   :  { %4784 = vmatpush1.bf16.msra.mxu1 %v6073_v23  ;;  %v5022_v23 = vld [vmem:[%s9551_s13 + $0x50] sm:$0xff] }
 0x602   :  { %4785 = vmatprep.subr.bf16.mxu1 %v6078_v19  ;;  %v5023_v19 = vld [vmem:[%s9551_s13 + $0x58] sm:$0xff] }
 0x605   :  { %4786 = vmatpush1.bf16.msra.mxu1 %v6076_v7  ;;  %v5040_v7 = vld [vmem:[%s9551_s13 + $0xe0] sm:$0xff] }
 0x606   :  { %4787 = vmatprep.subr.bf16.mxu1 %v6081_v5  ;;  %v5041_v5 = vld [vmem:[%s9551_s13 + $0xe8] sm:$0xff] }
 0x609   :  { %4788 = vmatpush1.bf16.msra.mxu1 %v6079_v40  ;;  %v5687_v40 = vpack.c.bf16 %v5023_v19, %v5022_v23 }
 0x60a   :  { %4810 = vmatprep.subr.bf16.mxu1 %v6084_v41  ;;  %v5689_v41 = vpack.c.bf16 %v5041_v5, %v5040_v7 }
 0x60c   :  { %5462 = vmatmul.mubr.msk.bf16.vlgmr.msra.gmra.mrb[48].mxu1 %vm5448_vm14, %v5461_v22  ;;  %v5691_v22 = vpack.c.bf16 %v5025_v38, %v5024_v50 }
 0x60d   :  { %4799 = vmatprep.mubr.bf16.mxu1 %v3693_v0  ;;  %4811 = vmatpush1.bf16.msra.mxu1 %v6082_v12  ;;  %v5043_v12 = vld [vmem:[%s9551_s13 + $0xf8] sm:$0xff]  ;;  %v5026_v0 = vld [vmem:[%s9551_s13 + $0x70] sm:$0xff] }
 0x60e   :  { %4812 = vmatprep.subr.bf16.mxu1 %v6087_v42  ;;  %v5693_v42 = vpack.c.bf16 %v5043_v12, %v5042_v62 }
 0x611   :  { %4813 = vmatpush1.bf16.msra.mxu1 %v6085_v59  ;;  %v5027_v59 = vld [vmem:[%s9551_s13 + $0x78] sm:$0xff] }
 0x612   :  { %4814 = vmatprep.subr.bf16.mxu1 %v6090_v56  ;;  %v5695_v56 = vpack.c.bf16 %v5027_v59, %v5026_v0 }
 0x614   :  { %5465 = vmatmul.mubr.msk.bf16.gmra.mrb[52].mxu1 %vm5454_vm15, %v5464_v51  ;;  %v3871_v51 = vrot.slane %v3866_v61, %v9503_v48 }
 0x615   :  { %4815 = vmatpush1.bf16.msra.mxu1 %v6088_v53  ;;  %4842 = vmatprep.mubr.bf16.mxu1 %v9835_v20  ;;  %v9509_v53 = vsub.s32 1, %v9732_v34 }
 0x616   :  { %4816 = vmatprep.subr.bf16.mxu1 %v6093_v58 }
 0x619   :  { %4817 = vmatpush1.bf16.msra.mxu1 %v6091_v60  ;;  %v3875_v60 = vrot.slane %v3866_v61, %v9509_v53 }
 0x61a   :  { %4818 = vmatprep.subr.bf16.mxu1 %v6096_v8 }
 0x61d   :  { %4819 = vmatpush1.bf16.msra.mxu1 %v6094_v28 }
 0x61e   :  { %4820 = vmatprep.subr.bf16.mxu1 %v6099_v52 }
 0x621   :  { %4821 = vmatpush1.bf16.msra.mxu1 %v6097_v33 }
 0x622   :  { %4822 = vmatprep.subr.bf16.mxu1 %v6102_v16 }
 0x625   :  { %4823 = vmatpush1.bf16.msra.mxu1 %v6100_v31 }
 0x626   :  { %4824 = vmatprep.subr.bf16.mxu1 %v6105_v36 }
 0x629   :  { %4825 = vmatpush1.bf16.msra.mxu1 %v6103_v39 }
 0x62c   :  { %4843 = vmatmul.mubr.bf16.vlgmr.msra.gmra.mrb[48].mxu1 %v3700_v25  ;;  %v5667_v25 = vpack.c.bf16 %v5013_v30, %v5012_v21 }
 0x62d   :  { %4852 = vmatprep.mubr.bf16.mxu1 %v9835_v20 }
 0x62e   :  { %5668 = vmatpush3.bf16.msra.mxu0 %v5667_v25 }
 0x62f   :  { %5670 = vmatprep.subr.bf16.mxu0 %v5669_v44 }
 0x634   :  { %4853 = vmatmul.mubr.bf16.gmra.mrb[52].mxu1 %v3701_v26  ;;  %v5014_v26 = vld [vmem:[%s9551_s13 + $0x10] sm:$0xff] }
 0x635   :  { %v5671_v18 = vpack.c.bf16 %v5015_v24, %v5014_v26 }
 0x637   :  { %5672 = vmatpush3.bf16.msra.mxu0 %v5671_v18 }
 0x638   :  { %5674 = vmatprep.subr.bf16.mxu0 %v5673_v63 }
 0x63b   :  { %5676 = vmatpush3.bf16.msra.mxu0 %v5675_v10 }
 0x63c   :  { %5678 = vmatprep.subr.bf16.mxu0 %v5677_v46 }
 0x63f   :  { %5680 = vmatpush3.bf16.msra.mxu0 %v5679_v3 }
 0x640   :  { %5682 = vmatprep.subr.bf16.mxu0 %v5681_v57 }
 0x643   :  { %5684 = vmatpush3.bf16.msra.mxu0 %v5683_v45 }
 0x644   :  { %5686 = vmatprep.subr.bf16.mxu0 %v5685_v1 }
 0x647   :  { %5688 = vmatpush3.bf16.msra.mxu0 %v5687_v40 }
 0x648   :  { %5690 = vmatprep.subr.bf16.mxu0 %v5689_v41 }
 0x64b   :  { %5692 = vmatpush3.bf16.msra.mxu0 %v5691_v22 }
 0x64c   :  { %5694 = vmatprep.subr.bf16.mxu0 %v5693_v42 }
 0x64f   :  { %5696 = vmatpush3.bf16.msra.mxu0 %v5695_v56 }
 0x6ff   :  { %v4844_v58 = vpop.f32.mrb[48].mxu1 }
 0x700   :  { %v4846_v20 = vpop.f32.mrb[49].mxu1  ;;  %v5697_v28 = vadd.f32 %v4844_v58, %v3871_v51 }
 0x701   :  { %v4848_v8 = vpop.f32.mrb[50].mxu1  ;;  %v5698_v16 = vadd.f32 %v4846_v20, %v3875_v60 }
 0x702   :  { %v5699_v52 = vadd.f32 %v4848_v8, %v3871_v51  ;;  %v4850_v33 = vpop.f32.mrb[51].mxu1 }
 0x703   :  { %v5700_v31 = vadd.f32 %v4850_v33, %v3875_v60 }
 0x704   :  { %v4865_v36 = vadd.f32 %v5699_v52, %v5697_v28 }
 0x705   :  { %v4874_v39 = vadd.f32 %v5700_v31, %v5698_v16 }
 0x707   :  { %v4854_v17 = vpop.f32.mrb[52].mxu1 }
 0x708   :  { %v5701_v54 = vadd.f32 %v4854_v17, %v3871_v51  ;;  %v4856_v55 = vpop.f32.mrb[53].mxu1 }
 0x709   :  { %v5702_v21 = vadd.f32 %v4856_v55, %v3875_v60  ;;  %v4858_v34 = vpop.f32.mrb[54].mxu1  ;;  %v4863_v55 = vld [vmem:[%s9549_s11] sm:$0x3] }
 0x70a   :  { %v4866_v30 = vadd.f32 %v5701_v54, %v4865_v36  ;;  %v5703_v25 = vadd.f32 %v4858_v34, %v3871_v51  ;;  %v4860_v2 = vpop.f32.mrb[55].mxu1  ;;  %v4937_v34 = vrot.slane %v4863_v55, %v9503_v48 }
 0x70b   :  { %v4875_v13 = vadd.f32 %v5702_v21, %v4874_v39  ;;  %v5704_v26 = vadd.f32 %v4860_v2, %v3875_v60  ;;  %v4941_v2 = vrot.slane %v4863_v55, %v9509_v53 }
 0x70c   :  { %v4867_v44 = vadd.f32 %v5703_v25, %v4866_v30 }
 0x70d   :  { %v4876_v24 = vadd.f32 %v5704_v26, %v4875_v13 }
 0x70e   :  { %v4868_v11 = vrot.slane %v4867_v44, 4 }
 0x70f   :  { %v4877_v43 = vrot.slane %v4876_v24, 4 }
 0x710   :  { %v4869_v18 = vadd.f32 %v4868_v11, %v4867_v44 }
 0x711   :  { %v4878_v63 = vadd.f32 %v4877_v43, %v4876_v24 }
 0x712   :  { %v4870_v47 = vrot.slane %v4869_v18, 2 }
 0x713   :  { %v4879_v35 = vrot.slane %v4878_v63, 2 }
 0x714   :  { %v4871_v29 = vadd.f32 %v4870_v47, %v4869_v18 }
 0x715   :  { %v4880_v27 = vadd.f32 %v4879_v35, %v4878_v63 }
 0x716   :  { %v4872_v10 = vrot.slane %v4871_v29, 1 }
 0x717   :  { %v4881_v46 = vrot.slane %v4880_v27, 1 }
 0x718   :  { %v4873_v32 = vadd.f32 %v4872_v10, %v4871_v29 }
 0x719   :  { %v4882_v6 = vadd.f32 %v4881_v46, %v4880_v27 }
 0x71a   :  { %v4883_v37 = vmul.f32 0.03125, %v4873_v32 }
 0x71b   :  { %v4884_v14 = vmul.f32 0.03125, %v4882_v6 }
 0x71c   :  { %v4885_v3 = vsub.f32 %v5697_v28, %v4883_v37  ;;  %v4887_v57 = vsub.f32 %v5699_v52, %v4883_v37  ;;  %v4889_v4 = vsub.f32 %v5701_v54, %v4883_v37  ;;  %v4891_v9 = vsub.f32 %v5703_v25, %v4883_v37 }
 0x71d   :  { %v4886_v15 = vsub.f32 %v5698_v16, %v4884_v14  ;;  %v4888_v49 = vsub.f32 %v5700_v31, %v4884_v14  ;;  %v4890_v45 = vsub.f32 %v5702_v21, %v4884_v14  ;;  %v4892_v1 = vsub.f32 %v5704_v26, %v4884_v14  ;;  %v4864_v21 = vld [vmem:[%s9550_s12] sm:$0x3] }
 0x71e   :  { %v4893_v23 = vmul.f32 %v4885_v3, %v4885_v3  ;;  %v4895_v19 = vmul.f32 %v4887_v57, %v4887_v57  ;;  %v4897_v40 = vmul.f32 %v4889_v4, %v4889_v4  ;;  %v4899_v62 = vmul.f32 %v4891_v9, %v4891_v9 }
 0x71f   :  { %v4894_v7 = vmul.f32 %v4886_v15, %v4886_v15  ;;  %v4896_v5 = vmul.f32 %v4888_v49, %v4888_v49  ;;  %v4898_v50 = vmul.f32 %v4890_v45, %v4890_v45  ;;  %v4900_v22 = vmul.f32 %v4892_v1, %v4892_v1 }
 0x720   :  { %v4901_v41 = vadd.f32 %v4895_v19, %v4893_v23  ;;  %v4956_v25 = vrot.slane %v4864_v21, %v9503_v48  ;;  %v4960_v13 = vrot.slane %v4864_v21, %v9509_v53 }
 0x721   :  { %v4910_v38 = vadd.f32 %v4896_v5, %v4894_v7 }
 0x722   :  { %v4902_v12 = vadd.f32 %v4901_v41, %v4897_v40 }
 0x723   :  { %v4911_v42 = vadd.f32 %v4910_v38, %v4898_v50 }
 0x724   :  { %v4903_v0 = vadd.f32 %v4902_v12, %v4899_v62 }
 0x725   :  { %v4912_v59 = vadd.f32 %v4911_v42, %v4900_v22 }
 0x726   :  { %v4904_v56 = vrot.slane %v4903_v0, 4 }
 0x727   :  { %v4913_v61 = vrot.slane %v4912_v59, 4 }
 0x728   :  { %v4905_v51 = vadd.f32 %v4904_v56, %v4903_v0 }
 0x729   :  { %v4914_v58 = vadd.f32 %v4913_v61, %v4912_v59 }
 0x72a   :  { %v4906_v60 = vrot.slane %v4905_v51, 2 }
 0x72b   :  { %v4915_v20 = vrot.slane %v4914_v58, 2 }
 0x72c   :  { %v4907_v8 = vadd.f32 %v4906_v60, %v4905_v51 }
 0x72d   :  { %v4916_v28 = vadd.f32 %v4915_v20, %v4914_v58 }
 0x72e   :  { %v4908_v52 = vrot.slane %v4907_v8, 1 }
 0x72f   :  { %v4917_v33 = vrot.slane %v4916_v28, 1 }
 0x730   :  { %v4909_v16 = vadd.f32 %v4908_v52, %v4907_v8 }
 0x731   :  { %v4918_v31 = vadd.f32 %v4917_v33, %v4916_v28 }
 0x732   :  { %v4919_v36 = vmul.f32 0.03125, %v4909_v16 }
 0x733   :  { %v4920_v39 = vmul.f32 0.03125, %v4918_v31 }
 0x734   :  { %v4921_v17 = vadd.f32 1e-05, %v4919_v36 }
 0x735   :  { %v4922_v54 = vadd.f32 1e-05, %v4920_v39 }
 0x736   :  { %6110 = vrsqrt.f32 %v4921_v17 }
 0x737   :  { %6112 = vrsqrt.f32 %v4922_v54 }
 0x740   :  { %v6111_v30 = vpop.eup %6110 }
 0x741   :  { %v6113_v26 = vpop.eup %6112  ;;  %v4925_v44 = vmul.f32 %v6111_v30, %v4885_v3  ;;  %v4927_v24 = vmul.f32 %v6111_v30, %v4887_v57  ;;  %v4929_v11 = vmul.f32 %v6111_v30, %v4889_v4  ;;  %v4931_v43 = vmul.f32 %v6111_v30, %v4891_v9 }
 0x742   :  { %v4926_v18 = vmul.f32 %v6113_v26, %v4886_v15  ;;  %v4928_v63 = vmul.f32 %v6113_v26, %v4888_v49  ;;  %v4930_v47 = vmul.f32 %v6113_v26, %v4890_v45  ;;  %v4932_v35 = vmul.f32 %v6113_v26, %v4892_v1 }
 0x743   :  { %v4944_v29 = vmul.f32 %v4937_v34, %v4925_v44  ;;  %v4946_v27 = vmul.f32 %v4937_v34, %v4927_v24  ;;  %v4948_v10 = vmul.f32 %v4937_v34, %v4929_v11  ;;  %v4950_v46 = vmul.f32 %v4937_v34, %v4931_v43  ;;  %v5435_v43 = vld [vmem:[%s9552_s14] ss:$0 sm:$0xff] }
 0x744   :  { %v4949_v32 = vmul.f32 %v4941_v2, %v4930_v47  ;;  %v4951_v6 = vmul.f32 %v4941_v2, %v4932_v35  ;;  %v4945_v48 = vmul.f32 %v4941_v2, %v4926_v18  ;;  %v4947_v37 = vmul.f32 %v4941_v2, %v4928_v63 }
 0x745   :  { %v4967_v14 = vadd.f32 %v4956_v25, %v4948_v10  ;;  %v4969_v23 = vadd.f32 %v4956_v25, %v4950_v46  ;;  %v4963_v53 = vadd.f32 %v4956_v25, %v4944_v29  ;;  %v4965_v19 = vadd.f32 %v4956_v25, %v4946_v27 }
 0x746   :  { %v4968_v3 = vadd.f32 %v4960_v13, %v4949_v32  ;;  %v4970_v57 = vadd.f32 %v4960_v13, %v4951_v6  ;;  %v4964_v4 = vadd.f32 %v4960_v13, %v4945_v48  ;;  %v4966_v9 = vadd.f32 %v4960_v13, %v4947_v37 }
 0x747   :  { %v4975_v15 = vmax.f32 %v4967_v14, 0.0  ;;  %v4977_v49 = vmax.f32 %v4969_v23, 0.0  ;;  %v4971_v45 = vmax.f32 %v4963_v53, 0.0  ;;  %v4973_v1 = vmax.f32 %v4965_v19, 0.0 }
 0x748   :  { %v4976_v7 = vmax.f32 %v4968_v3, 0.0  ;;  %v4978_v5 = vmax.f32 %v4970_v57, 0.0  ;;  %v4972_v40 = vmax.f32 %v4964_v4, 0.0  ;;  %v4974_v41 = vmax.f32 %v4966_v9, 0.0 }
 0x749   :  { %v4993_v50 = vadd.f32 %v4977_v49, %v4975_v15  ;;  %v4979_v38 = vadd.f32 %v4973_v1, %v4971_v45 }
 0x74a   :  { %v5000_v62 = vadd.f32 %v4978_v5, %v4976_v7  ;;  %v4986_v12 = vadd.f32 %v4974_v41, %v4972_v40 }
 0x74b   :  { %v4994_v22 = vrot.slane %v4993_v50, 4  ;;  %v4980_v42 = vrot.slane %v4979_v38, 4 }
 0x74c   :  { %v4987_v0 = vrot.slane %v4986_v12, 4  ;;  %v5001_v59 = vrot.slane %v5000_v62, 4 }
 0x74d   :  { %v4995_v56 = vadd.f32 %v4994_v22, %v4993_v50  ;;  %v4981_v61 = vadd.f32 %v4980_v42, %v4979_v38 }
 0x74e   :  { %v4988_v51 = vadd.f32 %v4987_v0, %v4986_v12  ;;  %v5002_v58 = vadd.f32 %v5001_v59, %v5000_v62 }
 0x74f   :  { %v4982_v60 = vrot.slane %v4981_v61, 2  ;;  %v4996_v20 = vrot.slane %v4995_v56, 2 }
 0x750   :  { %v4989_v8 = vrot.slane %v4988_v51, 2  ;;  %v5003_v28 = vrot.slane %v5002_v58, 2 }
 0x751   :  { %v4983_v52 = vadd.f32 %v4982_v60, %v4981_v61  ;;  %v4997_v33 = vadd.f32 %v4996_v20, %v4995_v56 }
 0x752   :  { %v4990_v16 = vadd.f32 %v4989_v8, %v4988_v51  ;;  %v5004_v31 = vadd.f32 %v5003_v28, %v5002_v58 }
 0x753   :  { %v4984_v36 = vrot.slane %v4983_v52, 1  ;;  %v4998_v39 = vrot.slane %v4997_v33, 1 }
 0x754   :  { %v4991_v17 = vrot.slane %v4990_v16, 1  ;;  %v5005_v54 = vrot.slane %v5004_v31, 1 }
 0x755   :  { %v4985_v55 = vadd.f32 %v4984_v36, %v4983_v52  ;;  %v4999_v21 = vadd.f32 %v4998_v39, %v4997_v33 }
 0x756   :  { %v4992_v34 = vadd.f32 %v4991_v17, %v4990_v16  ;;  %v5006_v30 = vadd.f32 %v5005_v54, %v5004_v31 }
 0x757   :  { %v5008_v25 = vmul.f32 0.0625, %v4985_v55  ;;  %v5010_v2 = vmul.f32 0.0625, %v4999_v21 }
 0x758   :  { %v5009_v13 = vmul.f32 0.0625, %v4992_v34  ;;  %v5011_v26 = vmul.f32 0.0625, %v5006_v30 }
 0x759   :  { %v5056_v44 = vsel %vm5055_vm1, %v5010_v2, %v5008_v25 }
 0x75a   :  { %v5057_v24 = vsel %vm5055_vm1, %v5011_v26, %v5009_v13 }
 0x75b   :  { %5124 = vmatprep.mubr.f32.mxu0 %v5057_v24 }
 0x75c   :  { %5125 = vmatmul.mubr.f32.vlgmr.msra.gmra.mrb[160].mxu0 %v5056_v44 }
 0x82f   :  { %v5638_v11 = vpop.f32.mrb[160].mxu0 }
 0x830   :  { %v5639_v18 = vpop.f32.mrb[161].mxu0 }
 0x831   :  { %v5640_v63 = vadd.f32 %v5639_v18, %v5638_v11 }
 0x833   :  { %v5127_v47 = vadd.f32 %v5640_v63, %v5435_v43 }
 0x835   :  { %5131 = vst.msk [vmem:[#allocation7] sm:$0x3] %vm5130_vm2, %v5127_v47 }
 0x836   :  { %6125 = shalt.err (!%p6122_p4)
}
 0x837   :  { %s6126_s25 = scalar_lea.hbm %s9553_s15, 32 }
 0x838   :  { %p6127_p5 = scmp.ne.s32.totalorder %s9553_s15, %s6126_s25  ;;  %p6130_p6 = scmp.lt.u32.totalorder %s6126_s25, %s9553_s15 }
 0x83a   :  { %p6132_p7 = pnand %p6130_p6, %p6127_p5 }
 0x83c   :  { %6135 = shalt.err (!%p6132_p7)
}
 0x83d   :  { %5141 = dma.vmem_to_hbm [thread:$0]  %s5139_s7, 32, %s9553_s15, [#allocation8]  }
 0x83e   :  { %6136 = dma.done.wait [#allocation8], 32  }
 0x83f   :  { %6137 = vsyncadd [#allocation8], 4294967264 }
 0x840   :  { %5145 = vsyncpa [#allocation8], 1 }

</bundles_post_ra>
